<compile_context>
chip_gen: v7x
topology: tpu7x:2x2x1
jax: 0.10.0
libtpu: 0.0.40
codegen_flags: <defaults>
</compile_context>

<pallas_src>
import functools

import jax
import jax.numpy as jnp
from jax import lax
from jax.experimental import pallas as pl
from jax.experimental.pallas import tpu as pltpu


# --------------------------------------------------------------------------
# Small helpers
# --------------------------------------------------------------------------

R_RESIDENT_MAX_BYTES = 8 * 2**20      # keep R fully VMEM-resident only below this (v7x-safe)
FUSED_VMEM_MAX_BYTES = 24 * 2**20     # fuse all hops into one kernel only below this


def _round_up(a, b):
    return ((a + b - 1) // b) * b


def _pad_rows(x, n_to):
    n = x.shape[0]
    if n == n_to:
        return x
    return jnp.zeros((n_to,) + x.shape[1:], x.dtype).at[:n].set(x)


def _pad_square(a, n_to):
    n = a.shape[0]
    if n == n_to:
        return a
    return jnp.zeros((n_to, n_to), a.dtype).at[:n, :n].set(a)


# --------------------------------------------------------------------------
# Kernels
# --------------------------------------------------------------------------

def _embed_kernel(x_ref, w_ref, out_ref):
    """r0 tile = relu(x_tile @ w_embed); bf16 MXU operands, f32 accumulate + ReLU."""
    h = jnp.dot(x_ref[...], w_ref[...], preferred_element_type=jnp.float32)
    out_ref[...] = jnp.maximum(h, 0.0).astype(out_ref.dtype)


def _propagate_kernel(a1_ref, a2_ref, r_ref, d1c_ref, d2c_ref, d1r_ref, d2r_ref,
                      out_ref, acc1_ref, acc2_ref, *, tc, d, r_resident):
    """out row-tile = [D1^-1/2 Ind1 D1^-1/2 R | D2^-1/2 Ind2 D2^-1/2 R].

    Grid = (row_tiles [parallel], col_tiles [arbitrary reduction]).
    Ind1/Ind2 row tiles are streamed as int8 (exact {0,1}); D^-1/2 scaling is applied
    to the R slab (right) and the accumulator (left) so the big stream stays 1 B/elem.
    """
    kc = pl.program_id(1)

    @pl.when(kc == 0)
    def _init():
        acc1_ref[...] = jnp.zeros_like(acc1_ref)
        acc2_ref[...] = jnp.zeros_like(acc2_ref)

    if r_resident:
        start = pl.multiple_of(kc * tc, tc)
        r_blk = r_ref[pl.ds(start, tc), :]
    else:
        r_blk = r_ref[...]
    r_f32 = r_blk.astype(jnp.float32)

    # int8 {0,1} indicator -> bf16 MXU operand (VPU cast, hidden under the HBM stream)
    a1 = a1_ref[...].astype(jnp.float32).astype(jnp.bfloat16)
    a2 = a2_ref[...].astype(jnp.float32).astype(jnp.bfloat16)

    r1 = (r_f32 * d1c_ref[...]).astype(jnp.bfloat16)   # right D1^-1/2 scaling
    r2 = (r_f32 * d2c_ref[...]).astype(jnp.bfloat16)   # right D2^-1/2 scaling

    acc1_ref[...] += jnp.dot(a1, r1, preferred_element_type=jnp.float32)
    acc2_ref[...] += jnp.dot(a2, r2, preferred_element_type=jnp.float32)

    @pl.when(kc == pl.num_programs(1) - 1)
    def _finalize():
        # left D^-1/2 row rescale; direct half writes — no lane-axis concat temp
        out_ref[:, 0:d] = (acc1_ref[...] * d1r_ref[...]).astype(out_ref.dtype)
        out_ref[:, d:2 * d] = (acc2_ref[...] * d2r_ref[...]).astype(out_ref.dtype)


def _classify_kernel(*refs, nclass, seg_widths):
    """log_softmax(sum_i r_i_tile @ w_slab_i); class dim padded to 128 lanes.

    r_final is never materialized: the dot distributes over the column segments
    (r0..rk) against the matching row slabs of w_classify.
    """
    n_seg = len(seg_widths)
    r_refs = refs[:n_seg]
    w_ref = refs[n_seg]
    out_ref = refs[n_seg + 1]

    z = None
    off = 0
    for r_ref, w in zip(r_refs, seg_widths):
        part = jnp.dot(r_ref[...], w_ref[off:off + w, :],
                       preferred_element_type=jnp.float32)
        z = part if z is None else z + part
        off += w

    col = lax.broadcasted_iota(jnp.int32, z.shape, 1)
    z = jnp.where(col < nclass, z, -1e30)          # mask lane padding (z stays f32)
    m = jnp.max(z, axis=1, keepdims=True)
    lse = jnp.log(jnp.sum(jnp.exp(z - m), axis=1, keepdims=True)) + m
    out_ref[...] = z - lse


def _fused_kernel(x_ref, w_embed_ref, a1_ref, a2_ref, d1_ref, d2_ref, w_cls_ref,
                  out_ref, r_all_ref, *, k, d, nclass):
    """Whole forward in one kernel (small graphs): A1/A2 resident, hops looped in-kernel,
    r segments written into column windows of one VMEM scratch, fused classify head."""
    r_all_ref[:, 0:d] = jnp.maximum(
        jnp.dot(x_ref[...], w_embed_ref[...], preferred_element_type=jnp.float32), 0.0)

    a1 = a1_ref[...].astype(jnp.float32)
    a2 = a2_ref[...].astype(jnp.float32)
    d1 = d1_ref[...]
    d2 = d2_ref[...]

    off, width = 0, d
    for _ in range(k):
        prev = r_all_ref[:, off:off + width]
        h1 = d1 * jnp.dot(a1, d1 * prev, preferred_element_type=jnp.float32)
        h2 = d2 * jnp.dot(a2, d2 * prev, preferred_element_type=jnp.float32)
        r_all_ref[:, off + width:off + 2 * width] = h1
        r_all_ref[:, off + 2 * width:off + 3 * width] = h2
        off, width = off + width, 2 * width

    z = jnp.dot(r_all_ref[...], w_cls_ref[...], preferred_element_type=jnp.float32)
    col = lax.broadcasted_iota(jnp.int32, z.shape, 1)
    z = jnp.where(col < nclass, z, -1e30)
    m = jnp.max(z, axis=1, keepdims=True)
    lse = jnp.log(jnp.sum(jnp.exp(z - m), axis=1, keepdims=True)) + m
    out_ref[...] = z - lse


# --------------------------------------------------------------------------
# Wrappers (pallas_call plumbing)
# --------------------------------------------------------------------------

def _pick_padding_and_tiles(n):
    """Pad N so tiles always divide it (never a full-N fallback); tr mult of 32, tc of 128."""
    np_ = _round_up(n, 512) if n > 512 else _round_up(n, 128)
    tr = 256 if np_ % 256 == 0 else 128
    tc = 512 if np_ % 512 == 0 else np_
    assert np_ % tr == 0 and np_ % tc == 0
    return np_, tr, tc


def _embed(xp, w_embed, *, tr):
    np_, f = xp.shape
    d = w_embed.shape[1]
    return pl.pallas_call(
        _embed_kernel,
        out_shape=jax.ShapeDtypeStruct((np_, d), jnp.bfloat16),
        grid=(np_ // tr,),
        in_specs=[pl.BlockSpec((tr, f), lambda i: (i, 0)),
                  pl.BlockSpec((f, d), lambda i: (0, 0))],
        out_specs=pl.BlockSpec((tr, d), lambda i: (i, 0)),
        compiler_params=pltpu.CompilerParams(dimension_semantics=("parallel",)),
    )(xp.astype(jnp.bfloat16), w_embed.astype(jnp.bfloat16))


def _propagate(ind1, ind2, r, d1, d2, *, tr, tc):
    np_ = ind1.shape[0]
    d = r.shape[1]

    r_resident = (np_ * d * 2) <= R_RESIDENT_MAX_BYTES
    if r_resident:
        # TODO(synk): mark this constant-index block pipeline_mode=pl.Buffered(1) once
        # single-buffered resident blocks are universally supported; saves one R copy.
        r_spec = pl.BlockSpec((np_, d), lambda i, kc: (0, 0))
        r_buf_bytes = 2 * np_ * d * 2
    else:
        r_spec = pl.BlockSpec((tc, d), lambda i, kc: (kc, 0))
        r_buf_bytes = 2 * tc * d * 2

    vmem = (2 * 2 * tr * tc            # int8 Ind1 + Ind2 tiles, double-buffered
            + r_buf_bytes              # bf16 R (resident or reduction-slab tiled)
            + 2 * 2 * (tc + tr) * 4    # f32 dinv column / row slabs
            + 2 * tr * 2 * d * 2       # bf16 out tile, double-buffered
            + 2 * tr * d * 4)          # f32 accumulators
    vmem_limit = min(64 * 2**20, max(8 * 2**20, int(vmem * 1.5) + (4 << 20)))

    flops = 2 * 2 * np_ * np_ * d
    bytes_accessed = 2 * np_ * np_ + np_ * d * 2 + np_ * 2 * d * 2 + 4 * np_ * 4

    return pl.pallas_call(
        functools.partial(_propagate_kernel, tc=tc, d=d, r_resident=r_resident),
        out_shape=jax.ShapeDtypeStruct((np_, 2 * d), jnp.bfloat16),
        grid=(np_ // tr, np_ // tc),
        in_specs=[pl.BlockSpec((tr, tc), lambda i, kc: (i, kc)),   # Ind1 (int8)
                  pl.BlockSpec((tr, tc), lambda i, kc: (i, kc)),   # Ind2 (int8)
                  r_spec,                                          # R (bf16)
                  pl.BlockSpec((tc, 1), lambda i, kc: (kc, 0)),    # dinv1 column slab
                  pl.BlockSpec((tc, 1), lambda i, kc: (kc, 0)),    # dinv2 column slab
                  pl.BlockSpec((tr, 1), lambda i, kc: (i, 0)),     # dinv1 row slab
                  pl.BlockSpec((tr, 1), lambda i, kc: (i, 0))],    # dinv2 row slab
        out_specs=pl.BlockSpec((tr, 2 * d), lambda i, kc: (i, 0)),
        scratch_shapes=[pltpu.VMEM((tr, d), jnp.float32),
                        pltpu.VMEM((tr, d), jnp.float32)],
        compiler_params=pltpu.CompilerParams(
            dimension_semantics=("parallel", "arbitrary"),
            vmem_limit_bytes=vmem_limit),
        cost_estimate=pl.CostEstimate(flops=flops, transcendentals=0,
                                      bytes_accessed=bytes_accessed),
    )(ind1, ind2, r, d1, d2, d1, d2)


def _classify(rs, w_pad, *, nclass, tr):
    np_ = rs[0].shape[0]
    seg_widths = tuple(int(r.shape[1]) for r in rs)
    dtot, cpad = w_pad.shape
    in_specs = [pl.BlockSpec((tr, w), lambda i: (i, 0)) for w in seg_widths]
    in_specs.append(pl.BlockSpec((dtot, cpad), lambda i: (0, 0)))
    return pl.pallas_call(
        functools.partial(_classify_kernel, nclass=nclass, seg_widths=seg_widths),
        out_shape=jax.ShapeDtypeStruct((np_, cpad), jnp.float32),
        grid=(np_ // tr,),
        in_specs=in_specs,
        out_specs=pl.BlockSpec((tr, cpad), lambda i: (i, 0)),
        compiler_params=pltpu.CompilerParams(dimension_semantics=("parallel",)),
    )(*rs, w_pad.astype(jnp.bfloat16))


def _fused_forward(xp, ind1p, ind2p, d1p, d2p, w_embed, w_cls_pad, *, k, nclass,
                   vmem_limit):
    np_, f = xp.shape
    d = w_embed.shape[1]
    dtot, cpad = w_cls_pad.shape
    return pl.pallas_call(
        functools.partial(_fused_kernel, k=k, d=d, nclass=nclass),
        out_shape=jax.ShapeDtypeStruct((np_, cpad), jnp.float32),
        grid=(1,),
        in_specs=[pl.BlockSpec((np_, f), lambda i: (0, 0)),
                  pl.BlockSpec((f, d), lambda i: (0, 0)),
                  pl.BlockSpec((np_, np_), lambda i: (0, 0)),
                  pl.BlockSpec((np_, np_), lambda i: (0, 0)),
                  pl.BlockSpec((np_, 1), lambda i: (0, 0)),
                  pl.BlockSpec((np_, 1), lambda i: (0, 0)),
                  pl.BlockSpec((dtot, cpad), lambda i: (0, 0))],
        out_specs=pl.BlockSpec((np_, cpad), lambda i: (0, 0)),
        scratch_shapes=[pltpu.VMEM((np_, dtot), jnp.float32)],
        compiler_params=pltpu.CompilerParams(
            dimension_semantics=("arbitrary",),
            vmem_limit_bytes=vmem_limit),
    )(xp.astype(jnp.float32), w_embed.astype(jnp.float32), ind1p, ind2p, d1p, d2p,
      w_cls_pad.astype(jnp.float32))


def h2gcn_forward(x, ind1, ind2, dinv1, dinv2, w_embed, w_classify, *, k, nclass,
                  force_streaming=False):
    """Forward pass. ind1/ind2: int8 {0,1} 1-hop/2-hop indicators; dinv1/dinv2: D^-1/2."""
    n, f = x.shape
    d = w_embed.shape[1]
    dtot = (2 ** (k + 1) - 1) * d
    assert w_classify.shape == (dtot, nclass)
    cpad = _round_up(max(nclass, 1), 128)

    np_, tr, tc = _pick_padding_and_tiles(n)

    xp = _pad_rows(x.astype(jnp.float32), np_)
    ind1p = _pad_square(ind1.astype(jnp.int8), np_)
    ind2p = _pad_square(ind2.astype(jnp.int8), np_)
    d1p = _pad_rows(dinv1.astype(jnp.float32).reshape(-1, 1), np_)
    d2p = _pad_rows(dinv2.astype(jnp.float32).reshape(-1, 1), np_)
    w_cls_pad = jnp.zeros((dtot, cpad), jnp.float32).at[:, :nclass].set(
        w_classify.astype(jnp.float32))

    # rough VMEM footprint of the fully-fused path (inputs/outputs counted double-buffered)
    fused_bytes = (2 * (2 * np_ * np_ + np_ * f * 4 + f * d * 4 + dtot * cpad * 4
                        + np_ * cpad * 4 + 2 * np_ * 4)
                   + np_ * dtot * 4)

    if (not force_streaming) and fused_bytes <= FUSED_VMEM_MAX_BYTES:
        vmem_limit = min(60 * 2**20, int(fused_bytes * 1.25) + (8 << 20))
        logp = _fused_forward(xp, ind1p, ind2p, d1p, d2p, w_embed, w_cls_pad,
                              k=k, nclass=nclass, vmem_limit=vmem_limit)
    else:
        rs = [_embed(xp, w_embed, tr=tr)]
        for _ in range(k):
            rs.append(_propagate(ind1p, ind2p, rs[-1], d1p, d2p, tr=tr, tc=tc))
        logp = _classify(rs, w_cls_pad, nclass=nclass, tr=tr)

    # TODO(synk): F.dropout(training=True) not implemented; eval mode => identity.
    return logp[:n, :nclass]


# --------------------------------------------------------------------------
# Plain-JAX glue: dense equivalent of H2GCN_Net._prepare_prop (one-time setup)
# --------------------------------------------------------------------------

def build_h2gcn_propagation(adj):
    """Returns (ind1 int8, ind2 int8, dinv1, dinv2) with A_hat = dinv[:,None]*ind*dinv[None,:].

    ind1 = indicator(adj - I); ind2 = indicator(adj@adj - adj - I); dinv = deg(ind)^-1/2.
    """
    n = adj.shape[0]
    eye = jnp.eye(n, dtype=jnp.float32)
    ind1 = ((adj - eye) > 0)
    ind2 = ((adj @ adj - adj - eye) > 0)

    def dinv_of(ind):
        deg = jnp.sum(ind.astype(jnp.float32), axis=1)
        return jnp.where(deg > 0, 1.0 / jnp.sqrt(deg), 0.0)

    return (ind1.astype(jnp.int8), ind2.astype(jnp.int8), dinv_of(ind1), dinv_of(ind2))


def _dense_hat(ind, dinv):
    a = ind.astype(jnp.float32)
    return dinv[:, None] * a * dinv[None, :]


def glorot(key, shape):
    fan_in, fan_out = shape
    limit = jnp.sqrt(6.0 / (fan_in + fan_out))
    return jax.random.uniform(key, shape, jnp.float32, -limit, limit)


def h2gcn_reference(x, a1_hat, a2_hat, w_embed, w_classify, k):
    """Pure f32 JAX reference of the PyTorch forward (eval mode)."""
    rs = [jax.nn.relu(x @ w_embed)]
    for _ in range(k):
        r = rs[-1]
        rs.append(jnp.concatenate([a1_hat @ r, a2_hat @ r], axis=1))
    r_final = jnp.concatenate(rs, axis=1)
    return jax.nn.log_softmax(r_final @ w_classify, axis=1)


if __name__ == "__main__":
    key = jax.random.PRNGKey(0)
    N, nfeat, nhid, nclass, k = 64, 16, 64, 8, 2

    kx, ke, k1, k2 = jax.random.split(key, 4)

    # node features
    x = jax.random.normal(kx, (N, nfeat), jnp.float32)

    # random symmetric adjacency with self loops
    src = jax.random.randint(ke, (256,), 0, N)
    dst = jax.random.randint(jax.random.fold_in(ke, 1), (256,), 0, N)
    A = jnp.zeros((N, N), jnp.float32).at[src, dst].set(1.0)
    A = jnp.maximum(A, A.T)
    A = jnp.maximum(A, jnp.eye(N, dtype=jnp.float32))

    ind1, ind2, dinv1, dinv2 = build_h2gcn_propagation(A)

    # xavier_uniform parameters (reset_parameter)
    w_embed = glorot(k1, (nfeat, nhid))
    w_classify = glorot(k2, ((2 ** (k + 1) - 1) * nhid, nclass))

    # fused small-graph path (auto-selected at this size)
    out_fused = h2gcn_forward(x, ind1, ind2, dinv1, dinv2, w_embed, w_classify,
                              k=k, nclass=nclass)
    # streaming tiled path (forced, to exercise the large-graph kernels)
    out_stream = h2gcn_forward(x, ind1, ind2, dinv1, dinv2, w_embed, w_classify,
                               k=k, nclass=nclass, force_streaming=True)
    jax.block_until_ready((out_fused, out_stream))

    assert out_fused.shape == (N, nclass)
    assert out_stream.shape == (N, nclass)
    # valid log-probabilities: rows sum to 1 in prob space
    assert jnp.allclose(jnp.sum(jnp.exp(out_fused), axis=1), 1.0, atol=1e-3)
    assert jnp.allclose(jnp.sum(jnp.exp(out_stream), axis=1), 1.0, atol=1e-3)

    # match f32 reference
    a1_hat = _dense_hat(ind1, dinv1)
    a2_hat = _dense_hat(ind2, dinv2)
    ref = h2gcn_reference(x, a1_hat, a2_hat, w_embed, w_classify, k)
    assert jnp.max(jnp.abs(out_fused - ref)) < 0.25
    assert jnp.max(jnp.abs(out_stream - ref)) < 0.25

    print("KERNEL_OK")
</pallas_src>

<mosaic_0001>
module attributes {stable_mosaic.version = 11 : i64} {
  func.func @_fused_kernel(%arg0: i32, %arg1: memref<128x16xf32, #tpu.memory_space<vmem>>, %arg2: memref<16x64xf32, #tpu.memory_space<vmem>>, %arg3: memref<128x128xi8, #tpu.memory_space<vmem>>, %arg4: memref<128x128xi8, #tpu.memory_space<vmem>>, %arg5: memref<128x1xf32, #tpu.memory_space<vmem>>, %arg6: memref<128x1xf32, #tpu.memory_space<vmem>>, %arg7: memref<448x128xf32, #tpu.memory_space<vmem>>, %arg8: memref<128x128xf32, #tpu.memory_space<vmem>>, %arg9: memref<128x448xf32, #tpu.memory_space<vmem>>) attributes {dimension_semantics = [#tpu.dimension_semantics<arbitrary>], iteration_bounds = array<i64: 1>, scalar_prefetch = 0 : i64, scratch_operands = 1 : i64, tpu.core_type = #tpu.core_type<tc>, window_params = [{pipeline_mode = #tpu.pipeline_mode<synchronous>, transform_indices = @transform_0, window_bounds = array<i64: 128, 16>}, {pipeline_mode = #tpu.pipeline_mode<synchronous>, transform_indices = @transform_1, window_bounds = array<i64: 16, 64>}, {pipeline_mode = #tpu.pipeline_mode<synchronous>, transform_indices = @transform_2, window_bounds = array<i64: 128, 128>}, {pipeline_mode = #tpu.pipeline_mode<synchronous>, transform_indices = @transform_3, window_bounds = array<i64: 128, 128>}, {pipeline_mode = #tpu.pipeline_mode<synchronous>, transform_indices = @transform_4, window_bounds = array<i64: 128, 1>}, {pipeline_mode = #tpu.pipeline_mode<synchronous>, transform_indices = @transform_5, window_bounds = array<i64: 128, 1>}, {pipeline_mode = #tpu.pipeline_mode<synchronous>, transform_indices = @transform_6, window_bounds = array<i64: 448, 128>}, {pipeline_mode = #tpu.pipeline_mode<synchronous>, transform_indices = @transform_7, window_bounds = array<i64: 128, 128>}]} {
    %c0 = arith.constant 0 : index
    %c0_0 = arith.constant 0 : index
    %0 = vector.load %arg1[%c0, %c0_0] : memref<128x16xf32, #tpu.memory_space<vmem>>, vector<128x16xf32>
    %c0_1 = arith.constant 0 : index
    %c0_2 = arith.constant 0 : index
    %1 = vector.load %arg2[%c0_1, %c0_2] : memref<16x64xf32, #tpu.memory_space<vmem>>, vector<16x64xf32>
    %cst = arith.constant dense<0.000000e+00> : vector<128x64xf32>
    %2 = tpu.matmul %0, %1, %cst {dimension_numbers = #tpu.dot_dimension_numbers<[1], [0], [0], [1], [0, 0, 1, 1], [], []>} : vector<128x16xf32>, vector<16x64xf32>, vector<128x64xf32> -> vector<128x64xf32>
    %cst_3 = arith.constant 0.000000e+00 : f32
    %3 = vector.broadcast %cst_3 : f32 to vector<128x64xf32>
    %4 = arith.maximumf %2, %3 : vector<128x64xf32>
    %c0_4 = arith.constant 0 : index
    %c0_5 = arith.constant 0 : index
    %5 = vector.load %arg9[%c0_4, %c0_5] : memref<128x448xf32, #tpu.memory_space<vmem>>, vector<128x64xf32>
    tpu.vector_store %arg9[%c0_4, %c0_5], %4 {strides = array<i32>} : memref<128x448xf32, #tpu.memory_space<vmem>>, vector<128x64xf32>,
    %c0_6 = arith.constant 0 : index
    %c0_7 = arith.constant 0 : index
    %6 = vector.load %arg3[%c0_6, %c0_7] : memref<128x128xi8, #tpu.memory_space<vmem>>, vector<128x128xi8>
    %7 = arith.sitofp %6 : vector<128x128xi8> to vector<128x128xf32>
    %c0_8 = arith.constant 0 : index
    %c0_9 = arith.constant 0 : index
    %8 = vector.load %arg4[%c0_8, %c0_9] : memref<128x128xi8, #tpu.memory_space<vmem>>, vector<128x128xi8>
    %9 = arith.sitofp %8 : vector<128x128xi8> to vector<128x128xf32>
    %c0_10 = arith.constant 0 : index
    %c0_11 = arith.constant 0 : index
    %10 = vector.load %arg5[%c0_10, %c0_11] : memref<128x1xf32, #tpu.memory_space<vmem>>, vector<128x1xf32>
    %c0_12 = arith.constant 0 : index
    %c0_13 = arith.constant 0 : index
    %11 = vector.load %arg6[%c0_12, %c0_13] : memref<128x1xf32, #tpu.memory_space<vmem>>, vector<128x1xf32>
    %c0_14 = arith.constant 0 : index
    %c0_15 = arith.constant 0 : index
    %12 = vector.load %arg9[%c0_14, %c0_15] : memref<128x448xf32, #tpu.memory_space<vmem>>, vector<128x64xf32>
    %13 = vector.broadcast %10 : vector<128x1xf32> to vector<128x64xf32>
    %14 = arith.mulf %13, %12 : vector<128x64xf32>
    %cst_16 = arith.constant dense<0.000000e+00> : vector<128x64xf32>
    %15 = tpu.matmul %7, %14, %cst_16 {dimension_numbers = #tpu.dot_dimension_numbers<[1], [0], [0], [1], [0, 0, 1, 1], [], []>} : vector<128x128xf32>, vector<128x64xf32>, vector<128x64xf32> -> vector<128x64xf32>
    %16 = vector.broadcast %10 : vector<128x1xf32> to vector<128x64xf32>
    %17 = arith.mulf %16, %15 : vector<128x64xf32>
    %18 = vector.broadcast %11 : vector<128x1xf32> to vector<128x64xf32>
    %19 = arith.mulf %18, %12 : vector<128x64xf32>
    %cst_17 = arith.constant dense<0.000000e+00> : vector<128x64xf32>
    %20 = tpu.matmul %9, %19, %cst_17 {dimension_numbers = #tpu.dot_dimension_numbers<[1], [0], [0], [1], [0, 0, 1, 1], [], []>} : vector<128x128xf32>, vector<128x64xf32>, vector<128x64xf32> -> vector<128x64xf32>
    %21 = vector.broadcast %11 : vector<128x1xf32> to vector<128x64xf32>
    %22 = arith.mulf %21, %20 : vector<128x64xf32>
    %c0_18 = arith.constant 0 : index
    %c64 = arith.constant 64 : index
    %23 = vector.load %arg9[%c0_18, %c64] : memref<128x448xf32, #tpu.memory_space<vmem>>, vector<128x64xf32>
    tpu.vector_store %arg9[%c0_18, %c64], %17 {strides = array<i32>} : memref<128x448xf32, #tpu.memory_space<vmem>>, vector<128x64xf32>,
    %c0_19 = arith.constant 0 : index
    %c128 = arith.constant 128 : index
    %24 = vector.load %arg9[%c0_19, %c128] : memref<128x448xf32, #tpu.memory_space<vmem>>, vector<128x64xf32>
    tpu.vector_store %arg9[%c0_19, %c128], %22 {strides = array<i32>} : memref<128x448xf32, #tpu.memory_space<vmem>>, vector<128x64xf32>,
    %c0_20 = arith.constant 0 : index
    %c64_21 = arith.constant 64 : index
    %25 = vector.load %arg9[%c0_20, %c64_21] : memref<128x448xf32, #tpu.memory_space<vmem>>, vector<128x128xf32>
    %26 = vector.broadcast %10 : vector<128x1xf32> to vector<128x128xf32>
    %27 = arith.mulf %26, %25 : vector<128x128xf32>
    %cst_22 = arith.constant dense<0.000000e+00> : vector<128x128xf32>
    %28 = tpu.matmul %7, %27, %cst_22 {dimension_numbers = #tpu.dot_dimension_numbers<[1], [0], [0], [1], [0, 0, 1, 1], [], []>} : vector<128x128xf32>, vector<128x128xf32>, vector<128x128xf32> -> vector<128x128xf32>
    %29 = vector.broadcast %10 : vector<128x1xf32> to vector<128x128xf32>
    %30 = arith.mulf %29, %28 : vector<128x128xf32>
    %31 = vector.broadcast %11 : vector<128x1xf32> to vector<128x128xf32>
    %32 = arith.mulf %31, %25 : vector<128x128xf32>
    %cst_23 = arith.constant dense<0.000000e+00> : vector<128x128xf32>
    %33 = tpu.matmul %9, %32, %cst_23 {dimension_numbers = #tpu.dot_dimension_numbers<[1], [0], [0], [1], [0, 0, 1, 1], [], []>} : vector<128x128xf32>, vector<128x128xf32>, vector<128x128xf32> -> vector<128x128xf32>
    %34 = vector.broadcast %11 : vector<128x1xf32> to vector<128x128xf32>
    %35 = arith.mulf %34, %33 : vector<128x128xf32>
    %c0_24 = arith.constant 0 : index
    %c192 = arith.constant 192 : index
    %36 = vector.load %arg9[%c0_24, %c192] : memref<128x448xf32, #tpu.memory_space<vmem>>, vector<128x128xf32>
    tpu.vector_store %arg9[%c0_24, %c192], %30 {strides = array<i32>} : memref<128x448xf32, #tpu.memory_space<vmem>>, vector<128x128xf32>,
    %c0_25 = arith.constant 0 : index
    %c320 = arith.constant 320 : index
    %37 = vector.load %arg9[%c0_25, %c320] : memref<128x448xf32, #tpu.memory_space<vmem>>, vector<128x128xf32>
    tpu.vector_store %arg9[%c0_25, %c320], %35 {strides = array<i32>} : memref<128x448xf32, #tpu.memory_space<vmem>>, vector<128x128xf32>,
    %c0_26 = arith.constant 0 : index
    %c0_27 = arith.constant 0 : index
    %38 = vector.load %arg9[%c0_26, %c0_27] : memref<128x448xf32, #tpu.memory_space<vmem>>, vector<128x448xf32>
    %c0_28 = arith.constant 0 : index
    %c0_29 = arith.constant 0 : index
    %39 = vector.load %arg7[%c0_28, %c0_29] : memref<448x128xf32, #tpu.memory_space<vmem>>, vector<448x128xf32>
    %cst_30 = arith.constant dense<0.000000e+00> : vector<128x128xf32>
    %40 = tpu.matmul %38, %39, %cst_30 {dimension_numbers = #tpu.dot_dimension_numbers<[1], [0], [0], [1], [0, 0, 1, 1], [], []>} : vector<128x448xf32>, vector<448x128xf32>, vector<128x128xf32> -> vector<128x128xf32>
    %41 = tpu.iota {dimensions = array<i32: 1>} : vector<128x128xi32>
    %c8_i32 = arith.constant 8 : i32
    %42 = vector.broadcast %c8_i32 : i32 to vector<128x128xi32>
    %43 = arith.cmpi slt, %41, %42 : vector<128x128xi32>
    %cst_31 = arith.constant -1.000000e+30 : f32
    %44 = vector.broadcast %cst_31 : f32 to vector<128x128xf32>
    %45 = arith.select %43, %40, %44 : vector<128x128xi1>, vector<128x128xf32>
    %cst_32 = arith.constant dense<0xFF800000> : vector<128xf32>
    %46 = vector.multi_reduction <maximumf>, %45, %cst_32 [1] : vector<128x128xf32> to vector<128xf32>
    %47 = vector.shape_cast %46 : vector<128xf32> to vector<128x1xf32>
    %48 = vector.broadcast %47 : vector<128x1xf32> to vector<128x128xf32>
    %49 = arith.subf %45, %48 : vector<128x128xf32>
    %50 = math.exp %49 : vector<128x128xf32>
    %cst_33 = arith.constant dense<0.000000e+00> : vector<128xf32>
    %51 = vector.multi_reduction <add>, %50, %cst_33 [1] : vector<128x128xf32> to vector<128xf32>
    %52 = vector.shape_cast %51 : vector<128xf32> to vector<128x1xf32>
    %53 = math.log %52 : vector<128x1xf32>
    %54 = arith.addf %53, %47 : vector<128x1xf32>
    %55 = vector.broadcast %54 : vector<128x1xf32> to vector<128x128xf32>
    %56 = arith.subf %45, %55 : vector<128x128xf32>
    %c0_34 = arith.constant 0 : index
    %c0_35 = arith.constant 0 : index
    %57 = vector.load %arg8[%c0_34, %c0_35] : memref<128x128xf32, #tpu.memory_space<vmem>>, vector<128x128xf32>
    tpu.vector_store %arg8[%c0_34, %c0_35], %56 {strides = array<i32>} : memref<128x128xf32, #tpu.memory_space<vmem>>, vector<128x128xf32>,
    return
  }
  func.func @transform_0(%arg0: i32) -> (i32, i32) {
    %c0_i32 = arith.constant 0 : i32
    %c0_i32_0 = arith.constant 0 : i32
    %c0_i32_1 = arith.constant 0 : i32
    return %c0_i32, %c0_i32_0 : i32, i32
  }
  func.func @transform_1(%arg0: i32) -> (i32, i32) {
    %c0_i32 = arith.constant 0 : i32
    %c0_i32_0 = arith.constant 0 : i32
    %c0_i32_1 = arith.constant 0 : i32
    return %c0_i32, %c0_i32_0 : i32, i32
  }
  func.func @transform_2(%arg0: i32) -> (i32, i32) {
    %c0_i32 = arith.constant 0 : i32
    %c0_i32_0 = arith.constant 0 : i32
    %c0_i32_1 = arith.constant 0 : i32
    return %c0_i32, %c0_i32_0 : i32, i32
  }
  func.func @transform_3(%arg0: i32) -> (i32, i32) {
    %c0_i32 = arith.constant 0 : i32
    %c0_i32_0 = arith.constant 0 : i32
    %c0_i32_1 = arith.constant 0 : i32
    return %c0_i32, %c0_i32_0 : i32, i32
  }
  func.func @transform_4(%arg0: i32) -> (i32, i32) {
    %c0_i32 = arith.constant 0 : i32
    %c0_i32_0 = arith.constant 0 : i32
    %c0_i32_1 = arith.constant 0 : i32
    return %c0_i32, %c0_i32_0 : i32, i32
  }
  func.func @transform_5(%arg0: i32) -> (i32, i32) {
    %c0_i32 = arith.constant 0 : i32
    %c0_i32_0 = arith.constant 0 : i32
    %c0_i32_1 = arith.constant 0 : i32
    return %c0_i32, %c0_i32_0 : i32, i32
  }
  func.func @transform_6(%arg0: i32) -> (i32, i32) {
    %c0_i32 = arith.constant 0 : i32
    %c0_i32_0 = arith.constant 0 : i32
    %c0_i32_1 = arith.constant 0 : i32
    return %c0_i32, %c0_i32_0 : i32, i32
  }
  func.func @transform_7(%arg0: i32) -> (i32, i32) {
    %c0_i32 = arith.constant 0 : i32
    %c0_i32_0 = arith.constant 0 : i32
    %c0_i32_1 = arith.constant 0 : i32
    return %c0_i32, %c0_i32_0 : i32, i32
  }
}

</mosaic_0001>

<bundles_post_ra>
// kernel: tpu_custom_call.1
= control target key start
LH: loop header
LB: loop body
LE: loop exit
PB: predicated region body
PF: predicated region fallthrough
CT: control target
= control target key end

     0   :  { %12 = vsyncpa [#allocation4], 0  ;;  %s4706_s0 = inlined_call_operand.vmem [shape: f32[128,16], index: 0, kind: input, shape index: {}]   ;;  %s4707_s1 = inlined_call_operand.vmem [shape: f32[16,64], index: 1, kind: input, shape index: {}]   ;;  %s4708_s2 = inlined_call_operand.vmem [shape: s8[128,128], index: 2, kind: input, shape index: {}]   ;;  %s4709_s3 = inlined_call_operand.vmem [shape: s8[128,128], index: 3, kind: input, shape index: {}]   ;;  %s4710_s4 = inlined_call_operand.vmem [shape: f32[128,1], index: 4, kind: input, shape index: {}]   ;;  %s4711_s5 = inlined_call_operand.vmem [shape: f32[128,1], index: 5, kind: input, shape index: {}]   ;;  %s4712_s6 = inlined_call_operand.hbm [shape: f32[448,128], index: 6, kind: input, shape index: {}]   ;;  %s4713_s7 = inlined_call_operand.hbm [shape: f32[128,128], index: 7, kind: output, shape index: {}]  }
   0x1   :  { %13 = vsyncpa [#allocation5], 0  ;;  %s3584_s24 = smov [#allocation3]   ;;  %s3536_s28 = scalar_lea.hbm %s4712_s6, 7168 }
   0x2   :  { %s31_s25 = sshll.u32 %s3584_s24, 4  ;;  %p3537_p0 = scmp.ne.s32.totalorder %s4712_s6, %s3536_s28  ;;  %s32_s25 = int_to_ptr.vmem [resolvable:$true] %s31_s25 }
   0x3   :  { %p3540_p1 = scmp.lt.u32.totalorder %s3536_s28, %s4712_s6 }
   0x5   :  { %p3542_p2 = pnand %p3540_p1, %p3537_p0 }
   0x7   :  { %3545 = shalt.err (!%p3542_p2)
}
   0x8   :  { %s3546_s10 = scalar_lea.vmem %s32_s25, 7168  ;;  %p3551_p4 = scmp.lt.s32.totalorder %s32_s25, %s32_s25 }
   0x9   :  { %p3547_p3 = scmp.ne.s32.totalorder %s32_s25, %s3546_s10  ;;  %p3552_p5 = scmp.lt.s32.totalorder %s3546_s10, %s3546_s10 }
   0xb   :  { %p3553_p6 = por %p3552_p5, %p3551_p4 }
   0xd   :  { %p3554_p7 = pnand %p3553_p6, %p3547_p3 }
   0xf   :  { %3557 = shalt.err (!%p3554_p7)
}
  0x10   :  { %s3585_s11 = smov 128   ;;  %s3586_s12 = smov 8  }
  0x11   :  { %37 = dma.hbm_to_vmem [thread:$0]  %s4712_s6, 7168, %s32_s25, [#allocation4], %s3585_s11, %s3585_s11, %s3586_s12  }
  0x12   :  { %3580 = dma.done.wait [#allocation4], 7168  }
  0x13   :  { %3581 = vsyncadd [#allocation4], 4294960128  ;;  %v3587_v0 = vmov 0   ;;  %vm59_vm0 = vcmask 130048   ;;  %v57_v1 = vld [vmem:[%s4707_s1] sm:$0xff]  ;;  %v58_v2 = vld [vmem:[%s4707_s1 + $0x8] sm:$0xff] }
  0x14   :  { %3310 = vset.pattern.permute.xlu0 %v3587_v0  ;;  %3311 = vset.pattern.permute.xlu1 %v3587_v0  ;;  %v41_v3 = vld [vmem:[%s4706_s0] sm:$0xff]  ;;  %v3079_v4 = vpack.c.bf16 %v58_v2, %v57_v1  ;;  %v42_v5 = vld [vmem:[%s4706_s0 + $0x8] sm:$0xff]  ;;  %v43_v6 = vld [vmem:[%s4706_s0 + $0x10] sm:$0xff]  ;;  %vm269_vm1 = vcmask 523264   ;;  %vm984_vm2 = vcmask 1048064  }
  0x15   :  { %2831 = vmatprep.mubr.msk.f32.mxu0 %vm59_vm0, %v41_v3  ;;  %v358_v7 = vld [vmem:[%s4710_s4] sm:$0xff]  ;;  %v360_v8 = vld [vmem:[%s4710_s4 + $0x10] sm:$0xff]  ;;  %v44_v9 = vld [vmem:[%s4706_s0 + $0x18] sm:$0xff] }
  0x16   :  { %3080 = vmatprep.subr.bf16.mxu0 %v3079_v4  ;;  %408 = vperm.xlu0 %3310, %v358_v7   ;;  %v359_v10 = vld [vmem:[%s4710_s4 + $0x8] sm:$0xff]  ;;  %v45_v11 = vld [vmem:[%s4706_s0 + $0x20] sm:$0xff]  ;;  %v361_v12 = vld [vmem:[%s4710_s4 + $0x18] sm:$0xff] }
  0x17   :  { %3082 = vmatpush3.bf16.msra.mxu0 %v3079_v4  ;;  %418 = vperm.xlu1 %3311, %v360_v8   ;;  %v46_v13 = vld [vmem:[%s4706_s0 + $0x28] sm:$0xff]  ;;  %v362_v14 = vld [vmem:[%s4710_s4 + $0x20] sm:$0xff]  ;;  %v47_v15 = vld [vmem:[%s4706_s0 + $0x30] sm:$0xff] }
  0x18   :  { %v363_v16 = vld [vmem:[%s4710_s4 + $0x28] sm:$0xff]  ;;  %v48_v17 = vld [vmem:[%s4706_s0 + $0x38] sm:$0xff]  ;;  %v364_v18 = vld [vmem:[%s4710_s4 + $0x30] sm:$0xff] }
  0x19   :  { %v49_v19 = vld [vmem:[%s4706_s0 + $0x40] sm:$0xff]  ;;  %v365_v20 = vld [vmem:[%s4710_s4 + $0x38] sm:$0xff]  ;;  %v50_v21 = vld [vmem:[%s4706_s0 + $0x48] sm:$0xff] }
  0x1a   :  { %2832 = vmatmul.mubr.msk.f32.vlgmr.msra.gmra.mrb[0].mxu0 %vm59_vm0, %v42_v5  ;;  %413 = vperm.xlu0 %3310, %v359_v10   ;;  %v366_v22 = vld [vmem:[%s4710_s4 + $0x40] sm:$0xff]  ;;  %v51_v23 = vld [vmem:[%s4706_s0 + $0x50] sm:$0xff]  ;;  %v367_v24 = vld [vmem:[%s4710_s4 + $0x48] sm:$0xff] }
  0x1b   :  { %2834 = vmatprep.mubr.msk.f32.mxu0 %vm59_vm0, %v43_v6  ;;  %423 = vperm.xlu1 %3311, %v361_v12   ;;  %v52_v25 = vld [vmem:[%s4706_s0 + $0x58] sm:$0xff]  ;;  %v368_v26 = vld [vmem:[%s4710_s4 + $0x50] sm:$0xff]  ;;  %v53_v27 = vld [vmem:[%s4706_s0 + $0x60] sm:$0xff] }
  0x1c   :  { %v369_v28 = vld [vmem:[%s4710_s4 + $0x58] sm:$0xff]  ;;  %v54_v29 = vld [vmem:[%s4706_s0 + $0x68] sm:$0xff]  ;;  %v370_v30 = vld [vmem:[%s4710_s4 + $0x60] sm:$0xff] }
  0x1d   :  { %v55_v31 = vld [vmem:[%s4706_s0 + $0x70] sm:$0xff]  ;;  %v371_v32 = vld [vmem:[%s4710_s4 + $0x68] sm:$0xff]  ;;  %v56_v33 = vld [vmem:[%s4706_s0 + $0x78] sm:$0xff] }
  0x1e   :  { %2835 = vmatmul.mubr.msk.f32.gmra.mrb[2].mxu0 %vm59_vm0, %v44_v9  ;;  %428 = vperm.xlu0 %3310, %v362_v14   ;;  %v372_v34 = vld [vmem:[%s4710_s4 + $0x70] sm:$0xff]  ;;  %v373_v35 = vld [vmem:[%s4710_s4 + $0x78] sm:$0xff]  ;;  %v374_v36 = vld [vmem:[%s4711_s5] sm:$0xff] }
  0x1f   :  { %2837 = vmatprep.mubr.msk.f32.mxu0 %vm59_vm0, %v45_v11  ;;  %433 = vperm.xlu1 %3311, %v363_v16   ;;  %v375_v37 = vld [vmem:[%s4711_s5 + $0x8] sm:$0xff]  ;;  %v376_v38 = vld [vmem:[%s4711_s5 + $0x10] sm:$0xff]  ;;  %v377_v39 = vld [vmem:[%s4711_s5 + $0x18] sm:$0xff] }
  0x20   :  { %v378_v40 = vld [vmem:[%s4711_s5 + $0x20] sm:$0xff]  ;;  %v379_v41 = vld [vmem:[%s4711_s5 + $0x28] sm:$0xff]  ;;  %v380_v42 = vld [vmem:[%s4711_s5 + $0x30] sm:$0xff] }
  0x21   :  { %v381_v43 = vld [vmem:[%s4711_s5 + $0x38] sm:$0xff]  ;;  %v382_v44 = vld [vmem:[%s4711_s5 + $0x40] sm:$0xff]  ;;  %v383_v45 = vld [vmem:[%s4711_s5 + $0x48] sm:$0xff] }
  0x22   :  { %2838 = vmatmul.mubr.msk.f32.gmra.mrb[4].mxu0 %vm59_vm0, %v46_v13  ;;  %438 = vperm.xlu0 %3310, %v364_v18   ;;  %v384_v46 = vld [vmem:[%s4711_s5 + $0x50] sm:$0xff]  ;;  %v385_v47 = vld [vmem:[%s4711_s5 + $0x58] sm:$0xff]  ;;  %v386_v48 = vld [vmem:[%s4711_s5 + $0x60] sm:$0xff] }
  0x23   :  { %2840 = vmatprep.mubr.msk.f32.mxu0 %vm59_vm0, %v47_v15  ;;  %443 = vperm.xlu1 %3311, %v365_v20   ;;  %v387_v49 = vld [vmem:[%s4711_s5 + $0x68] sm:$0xff]  ;;  %v388_v50 = vld [vmem:[%s4711_s5 + $0x70] sm:$0xff]  ;;  %v389_v51 = vld [vmem:[%s4711_s5 + $0x78] sm:$0xff] }
  0x24   :  { %v3815_v52 = vld [vmem:[%s4708_s2] sm:$0xff] }
  0x25   :  { %v3820_v53 = vld [vmem:[%s4709_s3] sm:$0xff]  ;;  %v290_v54 = vunpack.c.0.s8 %v3815_v52 }
  0x26   :  { %2841 = vmatmul.mubr.msk.f32.gmra.mrb[6].mxu0 %vm59_vm0, %v48_v17  ;;  %448 = vperm.xlu0 %3310, %v366_v22   ;;  %v326_v55 = vunpack.c.0.s8 %v3820_v53 }
  0x27   :  { %2843 = vmatprep.mubr.msk.f32.mxu0 %vm59_vm0, %v49_v19  ;;  %453 = vperm.xlu1 %3311, %v367_v24   ;;  %v3824_v56 = vcvt.s32.f32 %v290_v54 }
  0x28   :  { %v3826_v57 = vcvt.s32.f32 %v326_v55 }
  0x29   :  { %2887 = vmatprep.mubr.f32.mxu1 %v3824_v56 }
  0x2a   :  { %2844 = vmatmul.mubr.msk.f32.gmra.mrb[8].mxu0 %vm59_vm0, %v50_v21  ;;  %458 = vperm.xlu0 %3310, %v368_v26  }
  0x2b   :  { %2846 = vmatprep.mubr.msk.f32.mxu0 %vm59_vm0, %v51_v23  ;;  %463 = vperm.xlu1 %3311, %v369_v28  }
  0x2e   :  { %2847 = vmatmul.mubr.msk.f32.gmra.mrb[10].mxu0 %vm59_vm0, %v52_v25  ;;  %468 = vperm.xlu0 %3310, %v370_v30  }
  0x2f   :  { %2849 = vmatprep.mubr.msk.f32.mxu0 %vm59_vm0, %v53_v27  ;;  %473 = vperm.xlu1 %3311, %v371_v32  }
  0x32   :  { %2850 = vmatmul.mubr.msk.f32.gmra.mrb[12].mxu0 %vm59_vm0, %v54_v29  ;;  %478 = vperm.xlu0 %3310, %v372_v34  }
  0x33   :  { %2852 = vmatprep.mubr.msk.f32.mxu0 %vm59_vm0, %v55_v31  ;;  %483 = vperm.xlu1 %3311, %v373_v35  }
  0x36   :  { %2853 = vmatmul.mubr.msk.f32.gmra.mrb[14].mxu0 %vm59_vm0, %v56_v33  ;;  %665 = vperm.xlu0 %3310, %v374_v36  }
  0x37   :  { %670 = vperm.xlu1 %3311, %v375_v37   ;;  %2943 = vmatprep.mubr.f32.mxu0 %v3826_v57 }
  0x3a   :  { %675 = vperm.xlu0 %3310, %v376_v38  }
  0x3b   :  { %680 = vperm.xlu1 %3311, %v377_v39  }
  0x3e   :  { %685 = vperm.xlu0 %3310, %v378_v40  }
  0x3f   :  { %690 = vperm.xlu1 %3311, %v379_v41  }
  0x42   :  { %695 = vperm.xlu0 %3310, %v380_v42  }
  0x43   :  { %700 = vperm.xlu1 %3311, %v381_v43  }
  0x46   :  { %705 = vperm.xlu0 %3310, %v382_v44  }
  0x47   :  { %710 = vperm.xlu1 %3311, %v383_v45  }
  0x4a   :  { %715 = vperm.xlu0 %3310, %v384_v46  }
  0x4b   :  { %720 = vperm.xlu1 %3311, %v385_v47  }
  0x4e   :  { %725 = vperm.xlu0 %3310, %v386_v48  }
  0x4f   :  { %730 = vperm.xlu1 %3311, %v387_v49  }
  0x52   :  { %735 = vperm.xlu0 %3310, %v388_v50  }
  0x53   :  { %740 = vperm.xlu1 %3311, %v389_v51  }
  0x95   :  { %v3832_v59 = vpop.permute.xlu0 %408 }
  0x96   :  { %v3830_v58 = vpop.permute.xlu1 %418  ;;  %4742 = vst [vmem:[#allocation9_spill] sm:$0xff] %v3832_v59 }
  0x99   :  { %v3836_v61 = vpop.permute.xlu0 %413 }
  0x9a   :  { %v3834_v60 = vpop.permute.xlu1 %423  ;;  %4743 = vst [vmem:[#allocation10_spill] sm:$0xff] %v3836_v61 }
  0x9d   :  { %v3840_v63 = vpop.permute.xlu0 %428 }
  0x9e   :  { %v3838_v62 = vpop.permute.xlu1 %433 }
  0xa1   :  { %v3844_v1 = vpop.permute.xlu0 %438 }
  0xa2   :  { %v3842_v0 = vpop.permute.xlu1 %443 }
  0xa5   :  { %v3848_v3 = vpop.permute.xlu0 %448 }
  0xa6   :  { %v3846_v2 = vpop.permute.xlu1 %453 }
  0xa7   :  { %4744 = vst [vmem:[#allocation11_spill] sm:$0xff] %v3846_v2 }
  0xa9   :  { %v3852_v5 = vpop.permute.xlu0 %458 }
  0xaa   :  { %v3850_v4 = vpop.permute.xlu1 %463  ;;  %4746 = vst [vmem:[#allocation13_spill] sm:$0xff] %v3852_v5 }
  0xab   :  { %4745 = vst [vmem:[#allocation12_spill] sm:$0xff] %v3850_v4 }
  0xad   :  { %v3856_v7 = vpop.permute.xlu0 %468 }
  0xae   :  { %v3854_v6 = vpop.permute.xlu1 %473  ;;  %4748 = vst [vmem:[#allocation15_spill] sm:$0xff] %v3856_v7 }
  0xaf   :  { %4747 = vst [vmem:[#allocation14_spill] sm:$0xff] %v3854_v6 }
  0xb1   :  { %v3860_v9 = vpop.permute.xlu0 %478 }
  0xb2   :  { %v3858_v8 = vpop.permute.xlu1 %483 }
  0xb3   :  { %4749 = vst [vmem:[#allocation16_spill] sm:$0xff] %v3858_v8 }
  0xb5   :  { %v3864_v11 = vpop.permute.xlu0 %665 }
  0xb6   :  { %v3862_v10 = vpop.permute.xlu1 %670 }
  0xb9   :  { %v3868_v17 = vpop.permute.xlu0 %675 }
  0xba   :  { %v3866_v15 = vpop.permute.xlu1 %680  ;;  %4751 = vst [vmem:[#allocation18_spill] sm:$0xff] %v3868_v17 }
  0xbb   :  { %4750 = vst [vmem:[#allocation17_spill] sm:$0xff] %v3866_v15 }
  0xbd   :  { %v3876_v24 = vpop.permute.xlu0 %685 }
  0xbe   :  { %v3873_v22 = vpop.permute.xlu1 %690  ;;  %4753 = vst [vmem:[#allocation20_spill] sm:$0xff] %v3876_v24 }
  0xbf   :  { %4752 = vst [vmem:[#allocation19_spill] sm:$0xff] %v3873_v22 }
  0xc1   :  { %v3886_v42 = vpop.permute.xlu0 %695 }
  0xc2   :  { %v3884_v37 = vpop.permute.xlu1 %700  ;;  %4755 = vst [vmem:[#allocation22_spill] sm:$0xff] %v3886_v42 }
  0xc3   :  { %4754 = vst [vmem:[#allocation21_spill] sm:$0xff] %v3884_v37 }
  0xed   :  { %v2833_v12 = vpop.f32.mrb[0].mxu0 }
  0xee   :  { %v254_v13 = vmax.f32 %v2833_v12, 0.0  ;;  %v174_v14 = vpop.f32.mrb[1].mxu0 }
  0xef   :  { %v253_v16 = vmax.f32 %v174_v14, 0.0 }
  0xf0   :  { %271 = vst.msk [vmem:[#allocation2 + $0x20] sm:$0xff] %vm269_vm1, %v254_v13 }
  0xf1   :  { %270 = vst.msk [vmem:[#allocation2] sm:$0xff] %vm269_vm1, %v253_v16  ;;  %v2836_v18 = vpop.f32.mrb[2].mxu0 }
  0xf2   :  { %v256_v19 = vmax.f32 %v2836_v18, 0.0  ;;  %v184_v20 = vpop.f32.mrb[3].mxu0  ;;  %v3897_v18 = vpop.permute.xlu1 %710 }
  0xf3   :  { %v255_v21 = vmax.f32 %v184_v20, 0.0 }
  0xf4   :  { %273 = vst.msk [vmem:[#allocation2 + $0x60] sm:$0xff] %vm269_vm1, %v256_v19 }
  0xf5   :  { %272 = vst.msk [vmem:[#allocation2 + $0x40] sm:$0xff] %vm269_vm1, %v255_v21  ;;  %v2839_v23 = vpop.f32.mrb[4].mxu0 }
  0xf6   :  { %v258_v25 = vmax.f32 %v2839_v23, 0.0  ;;  %v194_v26 = vpop.f32.mrb[5].mxu0  ;;  %v3902_v23 = vpop.permute.xlu0 %705 }
  0xf7   :  { %v257_v27 = vmax.f32 %v194_v26, 0.0  ;;  %v391_v28 = vld [vmem:[#allocation2 + $0x20] sm:$0xff] }
  0xf8   :  { %275 = vst.msk [vmem:[#allocation2 + $0xa0] sm:$0xff] %vm269_vm1, %v258_v25  ;;  %v390_v29 = vld [vmem:[#allocation2] sm:$0xff]  ;;  %v487_v30 = vmul.f32 %v3836_v61, %v391_v28  ;;  %v744_v31 = vmul.f32 %v3862_v10, %v391_v28 }
  0xf9   :  { %274 = vst.msk [vmem:[#allocation2 + $0x80] sm:$0xff] %vm269_vm1, %v257_v27  ;;  %v2842_v32 = vpop.f32.mrb[6].mxu0  ;;  %v486_v33 = vmul.f32 %v3832_v59, %v390_v29  ;;  %v743_v34 = vmul.f32 %v3864_v11, %v390_v29 }
  0xfa   :  { %v260_v35 = vmax.f32 %v2842_v32, 0.0  ;;  %v204_v36 = vpop.f32.mrb[7].mxu0 }
  0xfb   :  { %v259_v38 = vmax.f32 %v204_v36, 0.0  ;;  %v3083_v39 = vpack.c.bf16 %v487_v30, %v486_v33  ;;  %v3115_v40 = vpack.c.bf16 %v744_v31, %v743_v34  ;;  %v393_v41 = vld [vmem:[#allocation2 + $0x60] sm:$0xff] }
  0xfc   :  { %277 = vst.msk [vmem:[#allocation2 + $0xe0] sm:$0xff] %vm269_vm1, %v260_v35  ;;  %v392_v43 = vld [vmem:[#allocation2 + $0x40] sm:$0xff]  ;;  %v489_v44 = vmul.f32 %v3834_v60, %v393_v41  ;;  %v746_v45 = vmul.f32 %v3866_v15, %v393_v41 }
  0xfd   :  { %276 = vst.msk [vmem:[#allocation2 + $0xc0] sm:$0xff] %vm269_vm1, %v259_v38  ;;  %v2845_v46 = vpop.f32.mrb[8].mxu0  ;;  %3084 = vmatprep.subr.bf16.mxu1 %v3083_v39  ;;  %3116 = vmatprep.subr.bf16.mxu0 %v3115_v40  ;;  %v488_v47 = vmul.f32 %v3830_v58, %v392_v43  ;;  %v745_v48 = vmul.f32 %v3868_v17, %v392_v43 }
  0xfe   :  { %v262_v49 = vmax.f32 %v2845_v46, 0.0  ;;  %v214_v50 = vpop.f32.mrb[9].mxu0  ;;  %3086 = vmatpush3.bf16.msra.mxu1 %v3083_v39  ;;  %3118 = vmatpush3.bf16.msra.mxu0 %v3115_v40  ;;  %v3910_v40 = vpop.permute.xlu1 %720 }
  0xff   :  { %v261_v51 = vmax.f32 %v214_v50, 0.0  ;;  %v3087_v54 = vpack.c.bf16 %v489_v44, %v488_v47  ;;  %v3119_v55 = vpack.c.bf16 %v746_v45, %v745_v48  ;;  %v395_v12 = vld [vmem:[#allocation2 + $0xa0] sm:$0xff]  ;;  %v3912_v46 = vpop.permute.xlu0 %715 }
 0x100   :  { %279 = vst.msk [vmem:[#allocation2 + $0x120] sm:$0xff] %vm269_vm1, %v262_v49  ;;  %v394_v13 = vld [vmem:[#allocation2 + $0x80] sm:$0xff]  ;;  %v491_v14 = vmul.f32 %v3838_v62, %v395_v12  ;;  %v748_v16 = vmul.f32 %v3873_v22, %v395_v12 }
 0x101   :  { %278 = vst.msk [vmem:[#allocation2 + $0x100] sm:$0xff] %vm269_vm1, %v261_v51  ;;  %v2848_v19 = vpop.f32.mrb[10].mxu0  ;;  %3088 = vmatprep.subr.bf16.mxu1 %v3087_v54  ;;  %3120 = vmatprep.subr.bf16.mxu0 %v3119_v55  ;;  %v490_v20 = vmul.f32 %v3840_v63, %v394_v13  ;;  %v747_v21 = vmul.f32 %v3876_v24, %v394_v13 }
 0x102   :  { %v264_v25 = vmax.f32 %v2848_v19, 0.0  ;;  %v224_v26 = vpop.f32.mrb[11].mxu0  ;;  %3090 = vmatpush3.bf16.msra.mxu1 %v3087_v54  ;;  %3122 = vmatpush3.bf16.msra.mxu0 %v3119_v55 }
 0x103   :  { %v263_v27 = vmax.f32 %v224_v26, 0.0  ;;  %v3091_v28 = vpack.c.bf16 %v491_v14, %v490_v20  ;;  %v3123_v29 = vpack.c.bf16 %v748_v16, %v747_v21  ;;  %v397_v30 = vld [vmem:[#allocation2 + $0xe0] sm:$0xff]  ;;  %v3923_v26 = vpop.permute.xlu1 %730 }
 0x104   :  { %281 = vst.msk [vmem:[#allocation2 + $0x160] sm:$0xff] %vm269_vm1, %v264_v25  ;;  %v396_v31 = vld [vmem:[#allocation2 + $0xc0] sm:$0xff]  ;;  %v493_v32 = vmul.f32 %v3842_v0, %v397_v30  ;;  %v750_v33 = vmul.f32 %v3884_v37, %v397_v30 }
 0x105   :  { %280 = vst.msk [vmem:[#allocation2 + $0x140] sm:$0xff] %vm269_vm1, %v263_v27  ;;  %v2851_v34 = vpop.f32.mrb[12].mxu0  ;;  %3092 = vmatprep.subr.bf16.mxu1 %v3091_v28  ;;  %3124 = vmatprep.subr.bf16.mxu0 %v3123_v29  ;;  %v492_v35 = vmul.f32 %v3844_v1, %v396_v31  ;;  %v749_v36 = vmul.f32 %v3886_v42, %v396_v31 }
 0x106   :  { %v266_v38 = vmax.f32 %v2851_v34, 0.0  ;;  %v234_v39 = vpop.f32.mrb[13].mxu0  ;;  %3094 = vmatpush3.bf16.msra.mxu1 %v3091_v28  ;;  %3126 = vmatpush3.bf16.msra.mxu0 %v3123_v29  ;;  %v3928_v29 = vpop.permute.xlu0 %725 }
 0x107   :  { %v265_v41 = vmax.f32 %v234_v39, 0.0  ;;  %v3095_v43 = vpack.c.bf16 %v493_v32, %v492_v35  ;;  %v3127_v44 = vpack.c.bf16 %v750_v33, %v749_v36  ;;  %v399_v45 = vld [vmem:[#allocation2 + $0x120] sm:$0xff]  ;;  %v3934_v39 = vpop.permute.xlu1 %740 }
 0x108   :  { %283 = vst.msk [vmem:[#allocation2 + $0x1a0] sm:$0xff] %vm269_vm1, %v266_v38  ;;  %v398_v47 = vld [vmem:[#allocation2 + $0x100] sm:$0xff]  ;;  %v495_v48 = vmul.f32 %v3846_v2, %v399_v45  ;;  %v752_v49 = vmul.f32 %v3897_v18, %v399_v45 }
 0x109   :  { %282 = vst.msk [vmem:[#allocation2 + $0x180] sm:$0xff] %vm269_vm1, %v265_v41  ;;  %v2854_v50 = vpop.f32.mrb[14].mxu0  ;;  %3096 = vmatprep.subr.bf16.mxu1 %v3095_v43  ;;  %3128 = vmatprep.subr.bf16.mxu0 %v3127_v44  ;;  %v494_v51 = vmul.f32 %v3848_v3, %v398_v47  ;;  %v751_v54 = vmul.f32 %v3902_v23, %v398_v47 }
 0x10a   :  { %v268_v55 = vmax.f32 %v2854_v50, 0.0  ;;  %v244_v12 = vpop.f32.mrb[15].mxu0  ;;  %3098 = vmatpush3.bf16.msra.mxu1 %v3095_v43  ;;  %3130 = vmatpush3.bf16.msra.mxu0 %v3127_v44  ;;  %v3936_v45 = vpop.permute.xlu0 %735 }
 0x10b   :  { %v267_v13 = vmax.f32 %v244_v12, 0.0  ;;  %v3099_v14 = vpack.c.bf16 %v495_v48, %v494_v51  ;;  %v3131_v16 = vpack.c.bf16 %v752_v49, %v751_v54  ;;  %v401_v19 = vld [vmem:[#allocation2 + $0x160] sm:$0xff]  ;;  %v291_v54 = vunpack.c.1.s8 %v3815_v52 }
 0x10c   :  { %285 = vst.msk [vmem:[#allocation2 + $0x1e0] sm:$0xff] %vm269_vm1, %v268_v55  ;;  %v400_v20 = vld [vmem:[#allocation2 + $0x140] sm:$0xff]  ;;  %v497_v21 = vmul.f32 %v3850_v4, %v401_v19  ;;  %v754_v25 = vmul.f32 %v3910_v40, %v401_v19  ;;  %v327_v55 = vunpack.c.1.s8 %v3820_v53  ;;  %v292_v12 = vunpack.c.2.s8 %v3815_v52  ;;  %v287_v19 = vld [vmem:[%s4708_s2 + $0x8] sm:$0xff] }
 0x10d   :  { %284 = vst.msk [vmem:[#allocation2 + $0x1c0] sm:$0xff] %vm269_vm1, %v267_v13  ;;  %3100 = vmatprep.subr.bf16.mxu1 %v3099_v14  ;;  %3132 = vmatprep.subr.bf16.mxu0 %v3131_v16  ;;  %v496_v27 = vmul.f32 %v3852_v5, %v400_v20  ;;  %v753_v28 = vmul.f32 %v3912_v46, %v400_v20  ;;  %v328_v13 = vunpack.c.2.s8 %v3820_v53  ;;  %v323_v20 = vld [vmem:[%s4709_s3 + $0x8] sm:$0xff] }
 0x10e   :  { %3102 = vmatpush3.bf16.msra.mxu1 %v3099_v14  ;;  %3134 = vmatpush3.bf16.msra.mxu0 %v3131_v16 }
 0x10f   :  { %v3103_v30 = vpack.c.bf16 %v497_v21, %v496_v27  ;;  %v3135_v31 = vpack.c.bf16 %v754_v25, %v753_v28  ;;  %v403_v32 = vld [vmem:[#allocation2 + $0x1a0] sm:$0xff]  ;;  %v3952_v21 = vcvt.s32.f32 %v291_v54  ;;  %v3954_v25 = vcvt.s32.f32 %v327_v55 }
 0x110   :  { %v402_v33 = vld [vmem:[#allocation2 + $0x180] sm:$0xff]  ;;  %v499_v34 = vmul.f32 %v3854_v6, %v403_v32  ;;  %v756_v35 = vmul.f32 %v3923_v26, %v403_v32  ;;  %v293_v27 = vunpack.c.3.s8 %v3815_v52  ;;  %v329_v28 = vunpack.c.3.s8 %v3820_v53 }
 0x111   :  { %3104 = vmatprep.subr.bf16.mxu1 %v3103_v30  ;;  %3136 = vmatprep.subr.bf16.mxu0 %v3135_v31  ;;  %v498_v36 = vmul.f32 %v3856_v7, %v402_v33  ;;  %v755_v38 = vmul.f32 %v3928_v29, %v402_v33  ;;  %v294_v32 = vunpack.c.0.s8 %v287_v19  ;;  %v330_v33 = vunpack.c.0.s8 %v323_v20 }
 0x112   :  { %3106 = vmatpush3.bf16.msra.mxu1 %v3103_v30  ;;  %3138 = vmatpush3.bf16.msra.mxu0 %v3135_v31  ;;  %v3958_v30 = vcvt.s32.f32 %v292_v12  ;;  %v3960_v31 = vcvt.s32.f32 %v328_v13  ;;  %v331_v52 = vunpack.c.1.s8 %v323_v20 }
 0x113   :  { %v3107_v41 = vpack.c.bf16 %v499_v34, %v498_v36  ;;  %v3139_v43 = vpack.c.bf16 %v756_v35, %v755_v38  ;;  %v405_v44 = vld [vmem:[#allocation2 + $0x1e0] sm:$0xff]  ;;  %v3964_v34 = vcvt.s32.f32 %v293_v27  ;;  %v3966_v35 = vcvt.s32.f32 %v329_v28 }
 0x114   :  { %v404_v47 = vld [vmem:[#allocation2 + $0x1c0] sm:$0xff]  ;;  %v501_v48 = vmul.f32 %v3858_v8, %v405_v44  ;;  %v758_v49 = vmul.f32 %v3934_v39, %v405_v44  ;;  %v295_v36 = vunpack.c.1.s8 %v287_v19  ;;  %v3970_v53 = vcvt.s32.f32 %v294_v32  ;;  %v288_v44 = vld [vmem:[%s4708_s2 + $0x10] sm:$0xff] }
 0x115   :  { %3108 = vmatprep.subr.bf16.mxu1 %v3107_v41  ;;  %3140 = vmatprep.subr.bf16.mxu0 %v3139_v43  ;;  %v500_v50 = vmul.f32 %v3860_v9, %v404_v47  ;;  %v757_v51 = vmul.f32 %v3936_v45, %v404_v47  ;;  %v3972_v38 = vcvt.s32.f32 %v330_v33  ;;  %v324_v47 = vld [vmem:[%s4709_s3 + $0x10] sm:$0xff]  ;;  %v298_v12 = vunpack.c.0.s8 %v288_v44 }
 0x116   :  { %3110 = vmatpush3.bf16.msra.mxu1 %v3107_v41  ;;  %3142 = vmatpush3.bf16.msra.mxu0 %v3139_v43  ;;  %v296_v41 = vunpack.c.2.s8 %v287_v19  ;;  %v332_v43 = vunpack.c.2.s8 %v323_v20  ;;  %v334_v13 = vunpack.c.0.s8 %v324_v47  ;;  %v300_v32 = vunpack.c.2.s8 %v288_v44 }
 0x117   :  { %v3111_v14 = vpack.c.bf16 %v501_v48, %v500_v50  ;;  %v3143_v16 = vpack.c.bf16 %v758_v49, %v757_v51  ;;  %4756 = vst [vmem:[#allocation23_spill] sm:$0xff] %v3972_v38  ;;  %v3982_v48 = vcvt.s32.f32 %v295_v36  ;;  %v3984_v49 = vcvt.s32.f32 %v331_v52  ;;  %v289_v36 = vld [vmem:[%s4708_s2 + $0x18] sm:$0xff]  ;;  %s3588_s2 = smov 64  }
 0x118   :  { %v297_v50 = vunpack.c.3.s8 %v287_v19  ;;  %v333_v51 = vunpack.c.3.s8 %v323_v20  ;;  %v3988_v54 = vcvt.s32.f32 %v296_v41  ;;  %v3990_v55 = vcvt.s32.f32 %v332_v43  ;;  %v325_v52 = vld [vmem:[%s4709_s3 + $0x18] sm:$0xff]  ;;  %s3590_s3 = smov [#allocation6]  }
 0x119   :  { %3112 = vmatprep.subr.bf16.mxu1 %v3111_v14  ;;  %3144 = vmatprep.subr.bf16.mxu0 %v3143_v16  ;;  %4757 = vst [vmem:[#allocation24_spill] sm:$0xff] %v3984_v49  ;;  %v299_v19 = vunpack.c.1.s8 %v288_v44  ;;  %v335_v20 = vunpack.c.1.s8 %v324_v47  ;;  %v4000_v27 = vcvt.s32.f32 %v298_v12  ;;  %v4002_v28 = vcvt.s32.f32 %v334_v13  ;;  %s2557_s9 = sshll.u32 %s3590_s3, 4  ;;  %s2558_s9 = int_to_ptr.vmem [resolvable:$true] %s2557_s9 }
 0x11a   :  { %3114 = vmatpush3.bf16.msra.mxu1 %v3111_v14  ;;  %3146 = vmatpush3.bf16.msra.mxu0 %v3143_v16  ;;  %4758 = vst [vmem:[#allocation25_spill] sm:$0xff] %v3990_v55  ;;  %v3994_v14 = vcvt.s32.f32 %v297_v50  ;;  %v3996_v16 = vcvt.s32.f32 %v333_v51  ;;  %v336_v33 = vunpack.c.2.s8 %v324_v47  ;;  %v301_v50 = vunpack.c.3.s8 %v288_v44  ;;  %s3558_s10 = scalar_lea.vmem %s2558_s9, 2048  ;;  %p3563_p9 = scmp.lt.s32.totalorder %s2558_s9, %s2558_s9 }
 0x11b   :  { %4760 = vst [vmem:[#allocation27_spill] sm:$0xff] %v4002_v28  ;;  %v4012_v41 = vcvt.s32.f32 %v299_v19  ;;  %v4014_v43 = vcvt.s32.f32 %v335_v20  ;;  %v337_v51 = vunpack.c.3.s8 %v324_v47  ;;  %v4018_v12 = vcvt.s32.f32 %v300_v32  ;;  %p3559_p8 = scmp.ne.s32.totalorder %s2558_s9, %s3558_s10  ;;  %p3564_p10 = scmp.lt.s32.totalorder %s3558_s10, %s3558_s10 }
 0x11c   :  { %4759 = vst [vmem:[#allocation26_spill] sm:$0xff] %v3996_v16  ;;  %v4020_v13 = vcvt.s32.f32 %v336_v33  ;;  %v4024_v19 = vcvt.s32.f32 %v301_v50  ;;  %v303_v44 = vunpack.c.1.s8 %v289_v36  ;;  %v339_v47 = vunpack.c.1.s8 %v325_v52 }
 0x11d   :  { %2888 = vmatmul.mubr.f32.vlgmr.msra.gmra.mrb[0].mxu1 %v3952_v21  ;;  %2944 = vmatmul.mubr.f32.vlgmr.msra.gmra.mrb[16].mxu0 %v3954_v25  ;;  %4761 = vst [vmem:[#allocation28_spill] sm:$0xff] %v4014_v43  ;;  %v4026_v20 = vcvt.s32.f32 %v337_v51  ;;  %p3565_p11 = por %p3564_p10, %p3563_p9 }
 0x11e   :  { %2890 = vmatprep.mubr.f32.mxu1 %v3958_v30  ;;  %2946 = vmatprep.mubr.f32.mxu0 %v3960_v31  ;;  %4762 = vst [vmem:[#allocation29_spill] sm:$0xff] %v4020_v13  ;;  %v4036_v50 = vcvt.s32.f32 %v303_v44  ;;  %v4038_v51 = vcvt.s32.f32 %v339_v47 }
 0x11f   :  { %4763 = vst [vmem:[#allocation30_spill] sm:$0xff] %v4026_v20  ;;  %p3566_p12 = pnand %p3565_p11, %p3559_p8 }
 0x120   :  { %4765 = vst [vmem:[#allocation32_spill] sm:$0xff] %v4038_v51 }
 0x121   :  { %2891 = vmatmul.mubr.f32.gmra.mrb[2].mxu1 %v3964_v34  ;;  %2947 = vmatmul.mubr.f32.gmra.mrb[18].mxu0 %v3966_v35 }
 0x122   :  { %2893 = vmatprep.mubr.f32.mxu1 %v3970_v53  ;;  %2949 = vmatprep.mubr.f32.mxu0 %v3972_v38  ;;  %v341_v38 = vunpack.c.3.s8 %v325_v52 }
 0x124   :  { %v4050_v44 = vcvt.s32.f32 %v341_v38 }
 0x125   :  { %2894 = vmatmul.mubr.f32.gmra.mrb[4].mxu1 %v3982_v48  ;;  %2950 = vmatmul.mubr.f32.gmra.mrb[20].mxu0 %v3984_v49  ;;  %v338_v49 = vunpack.c.0.s8 %v325_v52 }
 0x126   :  { %2896 = vmatprep.mubr.f32.mxu1 %v3988_v54  ;;  %2952 = vmatprep.mubr.f32.mxu0 %v3990_v55  ;;  %v302_v55 = vunpack.c.0.s8 %v289_v36  ;;  %4769 = vst [vmem:[#allocation36_spill] sm:$0xff] %v4050_v44 }
 0x127   :  { %v4032_v33 = vcvt.s32.f32 %v338_v49 }
 0x128   :  { %v4030_v32 = vcvt.s32.f32 %v302_v55 }
 0x129   :  { %2897 = vmatmul.mubr.f32.gmra.mrb[6].mxu1 %v3994_v14  ;;  %2953 = vmatmul.mubr.f32.gmra.mrb[22].mxu0 %v3996_v16  ;;  %4764 = vst [vmem:[#allocation31_spill] sm:$0xff] %v4032_v33  ;;  %v340_v16 = vunpack.c.2.s8 %v325_v52 }
 0x12a   :  { %2899 = vmatprep.mubr.f32.mxu1 %v4000_v27  ;;  %2955 = vmatprep.mubr.f32.mxu0 %v4002_v28  ;;  %v304_v28 = vunpack.c.2.s8 %v289_v36 }
 0x12b   :  { %v4044_v49 = vcvt.s32.f32 %v340_v16 }
 0x12c   :  { %v4042_v55 = vcvt.s32.f32 %v304_v28 }
 0x12d   :  { %2900 = vmatmul.mubr.f32.gmra.mrb[8].mxu1 %v4012_v41  ;;  %2956 = vmatmul.mubr.f32.gmra.mrb[24].mxu0 %v4014_v43  ;;  %v305_v43 = vunpack.c.3.s8 %v289_v36  ;;  %4767 = vst [vmem:[#allocation34_spill] sm:$0xff] %v4044_v49 }
 0x12e   :  { %2902 = vmatprep.mubr.f32.mxu1 %v4018_v12  ;;  %2958 = vmatprep.mubr.f32.mxu0 %v4020_v13  ;;  %4766 = vst [vmem:[#allocation33_spill] sm:$0xff] %v4042_v55 }
 0x12f   :  { %v4048_v13 = vcvt.s32.f32 %v305_v43 }
 0x131   :  { %2903 = vmatmul.mubr.f32.gmra.mrb[10].mxu1 %v4024_v19  ;;  %2959 = vmatmul.mubr.f32.gmra.mrb[26].mxu0 %v4026_v20  ;;  %4768 = vst [vmem:[#allocation35_spill] sm:$0xff] %v4048_v13 }
 0x132   :  { %2905 = vmatprep.mubr.f32.mxu1 %v4030_v32  ;;  %2961 = vmatprep.mubr.f32.mxu0 %v4032_v33 }
 0x135   :  { %2906 = vmatmul.mubr.f32.gmra.mrb[12].mxu1 %v4036_v50  ;;  %2962 = vmatmul.mubr.f32.gmra.mrb[28].mxu0 %v4038_v51 }
 0x136   :  { %2908 = vmatprep.mubr.f32.mxu1 %v4042_v55  ;;  %2964 = vmatprep.mubr.f32.mxu0 %v4044_v49 }
 0x139   :  { %2909 = vmatmul.mubr.f32.gmra.mrb[14].mxu1 %v4048_v13  ;;  %2965 = vmatmul.mubr.f32.gmra.mrb[30].mxu0 %v4050_v44 }
 0x13a   :  { %2999 = vmatprep.mubr.f32.mxu1 %v3824_v56  ;;  %3055 = vmatprep.mubr.f32.mxu0 %v3826_v57 }
 0x1f0   :  { %v2889_v16 = vpop.f32.mrb[0].mxu1  ;;  %v2945_v28 = vpop.f32.mrb[16].mxu0 }
 0x1f1   :  { %v648_v36 = vmul.f32 %v2889_v16, %v3836_v61  ;;  %v905_v52 = vmul.f32 %v2945_v28, %v3862_v10  ;;  %v568_v38 = vpop.f32.mrb[1].mxu1  ;;  %v825_v43 = vpop.f32.mrb[17].mxu0 }
 0x1f2   :  { %v647_v47 = vmul.f32 %v568_v38, %v3832_v59  ;;  %v904_v49 = vmul.f32 %v825_v43, %v3864_v11 }
 0x1f3   :  { %1002 = vst.msk [vmem:[#allocation2 + $0x28] sm:$0xff] %vm269_vm1, %v905_v52  ;;  %938 = vrot.lane.b32.xlu1 %v648_v36, %s3588_s2 }
 0x1f4   :  { %1001 = vst.msk [vmem:[#allocation2 + $0x8] sm:$0xff] %vm269_vm1, %v904_v49  ;;  %v2948_v56 = vpop.f32.mrb[18].mxu0  ;;  %936 = vrot.lane.b32.xlu0 %v647_v47, %s3588_s2  ;;  %v2892_v57 = vpop.f32.mrb[2].mxu1 }
 0x1f5   :  { %v907_v16 = vmul.f32 %v2948_v56, %v3866_v15  ;;  %v650_v28 = vmul.f32 %v2892_v57, %v3834_v60  ;;  %v578_v44 = vpop.f32.mrb[3].mxu1  ;;  %v835_v51 = vpop.f32.mrb[19].mxu0 }
 0x1f6   :  { %v649_v38 = vmul.f32 %v578_v44, %v3830_v58  ;;  %v906_v43 = vmul.f32 %v835_v51, %v3868_v17 }
 0x1f7   :  { %1004 = vst.msk [vmem:[#allocation2 + $0x68] sm:$0xff] %vm269_vm1, %v907_v16  ;;  %942 = vrot.lane.b32.xlu1 %v650_v28, %s3588_s2 }
 0x1f8   :  { %1003 = vst.msk [vmem:[#allocation2 + $0x48] sm:$0xff] %vm269_vm1, %v906_v43  ;;  %v2951_v49 = vpop.f32.mrb[20].mxu0  ;;  %940 = vrot.lane.b32.xlu0 %v649_v38, %s3588_s2  ;;  %v2895_v36 = vpop.f32.mrb[4].mxu1 }
 0x1f9   :  { %v909_v52 = vmul.f32 %v2951_v49, %v3873_v22  ;;  %v652_v47 = vmul.f32 %v2895_v36, %v3838_v62  ;;  %v588_v56 = vpop.f32.mrb[5].mxu1  ;;  %v845_v57 = vpop.f32.mrb[21].mxu0 }
 0x1fa   :  { %v651_v44 = vmul.f32 %v588_v56, %v3840_v63  ;;  %v908_v51 = vmul.f32 %v845_v57, %v3876_v24 }
 0x1fb   :  { %1006 = vst.msk [vmem:[#allocation2 + $0xa8] sm:$0xff] %vm269_vm1, %v909_v52  ;;  %946 = vrot.lane.b32.xlu1 %v652_v47, %s3588_s2 }
 0x1fc   :  { %1005 = vst.msk [vmem:[#allocation2 + $0x88] sm:$0xff] %vm269_vm1, %v908_v51  ;;  %v2954_v16 = vpop.f32.mrb[22].mxu0  ;;  %944 = vrot.lane.b32.xlu0 %v651_v44, %s3588_s2  ;;  %v2898_v28 = vpop.f32.mrb[6].mxu1 }
 0x1fd   :  { %v911_v38 = vmul.f32 %v2954_v16, %v3884_v37  ;;  %v654_v43 = vmul.f32 %v2898_v28, %v3842_v0  ;;  %v598_v49 = vpop.f32.mrb[7].mxu1  ;;  %v855_v36 = vpop.f32.mrb[23].mxu0 }
 0x1fe   :  { %v653_v56 = vmul.f32 %v598_v49, %v3844_v1  ;;  %v910_v57 = vmul.f32 %v855_v36, %v3886_v42 }
 0x1ff   :  { %1008 = vst.msk [vmem:[#allocation2 + $0xe8] sm:$0xff] %vm269_vm1, %v911_v38  ;;  %950 = vrot.lane.b32.xlu1 %v654_v43, %s3588_s2 }
 0x200   :  { %1007 = vst.msk [vmem:[#allocation2 + $0xc8] sm:$0xff] %vm269_vm1, %v910_v57  ;;  %v2957_v52 = vpop.f32.mrb[24].mxu0  ;;  %948 = vrot.lane.b32.xlu0 %v653_v56, %s3588_s2  ;;  %v2901_v47 = vpop.f32.mrb[8].mxu1 }
 0x201   :  { %v913_v44 = vmul.f32 %v2957_v52, %v3897_v18  ;;  %v656_v51 = vmul.f32 %v2901_v47, %v3846_v2  ;;  %v608_v16 = vpop.f32.mrb[9].mxu1  ;;  %v865_v28 = vpop.f32.mrb[25].mxu0 }
 0x202   :  { %v655_v49 = vmul.f32 %v608_v16, %v3848_v3  ;;  %v912_v36 = vmul.f32 %v865_v28, %v3902_v23 }
 0x203   :  { %1010 = vst.msk [vmem:[#allocation2 + $0x128] sm:$0xff] %vm269_vm1, %v913_v44  ;;  %954 = vrot.lane.b32.xlu1 %v656_v51, %s3588_s2 }
 0x204   :  { %1009 = vst.msk [vmem:[#allocation2 + $0x108] sm:$0xff] %vm269_vm1, %v912_v36  ;;  %v2960_v38 = vpop.f32.mrb[26].mxu0  ;;  %952 = vrot.lane.b32.xlu0 %v655_v49, %s3588_s2  ;;  %v2904_v43 = vpop.f32.mrb[10].mxu1 }
 0x205   :  { %v915_v56 = vmul.f32 %v2960_v38, %v3910_v40  ;;  %v658_v57 = vmul.f32 %v2904_v43, %v3850_v4  ;;  %v618_v52 = vpop.f32.mrb[11].mxu1  ;;  %v875_v47 = vpop.f32.mrb[27].mxu0 }
 0x206   :  { %v657_v16 = vmul.f32 %v618_v52, %v3852_v5  ;;  %v914_v28 = vmul.f32 %v875_v47, %v3912_v46 }
 0x207   :  { %1012 = vst.msk [vmem:[#allocation2 + $0x168] sm:$0xff] %vm269_vm1, %v915_v56  ;;  %958 = vrot.lane.b32.xlu1 %v658_v57, %s3588_s2 }
 0x208   :  { %1011 = vst.msk [vmem:[#allocation2 + $0x148] sm:$0xff] %vm269_vm1, %v914_v28  ;;  %v2963_v44 = vpop.f32.mrb[28].mxu0  ;;  %956 = vrot.lane.b32.xlu0 %v657_v16, %s3588_s2  ;;  %v2907_v51 = vpop.f32.mrb[12].mxu1 }
 0x209   :  { %v917_v49 = vmul.f32 %v2963_v44, %v3923_v26  ;;  %v660_v36 = vmul.f32 %v2907_v51, %v3854_v6  ;;  %v628_v38 = vpop.f32.mrb[13].mxu1  ;;  %v885_v43 = vpop.f32.mrb[29].mxu0 }
 0x20a   :  { %v659_v52 = vmul.f32 %v628_v38, %v3856_v7  ;;  %v916_v47 = vmul.f32 %v885_v43, %v3928_v29 }
 0x20b   :  { %1014 = vst.msk [vmem:[#allocation2 + $0x1a8] sm:$0xff] %vm269_vm1, %v917_v49  ;;  %962 = vrot.lane.b32.xlu1 %v660_v36, %s3588_s2 }
 0x20c   :  { %1013 = vst.msk [vmem:[#allocation2 + $0x188] sm:$0xff] %vm269_vm1, %v916_v47  ;;  %v2966_v56 = vpop.f32.mrb[30].mxu0  ;;  %960 = vrot.lane.b32.xlu0 %v659_v52, %s3588_s2  ;;  %v2910_v57 = vpop.f32.mrb[14].mxu1 }
 0x20d   :  { %v919_v16 = vmul.f32 %v2966_v56, %v3934_v39  ;;  %v662_v28 = vmul.f32 %v2910_v57, %v3858_v8  ;;  %v638_v44 = vpop.f32.mrb[15].mxu1  ;;  %v895_v51 = vpop.f32.mrb[31].mxu0  ;;  %v1020_v56 = vld [vmem:[#allocation2 + $0x28] sm:$0xff] }
 0x20e   :  { %v661_v38 = vmul.f32 %v638_v44, %v3860_v9  ;;  %v918_v43 = vmul.f32 %v895_v51, %v3936_v45  ;;  %v1018_v57 = vld [vmem:[#allocation2 + $0x8] sm:$0xff] }
 0x20f   :  { %1016 = vst.msk [vmem:[#allocation2 + $0x1e8] sm:$0xff] %vm269_vm1, %v919_v16  ;;  %966 = vrot.lane.b32.xlu1 %v662_v28, %s3588_s2 }
 0x210   :  { %1015 = vst.msk [vmem:[#allocation2 + $0x1c8] sm:$0xff] %vm269_vm1, %v918_v43  ;;  %964 = vrot.lane.b32.xlu0 %v661_v38, %s3588_s2  ;;  %v1052_v38 = vmul.f32 %v1020_v56, %v3836_v61 }
 0x265   :  { %v939_v49 = vpop.permute.xlu1 %938 }
 0x266   :  { %986 = vst.msk [vmem:[#allocation2 + $0x20] sm:$0xff] %vm984_vm2, %v939_v49  ;;  %v937_v36 = vpop.permute.xlu0 %936 }
 0x267   :  { %985 = vst.msk [vmem:[#allocation2] sm:$0xff] %vm984_vm2, %v937_v36  ;;  %v1050_v36 = vmul.f32 %v1018_v57, %v3832_v59 }
 0x269   :  { %v943_v52 = vpop.permute.xlu1 %942 }
 0x26a   :  { %988 = vst.msk [vmem:[#allocation2 + $0x60] sm:$0xff] %vm984_vm2, %v943_v52  ;;  %v941_v47 = vpop.permute.xlu0 %940 }
 0x26b   :  { %987 = vst.msk [vmem:[#allocation2 + $0x40] sm:$0xff] %vm984_vm2, %v941_v47 }
 0x26d   :  { %v947_v16 = vpop.permute.xlu1 %946  ;;  %v1019_v28 = vld [vmem:[#allocation2 + $0x20] sm:$0xff] }
 0x26e   :  { %990 = vst.msk [vmem:[#allocation2 + $0xa0] sm:$0xff] %vm984_vm2, %v947_v16  ;;  %v945_v44 = vpop.permute.xlu0 %944  ;;  %v1051_v51 = vmul.f32 %v1019_v28, %v3836_v61  ;;  %v1017_v43 = vld [vmem:[#allocation2] sm:$0xff]  ;;  %v1372_v47 = vmul.f32 %v1019_v28, %v3862_v10  ;;  %v1373_v61 = vmul.f32 %v1020_v56, %v3862_v10  ;;  %v1024_v28 = vld [vmem:[#allocation2 + $0x68] sm:$0xff] }
 0x26f   :  { %989 = vst.msk [vmem:[#allocation2 + $0x80] sm:$0xff] %vm984_vm2, %v945_v44  ;;  %v1049_v49 = vmul.f32 %v1017_v43, %v3832_v59  ;;  %v1370_v13 = vmul.f32 %v1017_v43, %v3864_v11  ;;  %v1022_v43 = vld [vmem:[#allocation2 + $0x48] sm:$0xff] }
 0x270   :  { %v3312_v52 = vpack.i.bf16 %v1052_v38, %v1051_v51  ;;  %v1371_v51 = vmul.f32 %v1018_v57, %v3864_v11  ;;  %v3317_v38 = vpack.i.bf16 %v1373_v61, %v1372_v47  ;;  %v1054_v61 = vmul.f32 %v1022_v43, %v3830_v58 }
 0x271   :  { %v951_v33 = vpop.permute.xlu1 %950  ;;  %v3322_v20 = vpack.i.bf16 %v1050_v36, %v1049_v49  ;;  %v1023_v16 = vld [vmem:[#allocation2 + $0x60] sm:$0xff] }
 0x272   :  { %992 = vst.msk [vmem:[#allocation2 + $0xe0] sm:$0xff] %vm984_vm2, %v951_v33  ;;  %v949_v55 = vpop.permute.xlu0 %948  ;;  %3313 = vrot.lane.b32.xlu1 %v3312_v52, %s3588_s2  ;;  %v1021_v44 = vld [vmem:[#allocation2 + $0x40] sm:$0xff]  ;;  %v1055_v49 = vmul.f32 %v1023_v16, %v3834_v60  ;;  %v3327_v59 = vpack.i.bf16 %v1371_v51, %v1370_v13  ;;  %v1376_v56 = vmul.f32 %v1023_v16, %v3866_v15  ;;  %v1028_v16 = vld [vmem:[#allocation2 + $0xa8] sm:$0xff] }
 0x273   :  { %991 = vst.msk [vmem:[#allocation2 + $0xc0] sm:$0xff] %vm984_vm2, %v949_v55  ;;  %3323 = vrot.lane.b32.xlu0 %v3322_v20, %s3588_s2  ;;  %v1053_v33 = vmul.f32 %v1021_v44, %v3830_v58  ;;  %v1056_v55 = vmul.f32 %v1024_v28, %v3834_v60  ;;  %v1374_v47 = vmul.f32 %v1021_v44, %v3868_v17  ;;  %v1026_v44 = vld [vmem:[#allocation2 + $0x88] sm:$0xff] }
 0x275   :  { %v955_v36 = vpop.permute.xlu1 %954  ;;  %v3332_v20 = vpack.i.bf16 %v1056_v55, %v1055_v49  ;;  %v3342_v13 = vpack.i.bf16 %v1054_v61, %v1053_v33  ;;  %v1027_v51 = vld [vmem:[#allocation2 + $0xa0] sm:$0xff] }
 0x276   :  { %994 = vst.msk [vmem:[#allocation2 + $0x120] sm:$0xff] %vm984_vm2, %v955_v36  ;;  %v953_v52 = vpop.permute.xlu0 %952  ;;  %3318 = vrot.lane.b32.xlu1 %v3317_v38, %s3588_s2  ;;  %v1377_v38 = vmul.f32 %v1024_v28, %v3866_v15  ;;  %v1059_v33 = vmul.f32 %v1027_v51, %v3838_v62  ;;  %v1060_v28 = vmul.f32 %v1028_v16, %v3838_v62 }
 0x277   :  { %993 = vst.msk [vmem:[#allocation2 + $0x100] sm:$0xff] %vm984_vm2, %v953_v52  ;;  %3328 = vrot.lane.b32.xlu0 %v3327_v59, %s3588_s2  ;;  %v1025_v52 = vld [vmem:[#allocation2 + $0x80] sm:$0xff]  ;;  %v1375_v59 = vmul.f32 %v1022_v43, %v3868_v17  ;;  %v1058_v43 = vmul.f32 %v1026_v44, %v3840_v63 }
 0x278   :  { %v3337_v49 = vpack.i.bf16 %v1377_v38, %v1376_v56  ;;  %v3352_v56 = vpack.i.bf16 %v1060_v28, %v1059_v33  ;;  %v1378_v38 = vmul.f32 %v1025_v52, %v3876_v24  ;;  %v1379_v33 = vmul.f32 %v1026_v44, %v3876_v24 }
 0x279   :  { %v959_v57 = vpop.permute.xlu1 %958  ;;  %v3347_v61 = vpack.i.bf16 %v1375_v59, %v1374_v47  ;;  %v1031_v59 = vld [vmem:[#allocation2 + $0xe0] sm:$0xff] }
 0x27a   :  { %996 = vst.msk [vmem:[#allocation2 + $0x160] sm:$0xff] %vm984_vm2, %v959_v57  ;;  %v957_v36 = vpop.permute.xlu0 %956  ;;  %3333 = vrot.lane.b32.xlu1 %v3332_v20, %s3588_s2  ;;  %v1057_v57 = vmul.f32 %v1025_v52, %v3840_v63  ;;  %v1030_v52 = vld [vmem:[#allocation2 + $0xc8] sm:$0xff]  ;;  %v3367_v28 = vpack.i.bf16 %v1379_v33, %v1378_v38 }
 0x27b   :  { %995 = vst.msk [vmem:[#allocation2 + $0x140] sm:$0xff] %vm984_vm2, %v957_v36  ;;  %3343 = vrot.lane.b32.xlu0 %v3342_v13, %s3588_s2  ;;  %v1380_v13 = vmul.f32 %v1027_v51, %v3873_v22  ;;  %v1032_v51 = vld [vmem:[#allocation2 + $0xe8] sm:$0xff]  ;;  %v1383_v33 = vmul.f32 %v1030_v52, %v3886_v42 }
 0x27c   :  { %v3362_v47 = vpack.i.bf16 %v1058_v43, %v1057_v57  ;;  %v1063_v57 = vmul.f32 %v1031_v59, %v3842_v0  ;;  %v1385_v38 = vmul.f32 %v1032_v51, %v3884_v37 }
 0x27d   :  { %v963_v55 = vpop.permute.xlu1 %962 }
 0x27e   :  { %998 = vst.msk [vmem:[#allocation2 + $0x1a0] sm:$0xff] %vm984_vm2, %v963_v55  ;;  %v961_v20 = vpop.permute.xlu0 %960  ;;  %3338 = vrot.lane.b32.xlu1 %v3337_v49, %s3588_s2  ;;  %v1381_v55 = vmul.f32 %v1028_v16, %v3873_v22  ;;  %v1062_v16 = vmul.f32 %v1030_v52, %v3844_v1 }
 0x27f   :  { %997 = vst.msk [vmem:[#allocation2 + $0x180] sm:$0xff] %vm984_vm2, %v961_v20  ;;  %3348 = vrot.lane.b32.xlu0 %v3347_v61, %s3588_s2  ;;  %v1029_v20 = vld [vmem:[#allocation2 + $0xc0] sm:$0xff] }
 0x280   :  { %v3357_v61 = vpack.i.bf16 %v1381_v55, %v1380_v13  ;;  %v1061_v43 = vmul.f32 %v1029_v20, %v3844_v1  ;;  %v1382_v13 = vmul.f32 %v1029_v20, %v3886_v42  ;;  %v1033_v55 = vld [vmem:[#allocation2 + $0x100] sm:$0xff]  ;;  %v1044_v42 = vld [vmem:[#allocation2 + $0x1a8] sm:$0xff] }
 0x281   :  { %v967_v36 = vpop.permute.xlu1 %966 }
 0x282   :  { %1000 = vst.msk [vmem:[#allocation2 + $0x1e0] sm:$0xff] %vm984_vm2, %v967_v36  ;;  %3353 = vrot.lane.b32.xlu1 %v3352_v56, %s3588_s2  ;;  %v965_v49 = vpop.permute.xlu0 %964  ;;  %v1064_v56 = vmul.f32 %v1032_v51, %v3842_v0  ;;  %v3382_v44 = vpack.i.bf16 %v1062_v16, %v1061_v43  ;;  %v1039_v43 = vld [vmem:[#allocation2 + $0x160] sm:$0xff] }
 0x283   :  { %999 = vst.msk [vmem:[#allocation2 + $0x1c0] sm:$0xff] %vm984_vm2, %v965_v49  ;;  %3363 = vrot.lane.b32.xlu0 %v3362_v47, %s3588_s2  ;;  %v1384_v47 = vmul.f32 %v1031_v59, %v3884_v37  ;;  %v1035_v49 = vld [vmem:[#allocation2 + $0x120] sm:$0xff]  ;;  %v1065_v59 = vmul.f32 %v1033_v55, %v3848_v3 }
 0x284   :  { %v3372_v36 = vpack.i.bf16 %v1064_v56, %v1063_v57  ;;  %v1067_v22 = vmul.f32 %v1035_v49, %v3846_v2  ;;  %v1034_v57 = vld [vmem:[#allocation2 + $0x108] sm:$0xff]  ;;  %v3387_v56 = vpack.i.bf16 %v1383_v33, %v1382_v13  ;;  %v1037_v16 = vld [vmem:[#allocation2 + $0x140] sm:$0xff] }
 0x285   :  { %v1066_v51 = vmul.f32 %v1034_v57, %v3848_v3  ;;  %v1069_v13 = vmul.f32 %v1037_v16, %v3852_v5  ;;  %v1043_v33 = vld [vmem:[#allocation2 + $0x1a0] sm:$0xff] }
 0x286   :  { %3358 = vrot.lane.b32.xlu1 %v3357_v61, %s3588_s2  ;;  %v1036_v61 = vld [vmem:[#allocation2 + $0x128] sm:$0xff]  ;;  %v1041_v37 = vld [vmem:[#allocation2 + $0x180] sm:$0xff] }
 0x287   :  { %3368 = vrot.lane.b32.xlu0 %v3367_v28, %s3588_s2  ;;  %v3377_v28 = vpack.i.bf16 %v1385_v38, %v1384_v47  ;;  %v1068_v20 = vmul.f32 %v1036_v61, %v3846_v2  ;;  %v1071_v47 = vmul.f32 %v1039_v43, %v3850_v4  ;;  %v3397_v38 = vpack.i.bf16 %v1066_v51, %v1065_v59 }
 0x288   :  { %v1073_v59 = vmul.f32 %v1041_v37, %v3856_v7 }
 0x289   :  { %v3392_v52 = vpack.i.bf16 %v1068_v20, %v1067_v22  ;;  %v1075_v22 = vmul.f32 %v1043_v33, %v3854_v6  ;;  %v1042_v20 = vld [vmem:[#allocation2 + $0x188] sm:$0xff]  ;;  %v1047_v51 = vld [vmem:[#allocation2 + $0x1e0] sm:$0xff] }
 0x28a   :  { %3373 = vrot.lane.b32.xlu1 %v3372_v36, %s3588_s2  ;;  %v1040_v36 = vld [vmem:[#allocation2 + $0x168] sm:$0xff]  ;;  %v1045_v2 = vld [vmem:[#allocation2 + $0x1c0] sm:$0xff] }
 0x28b   :  { %3383 = vrot.lane.b32.xlu0 %v3382_v44, %s3588_s2  ;;  %v1038_v44 = vld [vmem:[#allocation2 + $0x148] sm:$0xff] }
 0x28e   :  { %3378 = vrot.lane.b32.xlu1 %v3377_v28, %s3588_s2  ;;  %v1072_v28 = vmul.f32 %v1040_v36, %v3850_v4  ;;  %v1048_v4 = vld [vmem:[#allocation2 + $0x1e8] sm:$0xff] }
 0x28f   :  { %3388 = vrot.lane.b32.xlu0 %v3387_v56, %s3588_s2  ;;  %v1070_v56 = vmul.f32 %v1038_v44, %v3852_v5 }
 0x290   :  { %v3402_v24 = vpack.i.bf16 %v1072_v28, %v1071_v47  ;;  %v1079_v47 = vmul.f32 %v1047_v51, %v3858_v8  ;;  %v1046_v28 = vld [vmem:[#allocation2 + $0x1c8] sm:$0xff] }
 0x291   :  { %v3407_v15 = vpack.i.bf16 %v1070_v56, %v1069_v13  ;;  %v1077_v13 = vmul.f32 %v1045_v2, %v3860_v9  ;;  %v1080_v56 = vmul.f32 %v1048_v4, %v3858_v8  ;;  %v1390_v8 = vmul.f32 %v1037_v16, %v3912_v46 }
 0x292   :  { %3393 = vrot.lane.b32.xlu1 %v3392_v52, %s3588_s2  ;;  %v1076_v52 = vmul.f32 %v1044_v42, %v3854_v6  ;;  %v1395_v16 = vmul.f32 %v1042_v20, %v3928_v29 }
 0x293   :  { %3398 = vrot.lane.b32.xlu0 %v3397_v38, %s3588_s2  ;;  %v1074_v38 = vmul.f32 %v1042_v20, %v3856_v7  ;;  %v3422_v6 = vpack.i.bf16 %v1080_v56, %v1079_v47 }
 0x294   :  { %v3412_v5 = vpack.i.bf16 %v1076_v52, %v1075_v22  ;;  %v1386_v22 = vmul.f32 %v1033_v55, %v3902_v23 }
 0x295   :  { %v3417_v17 = vpack.i.bf16 %v1074_v38, %v1073_v59  ;;  %v1389_v59 = vmul.f32 %v1036_v61, %v3897_v18  ;;  %v1392_v38 = vmul.f32 %v1039_v43, %v3910_v40  ;;  %v1396_v61 = vmul.f32 %v1043_v33, %v3923_v26 }
 0x296   :  { %3403 = vrot.lane.b32.xlu1 %v3402_v24, %s3588_s2  ;;  %v1078_v24 = vmul.f32 %v1046_v28, %v3860_v9  ;;  %v1397_v43 = vmul.f32 %v1044_v42, %v3923_v26 }
 0x297   :  { %3408 = vrot.lane.b32.xlu0 %v3407_v15, %s3588_s2  ;;  %v1388_v15 = vmul.f32 %v1035_v49, %v3897_v18  ;;  %v1393_v49 = vmul.f32 %v1040_v36, %v3910_v40  ;;  %v1400_v36 = vmul.f32 %v1047_v51, %v3934_v39 }
 0x298   :  { %v3427_v7 = vpack.i.bf16 %v1078_v24, %v1077_v13  ;;  %v3457_v47 = vpack.i.bf16 %v1397_v43, %v1396_v61 }
 0x299   :  { %v3437_v52 = vpack.i.bf16 %v1389_v59, %v1388_v15  ;;  %v3447_v55 = vpack.i.bf16 %v1393_v49, %v1392_v38 }
 0x29a   :  { %3413 = vrot.lane.b32.xlu1 %v3412_v5, %s3588_s2  ;;  %v1387_v5 = vmul.f32 %v1034_v57, %v3902_v23  ;;  %v1394_v57 = vmul.f32 %v1041_v37, %v3928_v29  ;;  %v1399_v37 = vmul.f32 %v1046_v28, %v3936_v45 }
 0x29b   :  { %3418 = vrot.lane.b32.xlu0 %v3417_v17, %s3588_s2 }
 0x29c   :  { %v3432_v17 = vpack.i.bf16 %v1387_v5, %v1386_v22  ;;  %v3452_v13 = vpack.i.bf16 %v1395_v16, %v1394_v57 }
 0x29e   :  { %3423 = vrot.lane.b32.xlu1 %v3422_v6, %s3588_s2  ;;  %v1391_v6 = vmul.f32 %v1038_v44, %v3912_v46  ;;  %v1398_v44 = vmul.f32 %v1045_v2, %v3936_v45 }
 0x29f   :  { %3428 = vrot.lane.b32.xlu0 %v3427_v7, %s3588_s2 }
 0x2a0   :  { %v3442_v7 = vpack.i.bf16 %v1391_v6, %v1390_v8  ;;  %v1401_v8 = vmul.f32 %v1048_v4, %v3934_v39  ;;  %v3462_v42 = vpack.i.bf16 %v1399_v37, %v1398_v44 }
 0x2a2   :  { %3438 = vrot.lane.b32.xlu1 %v3437_v52, %s3588_s2  ;;  %v3467_v33 = vpack.i.bf16 %v1401_v8, %v1400_v36 }
 0x2a3   :  { %3433 = vrot.lane.b32.xlu0 %v3432_v17, %s3588_s2 }
 0x2a6   :  { %3448 = vrot.lane.b32.xlu1 %v3447_v55, %s3588_s2 }
 0x2a7   :  { %3443 = vrot.lane.b32.xlu0 %v3442_v7, %s3588_s2 }
 0x2aa   :  { %3458 = vrot.lane.b32.xlu1 %v3457_v47, %s3588_s2 }
 0x2ab   :  { %3453 = vrot.lane.b32.xlu0 %v3452_v13, %s3588_s2 }
 0x2ae   :  { %3468 = vrot.lane.b32.xlu1 %v3467_v33, %s3588_s2 }
 0x2af   :  { %3463 = vrot.lane.b32.xlu0 %v3462_v42, %s3588_s2 }
 0x2e4   :  { %v3314_v20 = vpop.permute.xlu1 %3313 }
 0x2e5   :  { %v3316_v56 = vunpack.i.h.bf16 %v3314_v20  ;;  %v3315_v51 = vunpack.i.l.bf16 %v3314_v20  ;;  %v3324_v24 = vpop.permute.xlu0 %3323 }
 0x2e6   :  { %v3326_v15 = vunpack.i.h.bf16 %v3324_v24  ;;  %v3325_v2 = vunpack.i.l.bf16 %v3324_v24 }
 0x2e7   :  { %v1178_v22 = vsel %vm269_vm1, %v3315_v51, %v3316_v56 }
 0x2e8   :  { %v3319_v59 = vpop.permute.xlu1 %3318  ;;  %v1177_v4 = vsel %vm269_vm1, %v3325_v2, %v3326_v15 }
 0x2e9   :  { %v3321_v5 = vunpack.i.h.bf16 %v3319_v59  ;;  %v3320_v52 = vunpack.i.l.bf16 %v3319_v59  ;;  %v3329_v28 = vpop.permute.xlu0 %3328  ;;  %v3147_v38 = vpack.c.bf16 %v1178_v22, %v1177_v4 }
 0x2ea   :  { %v3331_v17 = vunpack.i.h.bf16 %v3329_v28  ;;  %v3330_v49 = vunpack.i.l.bf16 %v3329_v28 }
 0x2eb   :  { %3148 = vmatprep.subr.bf16.mxu1 %v3147_v38  ;;  %v1499_v6 = vsel %vm269_vm1, %v3320_v52, %v3321_v5 }
 0x2ec   :  { %v3334_v55 = vpop.permute.xlu1 %3333  ;;  %3150 = vmatpush3.bf16.msra.mxu1 %v3147_v38  ;;  %v1498_v61 = vsel %vm269_vm1, %v3330_v49, %v3331_v17 }
 0x2ed   :  { %v3336_v7 = vunpack.i.h.bf16 %v3334_v55  ;;  %v3335_v57 = vunpack.i.l.bf16 %v3334_v55  ;;  %v3344_v43 = vpop.permute.xlu0 %3343  ;;  %v3179_v16 = vpack.c.bf16 %v1499_v6, %v1498_v61 }
 0x2ee   :  { %v3346_v47 = vunpack.i.h.bf16 %v3344_v43  ;;  %v3345_v36 = vunpack.i.l.bf16 %v3344_v43 }
 0x2ef   :  { %3180 = vmatprep.subr.bf16.mxu0 %v3179_v16  ;;  %v1180_v13 = vsel %vm269_vm1, %v3335_v57, %v3336_v7 }
 0x2f0   :  { %v3339_v44 = vpop.permute.xlu1 %3338  ;;  %3182 = vmatpush3.bf16.msra.mxu0 %v3179_v16  ;;  %v1179_v8 = vsel %vm269_vm1, %v3345_v36, %v3346_v47 }
 0x2f1   :  { %v3341_v37 = vunpack.i.h.bf16 %v3339_v44  ;;  %v3340_v33 = vunpack.i.l.bf16 %v3339_v44  ;;  %v3349_v42 = vpop.permute.xlu0 %3348  ;;  %v3151_v20 = vpack.c.bf16 %v1180_v13, %v1179_v8 }
 0x2f2   :  { %v3351_v56 = vunpack.i.h.bf16 %v3349_v42  ;;  %v3350_v51 = vunpack.i.l.bf16 %v3349_v42 }
 0x2f3   :  { %3152 = vmatprep.subr.bf16.mxu1 %v3151_v20  ;;  %v1501_v24 = vsel %vm269_vm1, %v3340_v33, %v3341_v37 }
 0x2f4   :  { %v3354_v15 = vpop.permute.xlu1 %3353  ;;  %3154 = vmatpush3.bf16.msra.mxu1 %v3151_v20  ;;  %v1500_v2 = vsel %vm269_vm1, %v3350_v51, %v3351_v56 }
 0x2f5   :  { %v3356_v22 = vunpack.i.h.bf16 %v3354_v15  ;;  %v3355_v59 = vunpack.i.l.bf16 %v3354_v15  ;;  %v3364_v4 = vpop.permute.xlu0 %3363  ;;  %v3183_v5 = vpack.c.bf16 %v1501_v24, %v1500_v2 }
 0x2f6   :  { %v3366_v52 = vunpack.i.h.bf16 %v3364_v4  ;;  %v3365_v28 = vunpack.i.l.bf16 %v3364_v4 }
 0x2f7   :  { %3184 = vmatprep.subr.bf16.mxu0 %v3183_v5  ;;  %v1182_v38 = vsel %vm269_vm1, %v3355_v59, %v3356_v22 }
 0x2f8   :  { %v3359_v17 = vpop.permute.xlu1 %3358  ;;  %3186 = vmatpush3.bf16.msra.mxu0 %v3183_v5  ;;  %v1181_v49 = vsel %vm269_vm1, %v3365_v28, %v3366_v52 }
 0x2f9   :  { %v3361_v6 = vunpack.i.h.bf16 %v3359_v17  ;;  %v3360_v55 = vunpack.i.l.bf16 %v3359_v17  ;;  %v3369_v61 = vpop.permute.xlu0 %3368  ;;  %v3155_v7 = vpack.c.bf16 %v1182_v38, %v1181_v49 }
 0x2fa   :  { %v3371_v57 = vunpack.i.h.bf16 %v3369_v61  ;;  %v3370_v43 = vunpack.i.l.bf16 %v3369_v61 }
 0x2fb   :  { %3156 = vmatprep.subr.bf16.mxu1 %v3155_v7  ;;  %v1503_v16 = vsel %vm269_vm1, %v3360_v55, %v3361_v6 }
 0x2fc   :  { %v3374_v47 = vpop.permute.xlu1 %3373  ;;  %3158 = vmatpush3.bf16.msra.mxu1 %v3155_v7  ;;  %v1502_v36 = vsel %vm269_vm1, %v3370_v43, %v3371_v57 }
 0x2fd   :  { %v3376_v13 = vunpack.i.h.bf16 %v3374_v47  ;;  %v3375_v44 = vunpack.i.l.bf16 %v3374_v47  ;;  %v3384_v8 = vpop.permute.xlu0 %3383  ;;  %v3187_v37 = vpack.c.bf16 %v1503_v16, %v1502_v36 }
 0x2fe   :  { %v3386_v33 = vunpack.i.h.bf16 %v3384_v8  ;;  %v3385_v42 = vunpack.i.l.bf16 %v3384_v8 }
 0x2ff   :  { %3188 = vmatprep.subr.bf16.mxu0 %v3187_v37  ;;  %v1184_v20 = vsel %vm269_vm1, %v3375_v44, %v3376_v13 }
 0x300   :  { %v3379_v56 = vpop.permute.xlu1 %3378  ;;  %3190 = vmatpush3.bf16.msra.mxu0 %v3187_v37  ;;  %v1183_v51 = vsel %vm269_vm1, %v3385_v42, %v3386_v33 }
 0x301   :  { %v3381_v24 = vunpack.i.h.bf16 %v3379_v56  ;;  %v3380_v15 = vunpack.i.l.bf16 %v3379_v56  ;;  %v3389_v2 = vpop.permute.xlu0 %3388  ;;  %v3159_v22 = vpack.c.bf16 %v1184_v20, %v1183_v51 }
 0x302   :  { %v3391_v59 = vunpack.i.h.bf16 %v3389_v2  ;;  %v3390_v4 = vunpack.i.l.bf16 %v3389_v2 }
 0x303   :  { %3160 = vmatprep.subr.bf16.mxu1 %v3159_v22  ;;  %v1505_v5 = vsel %vm269_vm1, %v3380_v15, %v3381_v24 }
 0x304   :  { %v3394_v52 = vpop.permute.xlu1 %3393  ;;  %3162 = vmatpush3.bf16.msra.mxu1 %v3159_v22  ;;  %v1504_v28 = vsel %vm269_vm1, %v3390_v4, %v3391_v59 }
 0x305   :  { %v3396_v38 = vunpack.i.h.bf16 %v3394_v52  ;;  %v3395_v17 = vunpack.i.l.bf16 %v3394_v52  ;;  %v3399_v49 = vpop.permute.xlu0 %3398  ;;  %v3191_v6 = vpack.c.bf16 %v1505_v5, %v1504_v28 }
 0x306   :  { %v3401_v55 = vunpack.i.h.bf16 %v3399_v49  ;;  %v3400_v61 = vunpack.i.l.bf16 %v3399_v49 }
 0x307   :  { %3192 = vmatprep.subr.bf16.mxu0 %v3191_v6  ;;  %v1186_v7 = vsel %vm269_vm1, %v3395_v17, %v3396_v38 }
 0x308   :  { %v3404_v57 = vpop.permute.xlu1 %3403  ;;  %3194 = vmatpush3.bf16.msra.mxu0 %v3191_v6  ;;  %v1185_v43 = vsel %vm269_vm1, %v3400_v61, %v3401_v55 }
 0x309   :  { %v3406_v16 = vunpack.i.h.bf16 %v3404_v57  ;;  %v3405_v47 = vunpack.i.l.bf16 %v3404_v57  ;;  %v3409_v36 = vpop.permute.xlu0 %3408  ;;  %v3163_v13 = vpack.c.bf16 %v1186_v7, %v1185_v43 }
 0x30a   :  { %v3411_v44 = vunpack.i.h.bf16 %v3409_v36  ;;  %v3410_v8 = vunpack.i.l.bf16 %v3409_v36 }
 0x30b   :  { %3164 = vmatprep.subr.bf16.mxu1 %v3163_v13  ;;  %v1188_v37 = vsel %vm269_vm1, %v3405_v47, %v3406_v16 }
 0x30c   :  { %v3414_v33 = vpop.permute.xlu1 %3413  ;;  %3166 = vmatpush3.bf16.msra.mxu1 %v3163_v13  ;;  %v1187_v42 = vsel %vm269_vm1, %v3410_v8, %v3411_v44 }
 0x30d   :  { %v3416_v20 = vunpack.i.h.bf16 %v3414_v33  ;;  %v3415_v56 = vunpack.i.l.bf16 %v3414_v33  ;;  %v3419_v51 = vpop.permute.xlu0 %3418  ;;  %v3167_v24 = vpack.c.bf16 %v1188_v37, %v1187_v42 }
 0x30e   :  { %v3421_v15 = vunpack.i.h.bf16 %v3419_v51  ;;  %v3420_v2 = vunpack.i.l.bf16 %v3419_v51 }
 0x30f   :  { %3168 = vmatprep.subr.bf16.mxu1 %v3167_v24  ;;  %v1190_v22 = vsel %vm269_vm1, %v3415_v56, %v3416_v20 }
 0x310   :  { %v3424_v59 = vpop.permute.xlu1 %3423  ;;  %3170 = vmatpush3.bf16.msra.mxu1 %v3167_v24  ;;  %v1189_v4 = vsel %vm269_vm1, %v3420_v2, %v3421_v15 }
 0x311   :  { %v3426_v5 = vunpack.i.h.bf16 %v3424_v59  ;;  %v3425_v52 = vunpack.i.l.bf16 %v3424_v59  ;;  %v3429_v28 = vpop.permute.xlu0 %3428  ;;  %v3171_v38 = vpack.c.bf16 %v1190_v22, %v1189_v4 }
 0x312   :  { %v3431_v17 = vunpack.i.h.bf16 %v3429_v28  ;;  %v3430_v49 = vunpack.i.l.bf16 %v3429_v28 }
 0x313   :  { %3172 = vmatprep.subr.bf16.mxu1 %v3171_v38  ;;  %v1192_v6 = vsel %vm269_vm1, %v3425_v52, %v3426_v5 }
 0x314   :  { %v3439_v55 = vpop.permute.xlu1 %3438  ;;  %3174 = vmatpush3.bf16.msra.mxu1 %v3171_v38  ;;  %v1191_v61 = vsel %vm269_vm1, %v3430_v49, %v3431_v17 }
 0x315   :  { %v3441_v7 = vunpack.i.h.bf16 %v3439_v55  ;;  %v3440_v57 = vunpack.i.l.bf16 %v3439_v55  ;;  %v3434_v43 = vpop.permute.xlu0 %3433  ;;  %v3175_v16 = vpack.c.bf16 %v1192_v6, %v1191_v61 }
 0x316   :  { %v3436_v47 = vunpack.i.h.bf16 %v3434_v43  ;;  %v3435_v36 = vunpack.i.l.bf16 %v3434_v43 }
 0x317   :  { %3176 = vmatprep.subr.bf16.mxu1 %v3175_v16  ;;  %v1507_v13 = vsel %vm269_vm1, %v3440_v57, %v3441_v7 }
 0x318   :  { %v3449_v44 = vpop.permute.xlu1 %3448  ;;  %3178 = vmatpush3.bf16.msra.mxu1 %v3175_v16  ;;  %v1506_v8 = vsel %vm269_vm1, %v3435_v36, %v3436_v47  ;;  %v4783_v16 = vld [vmem:[#allocation36_spill] sm:$0xff]  ;;  %v1963_v47 = vld [vmem:[#allocation3 + $0x80] sm:$0xff]  ;;  %v1964_v36 = vld [vmem:[#allocation3 + $0x88] sm:$0xff] }
 0x319   :  { %v3451_v37 = vunpack.i.h.bf16 %v3449_v44  ;;  %v3450_v33 = vunpack.i.l.bf16 %v3449_v44  ;;  %v3444_v42 = vpop.permute.xlu0 %3443  ;;  %v3195_v20 = vpack.c.bf16 %v1507_v13, %v1506_v8  ;;  %v1947_v13 = vld [vmem:[#allocation3] sm:$0xff]  ;;  %v3211_v44 = vpack.c.bf16 %v1964_v36, %v1963_v47 }
 0x31a   :  { %v3446_v56 = vunpack.i.h.bf16 %v3444_v42  ;;  %v3445_v51 = vunpack.i.l.bf16 %v3444_v42  ;;  %v3589_v8 = vmov 0.0|0.0   ;;  %v1980_v42 = vld [vmem:[#allocation3 + $0x108] sm:$0xff] }
 0x31b   :  { %3000 = vmatmul.mubr.f32.vlgmr.msra.gmra.mrb[16].mxu1 %v3952_v21  ;;  %3196 = vmatprep.subr.bf16.mxu0 %v3195_v20  ;;  %v1509_v24 = vsel %vm269_vm1, %v3450_v33, %v3451_v37  ;;  %v1948_v37 = vld [vmem:[#allocation3 + $0x8] sm:$0xff]  ;;  %v1979_v33 = vld [vmem:[#allocation3 + $0x100] sm:$0xff] }
 0x31c   :  { %v3459_v15 = vpop.permute.xlu1 %3458  ;;  %3198 = vmatpush3.bf16.msra.mxu0 %v3195_v20  ;;  %3002 = vmatprep.mubr.f32.mxu1 %v3958_v30  ;;  %v1508_v2 = vsel %vm269_vm1, %v3445_v51, %v3446_v56  ;;  %v3213_v20 = vpack.c.bf16 %v1948_v37, %v1947_v13  ;;  %v4297_v56 = vpack.c.bf16 %v1980_v42, %v1979_v33  ;;  %v1965_v51 = vld [vmem:[#allocation3 + $0x90] sm:$0xff]  ;;  %v1958_v37 = vld [vmem:[#allocation3 + $0x58] sm:$0xff] }
 0x31d   :  { %v3461_v22 = vunpack.i.h.bf16 %v3459_v15  ;;  %v3460_v59 = vunpack.i.l.bf16 %v3459_v15  ;;  %v3454_v4 = vpop.permute.xlu0 %3453  ;;  %v3199_v5 = vpack.c.bf16 %v1509_v24, %v1508_v2  ;;  %v1966_v24 = vld [vmem:[#allocation3 + $0x98] sm:$0xff]  ;;  %v1949_v15 = vld [vmem:[#allocation3 + $0x10] sm:$0xff]  ;;  %3212 = vmatprep.subr.bf16.mxu1 %v3211_v44 }
 0x31e   :  { %v3456_v52 = vunpack.i.h.bf16 %v3454_v4  ;;  %v3455_v28 = vunpack.i.l.bf16 %v3454_v4  ;;  %v3215_v2 = vpack.c.bf16 %v1966_v24, %v1965_v51  ;;  %v1982_v4 = vld [vmem:[#allocation3 + $0x118] sm:$0xff]  ;;  %3214 = vmatpush3.bf16.msra.mxu1 %v3213_v20  ;;  %v1957_v13 = vld [vmem:[#allocation3 + $0x50] sm:$0xff]  ;;  %v1975_v24 = vld [vmem:[#allocation3 + $0xe0] sm:$0xff] }
 0x31f   :  { %3003 = vmatmul.mubr.f32.gmra.mrb[18].mxu1 %v3964_v34  ;;  %3200 = vmatprep.subr.bf16.mxu0 %v3199_v5  ;;  %v1511_v21 = vsel %vm269_vm1, %v3460_v59, %v3461_v22  ;;  %v1950_v22 = vld [vmem:[#allocation3 + $0x18] sm:$0xff]  ;;  %v1981_v59 = vld [vmem:[#allocation3 + $0x110] sm:$0xff]  ;;  %v3233_v20 = vpack.c.bf16 %v1958_v37, %v1957_v13  ;;  %v2000_v37 = vld [vmem:[#allocation3 + $0x1a8] sm:$0xff] }
 0x320   :  { %v3469_v38 = vpop.permute.xlu1 %3468  ;;  %3202 = vmatpush3.bf16.msra.mxu0 %v3199_v5  ;;  %3005 = vmatprep.mubr.f32.mxu1 %v3970_v53  ;;  %v1510_v17 = vsel %vm269_vm1, %v3455_v28, %v3456_v52  ;;  %v4770_v53 = vld [vmem:[#allocation23_spill] sm:$0xff]  ;;  %v3217_v5 = vpack.c.bf16 %v1950_v22, %v1949_v15  ;;  %v4300_v52 = vpack.c.bf16 %v1982_v4, %v1981_v59  ;;  %v1967_v28 = vld [vmem:[#allocation3 + $0xa0] sm:$0xff]  ;;  %v1990_v42 = vld [vmem:[#allocation3 + $0x158] sm:$0xff] }
 0x321   :  { %v3471_v30 = vunpack.i.h.bf16 %v3469_v38  ;;  %v3470_v49 = vunpack.i.l.bf16 %v3469_v38  ;;  %v3464_v6 = vpop.permute.xlu0 %3463  ;;  %v3203_v55 = vpack.c.bf16 %v1511_v21, %v1510_v17  ;;  %v1968_v21 = vld [vmem:[#allocation3 + $0xa8] sm:$0xff]  ;;  %v1951_v38 = vld [vmem:[#allocation3 + $0x20] sm:$0xff]  ;;  %3216 = vmatprep.subr.bf16.mxu1 %v3215_v2  ;;  %v1989_v33 = vld [vmem:[#allocation3 + $0x150] sm:$0xff] }
 0x322   :  { %v3466_v61 = vunpack.i.h.bf16 %v3464_v6  ;;  %v3465_v7 = vunpack.i.l.bf16 %v3464_v6  ;;  %v3219_v17 = vpack.c.bf16 %v1968_v21, %v1967_v28  ;;  %v1984_v6 = vld [vmem:[#allocation3 + $0x128] sm:$0xff]  ;;  %3218 = vmatpush3.bf16.msra.mxu1 %v3217_v5  ;;  %v4316_v51 = vpack.c.bf16 %v1990_v42, %v1989_v33  ;;  %v1959_v22 = vld [vmem:[#allocation3 + $0x60] sm:$0xff] }
 0x323   :  { %3006 = vmatmul.mubr.f32.gmra.mrb[20].mxu1 %v3982_v48  ;;  %3204 = vmatprep.subr.bf16.mxu0 %v3203_v55  ;;  %v1513_v34 = vsel %vm269_vm1, %v3470_v49, %v3471_v30  ;;  %v4771_v48 = vld [vmem:[#allocation24_spill] sm:$0xff]  ;;  %v1952_v30 = vld [vmem:[#allocation3 + $0x28] sm:$0xff]  ;;  %v1983_v49 = vld [vmem:[#allocation3 + $0x120] sm:$0xff] }
 0x324   :  { %3206 = vmatpush3.bf16.msra.mxu0 %v3203_v55  ;;  %3008 = vmatprep.mubr.f32.mxu1 %v3988_v54  ;;  %v1512_v57 = vsel %vm269_vm1, %v3465_v7, %v3466_v61  ;;  %v4772_v54 = vld [vmem:[#allocation33_spill] sm:$0xff]  ;;  %v1969_v55 = vld [vmem:[#allocation3 + $0xb0] sm:$0xff]  ;;  %v1970_v61 = vld [vmem:[#allocation3 + $0xb8] sm:$0xff]  ;;  %v3221_v7 = vpack.c.bf16 %v1952_v30, %v1951_v38 }
 0x325   :  { %v3207_v43 = vpack.c.bf16 %v1513_v34, %v1512_v57  ;;  %v4304_v34 = vpack.c.bf16 %v1984_v6, %v1983_v49  ;;  %v1953_v57 = vld [vmem:[#allocation3 + $0x30] sm:$0xff]  ;;  %3220 = vmatprep.subr.bf16.mxu1 %v3219_v17  ;;  %v1976_v15 = vld [vmem:[#allocation3 + $0xe8] sm:$0xff]  ;;  %v1991_v4 = vld [vmem:[#allocation3 + $0x160] sm:$0xff] }
 0x326   :  { %3222 = vmatpush3.bf16.msra.mxu1 %v3221_v7  ;;  %v3235_v2 = vpack.c.bf16 %v1976_v15, %v1975_v24  ;;  %v1960_v59 = vld [vmem:[#allocation3 + $0x68] sm:$0xff]  ;;  %v1977_v38 = vld [vmem:[#allocation3 + $0xf0] sm:$0xff]  ;;  %v1978_v17 = vld [vmem:[#allocation3 + $0xf8] sm:$0xff] }
 0x327   :  { %3009 = vmatmul.mubr.f32.gmra.mrb[22].mxu1 %v3994_v14  ;;  %3208 = vmatprep.subr.bf16.mxu0 %v3207_v43  ;;  %v4773_v14 = vld [vmem:[#allocation25_spill] sm:$0xff]  ;;  %v3237_v5 = vpack.c.bf16 %v1960_v59, %v1959_v22  ;;  %v1992_v28 = vld [vmem:[#allocation3 + $0x168] sm:$0xff]  ;;  %v3239_v30 = vpack.c.bf16 %v1978_v17, %v1977_v38  ;;  %v1961_v49 = vld [vmem:[#allocation3 + $0x70] sm:$0xff] }
 0x328   :  { %3210 = vmatpush3.bf16.msra.mxu0 %v3207_v43  ;;  %3011 = vmatprep.mubr.f32.mxu1 %v4000_v27  ;;  %v4775_v27 = vld [vmem:[#allocation26_spill] sm:$0xff]  ;;  %v3223_v43 = vpack.c.bf16 %v1970_v61, %v1969_v55  ;;  %v4321_v21 = vpack.c.bf16 %v1992_v28, %v1991_v4  ;;  %v1962_v6 = vld [vmem:[#allocation3 + $0x78] sm:$0xff]  ;;  %v1993_v55 = vld [vmem:[#allocation3 + $0x170] sm:$0xff] }
 0x329   :  { %3243 = vmatprep.subr.bf16.mxu0 %v3589_v8  ;;  %v3241_v61 = vpack.c.bf16 %v1962_v6, %v1961_v49  ;;  %v1994_v7 = vld [vmem:[#allocation3 + $0x178] sm:$0xff] }
 0x32a   :  { %3224 = vmatprep.subr.bf16.mxu1 %v3223_v43  ;;  %v1995_v43 = vld [vmem:[#allocation3 + $0x180] sm:$0xff] }
 0x32b   :  { %3012 = vmatmul.mubr.f32.gmra.mrb[24].mxu1 %v4012_v41  ;;  %3056 = vmatmul.mubr.f32.vlgmr.msra.gmra.mrb[32].mxu0 %v3954_v25  ;;  %v4774_v25 = vld [vmem:[#allocation35_spill] sm:$0xff]  ;;  %v4777_v41 = vld [vmem:[#allocation28_spill] sm:$0xff] }
 0x32c   :  { %3014 = vmatprep.mubr.f32.mxu1 %v4018_v12  ;;  %3058 = vmatprep.mubr.f32.mxu0 %v3960_v31  ;;  %v4776_v31 = vld [vmem:[#allocation27_spill] sm:$0xff]  ;;  %v4779_v12 = vld [vmem:[#allocation30_spill] sm:$0xff] }
 0x32d   :  { %3245 = vmatpush1.bf16.msra.mxu0 %v4297_v56 }
 0x32e   :  { %3246 = vmatprep.subr.bf16.mxu0 %v3589_v8 }
 0x32f   :  { %3015 = vmatmul.mubr.f32.gmra.mrb[26].mxu1 %v4024_v19  ;;  %3059 = vmatmul.mubr.f32.gmra.mrb[34].mxu0 %v3966_v35  ;;  %v4778_v35 = vld [vmem:[#allocation29_spill] sm:$0xff]  ;;  %v4780_v19 = vld [vmem:[#allocation31_spill] sm:$0xff] }
 0x330   :  { %3017 = vmatprep.mubr.f32.mxu1 %v4030_v32  ;;  %3061 = vmatprep.mubr.f32.mxu0 %v4770_v53  ;;  %v4781_v32 = vld [vmem:[#allocation32_spill] sm:$0xff] }
 0x331   :  { %3248 = vmatpush1.bf16.msra.mxu0 %v4300_v52  ;;  %v1954_v53 = vld [vmem:[#allocation3 + $0x38] sm:$0xff] }
 0x332   :  { %3249 = vmatprep.subr.bf16.mxu0 %v3589_v8 }
 0x333   :  { %3018 = vmatmul.mubr.f32.gmra.mrb[28].mxu1 %v4036_v50  ;;  %3062 = vmatmul.mubr.f32.gmra.mrb[36].mxu0 %v4771_v48  ;;  %v4782_v50 = vld [vmem:[#allocation34_spill] sm:$0xff]  ;;  %v1985_v48 = vld [vmem:[#allocation3 + $0x130] sm:$0xff] }
 0x334   :  { %3020 = vmatprep.mubr.f32.mxu1 %v4772_v54  ;;  %3064 = vmatprep.mubr.f32.mxu0 %v4773_v14  ;;  %v1986_v54 = vld [vmem:[#allocation3 + $0x138] sm:$0xff]  ;;  %v1971_v14 = vld [vmem:[#allocation3 + $0xc0] sm:$0xff] }
 0x335   :  { %3251 = vmatpush1.bf16.msra.mxu0 %v4304_v34 }
 0x336   :  { %3252 = vmatprep.subr.bf16.mxu0 %v3589_v8 }
 0x337   :  { %3021 = vmatmul.mubr.f32.gmra.mrb[30].mxu1 %v4774_v25  ;;  %3065 = vmatmul.mubr.f32.gmra.mrb[38].mxu0 %v4775_v27  ;;  %v1972_v25 = vld [vmem:[#allocation3 + $0xc8] sm:$0xff]  ;;  %v3225_v27 = vpack.c.bf16 %v1954_v53, %v1953_v57  ;;  %v4325_v57 = vpack.c.bf16 %v1994_v7, %v1993_v55 }
 0x338   :  { %3067 = vmatprep.mubr.f32.mxu0 %v4776_v31  ;;  %v4308_v31 = vpack.c.bf16 %v1986_v54, %v1985_v48  ;;  %v1996_v53 = vld [vmem:[#allocation3 + $0x188] sm:$0xff] }
 0x339   :  { %3226 = vmatpush3.bf16.msra.mxu1 %v3225_v27  ;;  %v4330_v48 = vpack.c.bf16 %v1996_v53, %v1995_v43 }
 0x33a   :  { %3254 = vmatpush1.bf16.msra.mxu0 %v4308_v31 }
 0x33b   :  { %3068 = vmatmul.mubr.f32.gmra.mrb[40].mxu0 %v4777_v41  ;;  %v1955_v41 = vld [vmem:[#allocation3 + $0x40] sm:$0xff]  ;;  %3255 = vmatprep.subr.bf16.mxu0 %v3589_v8 }
 0x33c   :  { %3070 = vmatprep.mubr.f32.mxu0 %v4778_v35  ;;  %v3227_v35 = vpack.c.bf16 %v1972_v25, %v1971_v14  ;;  %v4784_v14 = vld [vmem:[#allocation10_spill] sm:$0xff] }
 0x33e   :  { %3228 = vmatprep.subr.bf16.mxu1 %v3227_v35 }
 0x33f   :  { %3071 = vmatmul.mubr.f32.gmra.mrb[42].mxu0 %v4779_v12  ;;  %v1956_v12 = vld [vmem:[#allocation3 + $0x48] sm:$0xff] }
 0x340   :  { %3073 = vmatprep.mubr.f32.mxu0 %v4780_v19  ;;  %v1987_v19 = vld [vmem:[#allocation3 + $0x140] sm:$0xff]  ;;  %v3229_v47 = vpack.c.bf16 %v1956_v12, %v1955_v41  ;;  %v1997_v12 = vld [vmem:[#allocation3 + $0x190] sm:$0xff] }
 0x341   :  { %v4785_v41 = vld [vmem:[#allocation9_spill] sm:$0xff] }
 0x342   :  { %3230 = vmatpush3.bf16.msra.mxu1 %v3229_v47 }
 0x343   :  { %3074 = vmatmul.mubr.f32.gmra.mrb[44].mxu0 %v4781_v32  ;;  %v1988_v32 = vld [vmem:[#allocation3 + $0x148] sm:$0xff] }
 0x344   :  { %3076 = vmatprep.mubr.f32.mxu0 %v4782_v50  ;;  %v1973_v50 = vld [vmem:[#allocation3 + $0xd0] sm:$0xff]  ;;  %v4312_v36 = vpack.c.bf16 %v1988_v32, %v1987_v19  ;;  %v1998_v19 = vld [vmem:[#allocation3 + $0x198] sm:$0xff] }
 0x345   :  { %v4337_v32 = vpack.c.bf16 %v1998_v19, %v1997_v12  ;;  %v4788_v12 = vld [vmem:[#allocation17_spill] sm:$0xff] }
 0x346   :  { %3257 = vmatpush1.bf16.msra.mxu0 %v4312_v36 }
 0x347   :  { %3077 = vmatmul.mubr.f32.gmra.mrb[46].mxu0 %v4783_v16  ;;  %v1974_v16 = vld [vmem:[#allocation3 + $0xd8] sm:$0xff]  ;;  %3258 = vmatprep.subr.bf16.mxu0 %v3589_v8 }
 0x348   :  { %v3231_v44 = vpack.c.bf16 %v1974_v16, %v1973_v50 }
 0x34a   :  { %3232 = vmatprep.subr.bf16.mxu1 %v3231_v44  ;;  %3260 = vmatpush1.bf16.msra.mxu0 %v4316_v51  ;;  %v1999_v44 = vld [vmem:[#allocation3 + $0x1a0] sm:$0xff] }
 0x34b   :  { %3234 = vmatpush3.bf16.msra.mxu1 %v3233_v20  ;;  %3261 = vmatprep.subr.bf16.mxu0 %v3589_v8  ;;  %v4345_v33 = vpack.c.bf16 %v2000_v37, %v1999_v44 }
 0x34c   :  { %3236 = vmatprep.subr.bf16.mxu1 %v3235_v2 }
 0x34e   :  { %3263 = vmatpush1.bf16.msra.mxu0 %v4321_v21 }
 0x34f   :  { %3238 = vmatpush3.bf16.msra.mxu1 %v3237_v5  ;;  %3264 = vmatprep.subr.bf16.mxu0 %v3589_v8 }
 0x350   :  { %3240 = vmatprep.subr.bf16.mxu1 %v3239_v30 }
 0x352   :  { %3266 = vmatpush1.bf16.msra.mxu0 %v4325_v57 }
 0x353   :  { %3242 = vmatpush3.bf16.msra.mxu1 %v3241_v61  ;;  %3267 = vmatprep.subr.bf16.mxu0 %v3589_v8 }
 0x354   :  { %3279 = vmatprep.subr.bf16.mxu1 %v3589_v8 }
 0x356   :  { %3269 = vmatpush1.bf16.msra.mxu0 %v4330_v48 }
 0x357   :  { %3270 = vmatprep.subr.bf16.mxu0 %v3589_v8 }
 0x35a   :  { %3272 = vmatpush1.bf16.msra.mxu0 %v4337_v32 }
 0x35b   :  { %3273 = vmatprep.subr.bf16.mxu0 %v3589_v8 }
 0x35e   :  { %3275 = vmatpush1.bf16.msra.mxu0 %v4345_v33 }
 0x35f   :  { %3276 = vmatprep.subr.bf16.mxu0 %v3589_v8 }
 0x3ee   :  { %v3001_v54 = vpop.f32.mrb[16].mxu1 }
 0x3ef   :  { %v1355_v25 = vmul.f32 %v3001_v54, %v4784_v14  ;;  %v1275_v27 = vpop.f32.mrb[17].mxu1  ;;  %v4786_v54 = vld [vmem:[#allocation18_spill] sm:$0xff] }
 0x3f0   :  { %v1354_v35 = vmul.f32 %v1275_v27, %v4785_v41  ;;  %v4787_v41 = vld [vmem:[#allocation11_spill] sm:$0xff] }
 0x3f1   :  { %1709 = vrot.lane.b32.xlu1 %v1355_v25, %s3588_s2 }
 0x3f2   :  { %1707 = vrot.lane.b32.xlu0 %v1354_v35, %s3588_s2  ;;  %v3004_v50 = vpop.f32.mrb[18].mxu1 }
 0x3f3   :  { %v1357_v16 = vmul.f32 %v3004_v50, %v3834_v60  ;;  %v1285_v47 = vpop.f32.mrb[19].mxu1  ;;  %v2001_v60 = vld [vmem:[#allocation3 + $0x1b0] sm:$0xff] }
 0x3f4   :  { %v1356_v13 = vmul.f32 %v1285_v47, %v3830_v58  ;;  %v2002_v58 = vld [vmem:[#allocation3 + $0x1b8] sm:$0xff] }
 0x3f5   :  { %1713 = vrot.lane.b32.xlu1 %v1357_v16, %s3588_s2  ;;  %v4351_v15 = vpack.c.bf16 %v2002_v58, %v2001_v60  ;;  %v4789_v16 = vld [vmem:[#allocation13_spill] sm:$0xff]  ;;  %v4792_v60 = vld [vmem:[#allocation19_spill] sm:$0xff] }
 0x3f6   :  { %1711 = vrot.lane.b32.xlu0 %v1356_v13, %s3588_s2  ;;  %v3007_v42 = vpop.f32.mrb[20].mxu1  ;;  %v4790_v13 = vld [vmem:[#allocation20_spill] sm:$0xff] }
 0x3f7   :  { %v1295_v20 = vpop.f32.mrb[21].mxu1  ;;  %v1359_v59 = vmul.f32 %v3007_v42, %v3838_v62  ;;  %3278 = vmatpush1.bf16.msra.mxu0 %v4351_v15 }
 0x3f8   :  { %v1358_v24 = vmul.f32 %v1295_v20, %v3840_v63  ;;  %v4791_v20 = vld [vmem:[#allocation12_spill] sm:$0xff] }
 0x3fa   :  { %1715 = vrot.lane.b32.xlu0 %v1358_v24, %s3588_s2  ;;  %v3010_v2 = vpop.f32.mrb[22].mxu1 }
 0x3fb   :  { %v1305_v22 = vpop.f32.mrb[23].mxu1  ;;  %v1361_v55 = vmul.f32 %v3010_v2, %v3842_v0 }
 0x3fc   :  { %v1360_v38 = vmul.f32 %v1305_v22, %v3844_v1 }
 0x3fe   :  { %v3057_v4 = vpop.f32.mrb[32].mxu0  ;;  %1717 = vrot.lane.b32.xlu0 %v1359_v59, %s3588_s2  ;;  %v3013_v63 = vpop.f32.mrb[24].mxu1  ;;  %v4793_v59 = vld [vmem:[#allocation15_spill] sm:$0xff] }
 0x3ff   :  { %v1315_v5 = vpop.f32.mrb[25].mxu1  ;;  %v1596_v28 = vpop.f32.mrb[33].mxu0  ;;  %v1676_v61 = vmul.f32 %v3057_v4, %v3862_v10  ;;  %v1363_v35 = vmul.f32 %v3013_v63, %v4787_v41  ;;  %v4794_v63 = vld [vmem:[#allocation22_spill] sm:$0xff] }
 0x400   :  { %v1675_v17 = vmul.f32 %v1596_v28, %v3864_v11  ;;  %v1362_v53 = vmul.f32 %v1315_v5, %v3848_v3 }
 0x402   :  { %v3060_v30 = vpop.f32.mrb[34].mxu0  ;;  %1803 = vrot.lane.b32.xlu1 %v1675_v17, %s3588_s2  ;;  %1719 = vrot.lane.b32.xlu0 %v1360_v38, %s3588_s2  ;;  %v3016_v49 = vpop.f32.mrb[26].mxu1  ;;  %v4795_v17 = vld [vmem:[#allocation14_spill] sm:$0xff] }
 0x403   :  { %v1325_v6 = vpop.f32.mrb[27].mxu1  ;;  %v1606_v62 = vpop.f32.mrb[35].mxu0  ;;  %v1678_v19 = vmul.f32 %v3060_v30, %v4788_v12  ;;  %v1365_v24 = vmul.f32 %v3016_v49, %v4791_v20  ;;  %v4796_v49 = vld [vmem:[#allocation21_spill] sm:$0xff] }
 0x404   :  { %v1677_v14 = vmul.f32 %v1606_v62, %v4786_v54  ;;  %v1364_v47 = vmul.f32 %v1325_v6, %v4789_v16  ;;  %v1883_v54 = vld [vmem:[#allocation2] sm:$0xff] }
 0x406   :  { %v3063_v7 = vpop.f32.mrb[36].mxu0  ;;  %1805 = vrot.lane.b32.xlu1 %v1676_v61, %s3588_s2  ;;  %1721 = vrot.lane.b32.xlu0 %v1361_v55, %s3588_s2  ;;  %v3019_v1 = vpop.f32.mrb[28].mxu1  ;;  %v4797_v61 = vld [vmem:[#allocation16_spill] sm:$0xff] }
 0x407   :  { %v1335_v43 = vpop.f32.mrb[29].mxu1  ;;  %v1616_v11 = vpop.f32.mrb[37].mxu0  ;;  %v1680_v58 = vmul.f32 %v3063_v7, %v4792_v60  ;;  %v1367_v30 = vmul.f32 %v3019_v1, %v4795_v17 }
 0x408   :  { %v1679_v44 = vmul.f32 %v1616_v11, %v4790_v13  ;;  %v1366_v4 = vmul.f32 %v1335_v43, %v4793_v59  ;;  %v1899_v13 = vld [vmem:[#allocation2 + $0x80] sm:$0xff] }
 0x409   :  { %v1907_v59 = vld [vmem:[#allocation2 + $0xc0] sm:$0xff] }
 0x40a   :  { %v3066_v25 = vpop.f32.mrb[38].mxu0  ;;  %1807 = vrot.lane.b32.xlu1 %v1677_v14, %s3588_s2  ;;  %1723 = vrot.lane.b32.xlu0 %v1362_v53, %s3588_s2  ;;  %v3022_v0 = vpop.f32.mrb[30].mxu1 }
 0x40b   :  { %v1345_v27 = vpop.f32.mrb[31].mxu1  ;;  %v1626_v10 = vpop.f32.mrb[39].mxu0  ;;  %v1682_v6 = vmul.f32 %v3066_v25, %v4796_v49  ;;  %v1369_v7 = vmul.f32 %v3022_v0, %v4797_v61  ;;  %v1887_v0 = vld [vmem:[#allocation2 + $0x20] sm:$0xff] }
 0x40c   :  { %v1681_v5 = vmul.f32 %v1626_v10, %v4794_v63  ;;  %v1368_v62 = vmul.f32 %v1345_v27, %v3860_v9 }
 0x40e   :  { %v3069_v50 = vpop.f32.mrb[40].mxu0  ;;  %1809 = vrot.lane.b32.xlu1 %v1678_v19, %s3588_s2  ;;  %1725 = vrot.lane.b32.xlu0 %v1363_v35, %s3588_s2  ;;  %v1895_v19 = vld [vmem:[#allocation2 + $0x60] sm:$0xff] }
 0x40f   :  { %v1636_v3 = vpop.f32.mrb[41].mxu0  ;;  %v1684_v43 = vmul.f32 %v3069_v50, %v3897_v18 }
 0x410   :  { %v1683_v55 = vmul.f32 %v1636_v3, %v3902_v23 }
 0x412   :  { %v3072_v37 = vpop.f32.mrb[42].mxu0  ;;  %1811 = vrot.lane.b32.xlu1 %v1679_v44, %s3588_s2  ;;  %1727 = vrot.lane.b32.xlu0 %v1364_v47, %s3588_s2 }
 0x413   :  { %v1646_v42 = vpop.f32.mrb[43].mxu0  ;;  %v1686_v9 = vmul.f32 %v3072_v37, %v3910_v40 }
 0x414   :  { %v1685_v1 = vmul.f32 %v1646_v42, %v3912_v46 }
 0x416   :  { %v3075_v2 = vpop.f32.mrb[44].mxu0  ;;  %1813 = vrot.lane.b32.xlu1 %v1680_v58, %s3588_s2  ;;  %1729 = vrot.lane.b32.xlu0 %v1365_v24, %s3588_s2  ;;  %v1903_v24 = vld [vmem:[#allocation2 + $0xa0] sm:$0xff] }
 0x417   :  { %v1656_v22 = vpop.f32.mrb[45].mxu0  ;;  %v1688_v23 = vmul.f32 %v3075_v2, %v3923_v26 }
 0x418   :  { %v1687_v11 = vmul.f32 %v1656_v22, %v3928_v29 }
 0x41a   :  { %v3078_v28 = vpop.f32.mrb[46].mxu0  ;;  %1815 = vrot.lane.b32.xlu1 %v1681_v5, %s3588_s2  ;;  %1731 = vrot.lane.b32.xlu0 %v1366_v4, %s3588_s2 }
 0x41b   :  { %v1666_v38 = vpop.f32.mrb[47].mxu0  ;;  %v1690_v46 = vmul.f32 %v3078_v28, %v3934_v39 }
 0x41c   :  { %v1689_v18 = vmul.f32 %v1666_v38, %v3936_v45  ;;  %v1911_v38 = vld [vmem:[#allocation2 + $0xe0] sm:$0xff] }
 0x41e   :  { %1817 = vrot.lane.b32.xlu1 %v1682_v6, %s3588_s2  ;;  %1733 = vrot.lane.b32.xlu0 %v1367_v30, %s3588_s2 }
 0x422   :  { %1819 = vrot.lane.b32.xlu1 %v1683_v55, %s3588_s2  ;;  %1735 = vrot.lane.b32.xlu0 %v1368_v62, %s3588_s2  ;;  %v1915_v62 = vld [vmem:[#allocation2 + $0x100] sm:$0xff] }
 0x426   :  { %1821 = vrot.lane.b32.xlu1 %v1684_v43, %s3588_s2  ;;  %1737 = vrot.lane.b32.xlu0 %v1369_v7, %s3588_s2 }
 0x42a   :  { %1823 = vrot.lane.b32.xlu1 %v1685_v1, %s3588_s2  ;;  %1827 = vrot.lane.b32.xlu0 %v1687_v11, %s3588_s2  ;;  %v1919_v1 = vld [vmem:[#allocation2 + $0x120] sm:$0xff] }
 0x42e   :  { %1825 = vrot.lane.b32.xlu1 %v1686_v9, %s3588_s2  ;;  %1829 = vrot.lane.b32.xlu0 %v1688_v23, %s3588_s2 }
 0x432   :  { %1831 = vrot.lane.b32.xlu1 %v1689_v18, %s3588_s2 }
 0x436   :  { %1833 = vrot.lane.b32.xlu1 %v1690_v46, %s3588_s2  ;;  %v1923_v46 = vld [vmem:[#allocation2 + $0x140] sm:$0xff] }
 0x463   :  { %v1710_v29 = vpop.permute.xlu1 %1709 }
 0x464   :  { %1757 = vst.msk [vmem:[#allocation2 + $0x28] sm:$0xff] %vm984_vm2, %v1710_v29  ;;  %v1708_v40 = vpop.permute.xlu0 %1707 }
 0x465   :  { %1758 = vst.msk [vmem:[#allocation2 + $0x30] sm:$0xff] %vm269_vm1, %v1710_v29  ;;  %1756 = vst.msk [vmem:[#allocation2 + $0x10] sm:$0xff] %vm269_vm1, %v1708_v40 }
 0x466   :  { %1755 = vst.msk [vmem:[#allocation2 + $0x8] sm:$0xff] %vm984_vm2, %v1708_v40 }
 0x467   :  { %v1714_v26 = vpop.permute.xlu1 %1713 }
 0x468   :  { %1761 = vst.msk [vmem:[#allocation2 + $0x68] sm:$0xff] %vm984_vm2, %v1714_v26  ;;  %v1712_v45 = vpop.permute.xlu0 %1711 }
 0x469   :  { %1762 = vst.msk [vmem:[#allocation2 + $0x70] sm:$0xff] %vm269_vm1, %v1714_v26  ;;  %1760 = vst.msk [vmem:[#allocation2 + $0x50] sm:$0xff] %vm269_vm1, %v1712_v45 }
 0x46a   :  { %1759 = vst.msk [vmem:[#allocation2 + $0x48] sm:$0xff] %vm984_vm2, %v1712_v45 }
 0x46b   :  { %v1888_v14 = vld [vmem:[#allocation2 + $0x28] sm:$0xff] }
 0x46c   :  { %v1716_v39 = vpop.permute.xlu0 %1715 }
 0x46d   :  { %v1884_v53 = vld [vmem:[#allocation2 + $0x8] sm:$0xff]  ;;  %1763 = vst.msk [vmem:[#allocation2 + $0x88] sm:$0xff] %vm984_vm2, %v1716_v39 }
 0x46e   :  { %1764 = vst.msk [vmem:[#allocation2 + $0x90] sm:$0xff] %vm269_vm1, %v1716_v39  ;;  %2115 = vmatprep.mubr.f32.mxu1 %v1884_v53  ;;  %v1927_v39 = vld [vmem:[#allocation2 + $0x160] sm:$0xff] }
 0x46f   :  { %2116 = vmatmul.mubr.f32.vlgmr.msra.gmra.mrb[32].mxu1 %v1883_v54  ;;  %v1896_v35 = vld [vmem:[#allocation2 + $0x68] sm:$0xff] }
 0x470   :  { %2120 = vmatprep.mubr.f32.mxu1 %v1888_v14  ;;  %3291 = vmatpush1.bf16.msra.mxu1 %v4297_v56  ;;  %v1718_v25 = vpop.permute.xlu0 %1717  ;;  %v1891_v56 = vld [vmem:[#allocation2 + $0x40] sm:$0xff] }
 0x471   :  { %3280 = vmatprep.subr.bf16.mxu1 %v3589_v8  ;;  %1765 = vst.msk [vmem:[#allocation2 + $0xa8] sm:$0xff] %vm984_vm2, %v1718_v25  ;;  %v1892_v27 = vld [vmem:[#allocation2 + $0x48] sm:$0xff] }
 0x472   :  { %1766 = vst.msk [vmem:[#allocation2 + $0xb0] sm:$0xff] %vm269_vm1, %v1718_v25  ;;  %v1931_v25 = vld [vmem:[#allocation2 + $0x180] sm:$0xff] }
 0x473   :  { %2121 = vmatmul.mubr.f32.gmra.mrb[34].mxu1 %v1887_v0 }
 0x474   :  { %2125 = vmatprep.mubr.f32.mxu1 %v1892_v27  ;;  %3292 = vmatpush1.bf16.msra.mxu1 %v4300_v52  ;;  %v1804_v10 = vpop.permute.xlu1 %1803  ;;  %v1720_v41 = vpop.permute.xlu0 %1719  ;;  %v1900_v50 = vld [vmem:[#allocation2 + $0x88] sm:$0xff] }
 0x475   :  { %3281 = vmatprep.subr.bf16.mxu1 %v3589_v8  ;;  %1851 = vst.msk [vmem:[#allocation2 + $0x10] sm:$0xff] %vm984_vm2, %v1804_v10  ;;  %1767 = vst.msk [vmem:[#allocation2 + $0xc8] sm:$0xff] %vm984_vm2, %v1720_v41 }
 0x476   :  { %1852 = vst.msk [vmem:[#allocation2 + $0x18] sm:$0xff] %vm269_vm1, %v1804_v10  ;;  %1768 = vst.msk [vmem:[#allocation2 + $0xd0] sm:$0xff] %vm269_vm1, %v1720_v41 }
 0x477   :  { %2126 = vmatmul.mubr.f32.gmra.mrb[36].mxu1 %v1891_v56  ;;  %v1935_v56 = vld [vmem:[#allocation2 + $0x1a0] sm:$0xff] }
 0x478   :  { %2130 = vmatprep.mubr.f32.mxu1 %v1896_v35  ;;  %3293 = vmatpush1.bf16.msra.mxu1 %v4304_v34  ;;  %v1806_v12 = vpop.permute.xlu1 %1805  ;;  %v1722_v52 = vpop.permute.xlu0 %1721 }
 0x479   :  { %3282 = vmatprep.subr.bf16.mxu1 %v3589_v8  ;;  %1853 = vst.msk [vmem:[#allocation2 + $0x30] sm:$0xff] %vm984_vm2, %v1806_v12  ;;  %1769 = vst.msk [vmem:[#allocation2 + $0xe8] sm:$0xff] %vm984_vm2, %v1722_v52 }
 0x47a   :  { %1854 = vst.msk [vmem:[#allocation2 + $0x38] sm:$0xff] %vm269_vm1, %v1806_v12  ;;  %1770 = vst.msk [vmem:[#allocation2 + $0xf0] sm:$0xff] %vm269_vm1, %v1722_v52 }
 0x47b   :  { %2131 = vmatmul.mubr.f32.gmra.mrb[38].mxu1 %v1895_v19 }
 0x47c   :  { %2135 = vmatprep.mubr.f32.mxu1 %v1900_v50  ;;  %3294 = vmatpush1.bf16.msra.mxu1 %v4308_v31  ;;  %v1808_v3 = vpop.permute.xlu1 %1807  ;;  %v1724_v34 = vpop.permute.xlu0 %1723  ;;  %v1885_v47 = vld [vmem:[#allocation2 + $0x10] sm:$0xff]  ;;  %v1904_v31 = vld [vmem:[#allocation2 + $0xa8] sm:$0xff]  ;;  %v1939_v50 = vld [vmem:[#allocation2 + $0x1c0] sm:$0xff] }
 0x47d   :  { %v1886_v16 = vld [vmem:[#allocation2 + $0x18] sm:$0xff]  ;;  %3283 = vmatprep.subr.bf16.mxu1 %v3589_v8  ;;  %1855 = vst.msk [vmem:[#allocation2 + $0x50] sm:$0xff] %vm984_vm2, %v1808_v3  ;;  %1771 = vst.msk [vmem:[#allocation2 + $0x108] sm:$0xff] %vm984_vm2, %v1724_v34 }
 0x47e   :  { %1856 = vst.msk [vmem:[#allocation2 + $0x58] sm:$0xff] %vm269_vm1, %v1808_v3  ;;  %1772 = vst.msk [vmem:[#allocation2 + $0x110] sm:$0xff] %vm269_vm1, %v1724_v34  ;;  %2585 = vmatprep.mubr.msk.f32.mxu0 %vm269_vm1, %v1886_v16 }
 0x47f   :  { %2136 = vmatmul.mubr.f32.gmra.mrb[40].mxu1 %v1899_v13  ;;  %2261 = vmatmul.mubr.f32.vlgmr.msra.gmra.mrb[48].mxu0 %v1885_v47  ;;  %v1943_v13 = vld [vmem:[#allocation2 + $0x1e0] sm:$0xff] }
 0x480   :  { %2140 = vmatprep.mubr.f32.mxu1 %v1904_v31  ;;  %3295 = vmatpush1.bf16.msra.mxu1 %v4312_v36  ;;  %v1810_v44 = vpop.permute.xlu1 %1809  ;;  %v1726_v37 = vpop.permute.xlu0 %1725  ;;  %v1889_v20 = vld [vmem:[#allocation2 + $0x30] sm:$0xff]  ;;  %v1908_v36 = vld [vmem:[#allocation2 + $0xc8] sm:$0xff] }
 0x481   :  { %v1890_v42 = vld [vmem:[#allocation2 + $0x38] sm:$0xff]  ;;  %3284 = vmatprep.subr.bf16.mxu1 %v3589_v8  ;;  %1857 = vst.msk [vmem:[#allocation2 + $0x70] sm:$0xff] %vm984_vm2, %v1810_v44  ;;  %1773 = vst.msk [vmem:[#allocation2 + $0x128] sm:$0xff] %vm984_vm2, %v1726_v37 }
 0x482   :  { %1858 = vst.msk [vmem:[#allocation2 + $0x78] sm:$0xff] %vm269_vm1, %v1810_v44  ;;  %1774 = vst.msk [vmem:[#allocation2 + $0x130] sm:$0xff] %vm269_vm1, %v1726_v37  ;;  %2586 = vmatprep.mubr.msk.f32.mxu0 %vm269_vm1, %v1890_v42 }
 0x483   :  { %2141 = vmatmul.mubr.f32.gmra.mrb[42].mxu1 %v1903_v24  ;;  %2266 = vmatmul.mubr.f32.gmra.mrb[50].mxu0 %v1889_v20 }
 0x484   :  { %2145 = vmatprep.mubr.f32.mxu1 %v1908_v36  ;;  %3296 = vmatpush1.bf16.msra.mxu1 %v4316_v51  ;;  %v1812_v60 = vpop.permute.xlu1 %1811  ;;  %v1728_v58 = vpop.permute.xlu0 %1727  ;;  %v1893_v22 = vld [vmem:[#allocation2 + $0x50] sm:$0xff]  ;;  %v1912_v51 = vld [vmem:[#allocation2 + $0xe8] sm:$0xff] }
 0x485   :  { %v1894_v2 = vld [vmem:[#allocation2 + $0x58] sm:$0xff]  ;;  %3285 = vmatprep.subr.bf16.mxu1 %v3589_v8  ;;  %1859 = vst.msk [vmem:[#allocation2 + $0x90] sm:$0xff] %vm984_vm2, %v1812_v60  ;;  %1775 = vst.msk [vmem:[#allocation2 + $0x148] sm:$0xff] %vm984_vm2, %v1728_v58 }
 0x486   :  { %1860 = vst.msk [vmem:[#allocation2 + $0x98] sm:$0xff] %vm269_vm1, %v1812_v60  ;;  %1776 = vst.msk [vmem:[#allocation2 + $0x150] sm:$0xff] %vm269_vm1, %v1728_v58  ;;  %2587 = vmatprep.mubr.msk.f32.mxu0 %vm269_vm1, %v1894_v2 }
 0x487   :  { %2146 = vmatmul.mubr.f32.gmra.mrb[44].mxu1 %v1907_v59  ;;  %2271 = vmatmul.mubr.f32.gmra.mrb[52].mxu0 %v1893_v22 }
 0x488   :  { %2150 = vmatprep.mubr.f32.mxu1 %v1912_v51  ;;  %3297 = vmatpush1.bf16.msra.mxu1 %v4321_v21  ;;  %v1814_v4 = vpop.permute.xlu1 %1813  ;;  %v1730_v63 = vpop.permute.xlu0 %1729  ;;  %v1897_v28 = vld [vmem:[#allocation2 + $0x70] sm:$0xff]  ;;  %v1916_v21 = vld [vmem:[#allocation2 + $0x108] sm:$0xff] }
 0x489   :  { %v1898_v5 = vld [vmem:[#allocation2 + $0x78] sm:$0xff]  ;;  %3286 = vmatprep.subr.bf16.mxu1 %v3589_v8  ;;  %1861 = vst.msk [vmem:[#allocation2 + $0xb0] sm:$0xff] %vm984_vm2, %v1814_v4  ;;  %1777 = vst.msk [vmem:[#allocation2 + $0x168] sm:$0xff] %vm984_vm2, %v1730_v63 }
 0x48a   :  { %1862 = vst.msk [vmem:[#allocation2 + $0xb8] sm:$0xff] %vm269_vm1, %v1814_v4  ;;  %1778 = vst.msk [vmem:[#allocation2 + $0x170] sm:$0xff] %vm269_vm1, %v1730_v63  ;;  %2588 = vmatprep.mubr.msk.f32.mxu0 %vm269_vm1, %v1898_v5  ;;  %v2341_v5 = vlaneseq }
 0x48b   :  { %2151 = vmatmul.mubr.f32.gmra.mrb[46].mxu1 %v1911_v38  ;;  %2276 = vmatmul.mubr.f32.gmra.mrb[54].mxu0 %v1897_v28 }
 0x48c   :  { %2155 = vmatprep.mubr.f32.mxu1 %v1916_v21  ;;  %3298 = vmatpush1.bf16.msra.mxu1 %v4325_v57  ;;  %v1816_v17 = vpop.permute.xlu1 %1815  ;;  %v1732_v30 = vpop.permute.xlu0 %1731  ;;  %v1901_v6 = vld [vmem:[#allocation2 + $0x90] sm:$0xff]  ;;  %v1920_v57 = vld [vmem:[#allocation2 + $0x128] sm:$0xff] }
 0x48d   :  { %v1902_v49 = vld [vmem:[#allocation2 + $0x98] sm:$0xff]  ;;  %3287 = vmatprep.subr.bf16.mxu1 %v3589_v8  ;;  %1863 = vst.msk [vmem:[#allocation2 + $0xd0] sm:$0xff] %vm984_vm2, %v1816_v17  ;;  %1779 = vst.msk [vmem:[#allocation2 + $0x188] sm:$0xff] %vm984_vm2, %v1732_v30 }
 0x48e   :  { %1864 = vst.msk [vmem:[#allocation2 + $0xd8] sm:$0xff] %vm269_vm1, %v1816_v17  ;;  %1780 = vst.msk [vmem:[#allocation2 + $0x190] sm:$0xff] %vm269_vm1, %v1732_v30  ;;  %2589 = vmatprep.mubr.msk.f32.mxu0 %vm269_vm1, %v1902_v49  ;;  %v4512_v17 = vand.u32 127, %v2341_v5 }
 0x48f   :  { %2156 = vmatmul.mubr.f32.gmra.mrb[48].mxu1 %v1915_v62  ;;  %2281 = vmatmul.mubr.f32.gmra.mrb[56].mxu0 %v1901_v6 }
 0x490   :  { %2160 = vmatprep.mubr.f32.mxu1 %v1920_v57  ;;  %3299 = vmatpush1.bf16.msra.mxu1 %v4330_v48  ;;  %v1818_v55 = vpop.permute.xlu1 %1817  ;;  %v1734_v61 = vpop.permute.xlu0 %1733  ;;  %v1905_v43 = vld [vmem:[#allocation2 + $0xb0] sm:$0xff]  ;;  %v1924_v48 = vld [vmem:[#allocation2 + $0x148] sm:$0xff]  ;;  %vm2343_vm3 = vcmp.lt.s32.totalorder %v4512_v17, 8 }
 0x491   :  { %v1906_v7 = vld [vmem:[#allocation2 + $0xb8] sm:$0xff]  ;;  %3288 = vmatprep.subr.bf16.mxu1 %v3589_v8  ;;  %1865 = vst.msk [vmem:[#allocation2 + $0xf0] sm:$0xff] %vm984_vm2, %v1818_v55  ;;  %1781 = vst.msk [vmem:[#allocation2 + $0x1a8] sm:$0xff] %vm984_vm2, %v1734_v61 }
 0x492   :  { %1866 = vst.msk [vmem:[#allocation2 + $0xf8] sm:$0xff] %vm269_vm1, %v1818_v55  ;;  %1782 = vst.msk [vmem:[#allocation2 + $0x1b0] sm:$0xff] %vm269_vm1, %v1734_v61  ;;  %2590 = vmatprep.mubr.msk.f32.mxu0 %vm269_vm1, %v1906_v7 }
 0x493   :  { %2161 = vmatmul.mubr.f32.gmra.mrb[50].mxu1 %v1919_v1  ;;  %2286 = vmatmul.mubr.f32.gmra.mrb[58].mxu0 %v1905_v43 }
 0x494   :  { %2165 = vmatprep.mubr.f32.mxu1 %v1924_v48  ;;  %3300 = vmatpush1.bf16.msra.mxu1 %v4337_v32  ;;  %v1820_v11 = vpop.permute.xlu1 %1819  ;;  %v1736_v9 = vpop.permute.xlu0 %1735  ;;  %v1909_v18 = vld [vmem:[#allocation2 + $0xd0] sm:$0xff]  ;;  %v1928_v32 = vld [vmem:[#allocation2 + $0x168] sm:$0xff] }
 0x495   :  { %v1910_v23 = vld [vmem:[#allocation2 + $0xd8] sm:$0xff]  ;;  %3289 = vmatprep.subr.bf16.mxu1 %v3589_v8  ;;  %1867 = vst.msk [vmem:[#allocation2 + $0x110] sm:$0xff] %vm984_vm2, %v1820_v11  ;;  %1783 = vst.msk [vmem:[#allocation2 + $0x1c8] sm:$0xff] %vm984_vm2, %v1736_v9 }
 0x496   :  { %1868 = vst.msk [vmem:[#allocation2 + $0x118] sm:$0xff] %vm269_vm1, %v1820_v11  ;;  %1784 = vst.msk [vmem:[#allocation2 + $0x1d0] sm:$0xff] %vm269_vm1, %v1736_v9  ;;  %2591 = vmatprep.mubr.msk.f32.mxu0 %vm269_vm1, %v1910_v23 }
 0x497   :  { %2166 = vmatmul.mubr.f32.gmra.mrb[52].mxu1 %v1923_v46  ;;  %2291 = vmatmul.mubr.f32.gmra.mrb[60].mxu0 %v1909_v18 }
 0x498   :  { %2170 = vmatprep.mubr.f32.mxu1 %v1928_v32  ;;  %3301 = vmatpush1.bf16.msra.mxu1 %v4345_v33  ;;  %v1822_v29 = vpop.permute.xlu1 %1821  ;;  %v1738_v40 = vpop.permute.xlu0 %1737  ;;  %v1913_v45 = vld [vmem:[#allocation2 + $0xf0] sm:$0xff]  ;;  %v1932_v33 = vld [vmem:[#allocation2 + $0x188] sm:$0xff] }
 0x499   :  { %v1914_v26 = vld [vmem:[#allocation2 + $0xf8] sm:$0xff]  ;;  %3290 = vmatprep.subr.bf16.mxu1 %v3589_v8  ;;  %1869 = vst.msk [vmem:[#allocation2 + $0x130] sm:$0xff] %vm984_vm2, %v1822_v29  ;;  %1785 = vst.msk [vmem:[#allocation2 + $0x1e8] sm:$0xff] %vm984_vm2, %v1738_v40  ;;  %v1936_v0 = vld [vmem:[#allocation2 + $0x1a8] sm:$0xff] }
 0x49a   :  { %1870 = vst.msk [vmem:[#allocation2 + $0x138] sm:$0xff] %vm269_vm1, %v1822_v29  ;;  %1786 = vst.msk [vmem:[#allocation2 + $0x1f0] sm:$0xff] %vm269_vm1, %v1738_v40  ;;  %2592 = vmatprep.mubr.msk.f32.mxu0 %vm269_vm1, %v1914_v26 }
 0x49b   :  { %2171 = vmatmul.mubr.f32.gmra.mrb[54].mxu1 %v1927_v39  ;;  %2296 = vmatmul.mubr.f32.gmra.mrb[62].mxu0 %v1913_v45 }
 0x49c   :  { %2175 = vmatprep.mubr.f32.mxu1 %v1932_v33  ;;  %3302 = vmatpush1.bf16.msra.mxu1 %v4351_v15  ;;  %v1824_v53 = vpop.permute.xlu1 %1823  ;;  %v1828_v54 = vpop.permute.xlu0 %1827  ;;  %v1917_v14 = vld [vmem:[#allocation2 + $0x110] sm:$0xff]  ;;  %v1940_v35 = vld [vmem:[#allocation2 + $0x1c8] sm:$0xff] }
 0x49d   :  { %v1918_v8 = vld [vmem:[#allocation2 + $0x118] sm:$0xff]  ;;  %1871 = vst.msk [vmem:[#allocation2 + $0x150] sm:$0xff] %vm984_vm2, %v1824_v53  ;;  %1875 = vst.msk [vmem:[#allocation2 + $0x190] sm:$0xff] %vm984_vm2, %v1828_v54 }
 0x49e   :  { %1872 = vst.msk [vmem:[#allocation2 + $0x158] sm:$0xff] %vm269_vm1, %v1824_v53  ;;  %1876 = vst.msk [vmem:[#allocation2 + $0x198] sm:$0xff] %vm269_vm1, %v1828_v54  ;;  %2593 = vmatprep.mubr.msk.f32.mxu0 %vm269_vm1, %v1918_v8 }
 0x49f   :  { %2176 = vmatmul.mubr.f32.gmra.mrb[56].mxu1 %v1931_v25  ;;  %2301 = vmatmul.mubr.f32.gmra.mrb[64].mxu0 %v1917_v14 }
 0x4a0   :  { %2180 = vmatprep.mubr.f32.mxu1 %v1936_v0  ;;  %v1826_v15 = vpop.permute.xlu1 %1825  ;;  %v1830_v27 = vpop.permute.xlu0 %1829  ;;  %v1921_v41 = vld [vmem:[#allocation2 + $0x130] sm:$0xff]  ;;  %v1944_v3 = vld [vmem:[#allocation2 + $0x1e8] sm:$0xff] }
 0x4a1   :  { %v1922_v10 = vld [vmem:[#allocation2 + $0x138] sm:$0xff]  ;;  %1873 = vst.msk [vmem:[#allocation2 + $0x170] sm:$0xff] %vm984_vm2, %v1826_v15  ;;  %1877 = vst.msk [vmem:[#allocation2 + $0x1b0] sm:$0xff] %vm984_vm2, %v1830_v27 }
 0x4a2   :  { %1874 = vst.msk [vmem:[#allocation2 + $0x178] sm:$0xff] %vm269_vm1, %v1826_v15  ;;  %1878 = vst.msk [vmem:[#allocation2 + $0x1b8] sm:$0xff] %vm269_vm1, %v1830_v27  ;;  %2594 = vmatprep.mubr.msk.f32.mxu0 %vm269_vm1, %v1922_v10 }
 0x4a3   :  { %2181 = vmatmul.mubr.f32.gmra.mrb[58].mxu1 %v1935_v56  ;;  %2306 = vmatmul.mubr.f32.gmra.mrb[66].mxu0 %v1921_v41 }
 0x4a4   :  { %2185 = vmatprep.mubr.f32.mxu1 %v1940_v35  ;;  %v1832_v12 = vpop.permute.xlu1 %1831  ;;  %v1925_v19 = vld [vmem:[#allocation2 + $0x150] sm:$0xff] }
 0x4a5   :  { %v1926_v52 = vld [vmem:[#allocation2 + $0x158] sm:$0xff]  ;;  %1879 = vst.msk [vmem:[#allocation2 + $0x1d0] sm:$0xff] %vm984_vm2, %v1832_v12  ;;  %v1933_v42 = vld [vmem:[#allocation2 + $0x190] sm:$0xff] }
 0x4a6   :  { %1880 = vst.msk [vmem:[#allocation2 + $0x1d8] sm:$0xff] %vm269_vm1, %v1832_v12  ;;  %2595 = vmatprep.mubr.msk.f32.mxu0 %vm269_vm1, %v1926_v52  ;;  %v1934_v31 = vld [vmem:[#allocation2 + $0x198] sm:$0xff] }
 0x4a7   :  { %2186 = vmatmul.mubr.f32.gmra.mrb[60].mxu1 %v1939_v50  ;;  %2311 = vmatmul.mubr.f32.gmra.mrb[68].mxu0 %v1925_v19 }
 0x4a8   :  { %2190 = vmatprep.mubr.f32.mxu1 %v1944_v3  ;;  %v1834_v34 = vpop.permute.xlu1 %1833  ;;  %v1929_v47 = vld [vmem:[#allocation2 + $0x170] sm:$0xff] }
 0x4a9   :  { %v1930_v16 = vld [vmem:[#allocation2 + $0x178] sm:$0xff]  ;;  %1881 = vst.msk [vmem:[#allocation2 + $0x1f0] sm:$0xff] %vm984_vm2, %v1834_v34  ;;  %v1937_v60 = vld [vmem:[#allocation2 + $0x1b0] sm:$0xff] }
 0x4aa   :  { %1882 = vst.msk [vmem:[#allocation2 + $0x1f8] sm:$0xff] %vm269_vm1, %v1834_v34  ;;  %2596 = vmatprep.mubr.msk.f32.mxu0 %vm269_vm1, %v1930_v16  ;;  %v1938_v20 = vld [vmem:[#allocation2 + $0x1b8] sm:$0xff] }
 0x4ab   :  { %2191 = vmatmul.mubr.f32.gmra.mrb[62].mxu1 %v1943_v13  ;;  %2316 = vmatmul.mubr.f32.gmra.mrb[70].mxu0 %v1929_v47 }
 0x4ac   :  { %2597 = vmatprep.mubr.msk.f32.mxu0 %vm269_vm1, %v1934_v31  ;;  %v1941_v37 = vld [vmem:[#allocation2 + $0x1d0] sm:$0xff] }
 0x4ad   :  { %v1942_v44 = vld [vmem:[#allocation2 + $0x1d8] sm:$0xff] }
 0x4ae   :  { %2599 = vmatprep.mubr.msk.f32.mxu1 %vm269_vm1, %v1942_v44 }
 0x4af   :  { %2321 = vmatmul.mubr.f32.gmra.mrb[72].mxu0 %v1933_v42  ;;  %2331 = vmatmul.mubr.f32.vlgmr.msra.gmra.mrb[64].mxu1 %v1941_v37 }
 0x4b0   :  { %2598 = vmatprep.mubr.msk.f32.mxu0 %vm269_vm1, %v1938_v20  ;;  %v1945_v36 = vld [vmem:[#allocation2 + $0x1f0] sm:$0xff] }
 0x4b1   :  { %v1946_v24 = vld [vmem:[#allocation2 + $0x1f8] sm:$0xff] }
 0x4b2   :  { %2600 = vmatprep.mubr.msk.f32.mxu1 %vm269_vm1, %v1946_v24 }
 0x4b3   :  { %2326 = vmatmul.mubr.f32.gmra.mrb[74].mxu0 %v1937_v60  ;;  %2336 = vmatmul.mubr.f32.gmra.mrb[66].mxu1 %v1945_v36 }
 0x542   :  { %v2779_v58 = vpop.f32.mrb[32].mxu1 }
 0x543   :  { %v2780_v2 = vpop.f32.mrb[33].mxu1 }
 0x544   :  { %v2781_v22 = vadd.f32 %v2780_v2, %v2779_v58 }
 0x546   :  { %v2782_v59 = vpop.f32.mrb[34].mxu1 }
 0x547   :  { %v2783_v51 = vpop.f32.mrb[35].mxu1 }
 0x548   :  { %v2784_v4 = vadd.f32 %v2783_v51, %v2782_v59 }
 0x54a   :  { %v2785_v63 = vpop.f32.mrb[36].mxu1 }
 0x54b   :  { %v2786_v28 = vpop.f32.mrb[37].mxu1 }
 0x54c   :  { %v2787_v38 = vadd.f32 %v2786_v28, %v2785_v63 }
 0x54e   :  { %v2788_v21 = vpop.f32.mrb[38].mxu1 }
 0x54f   :  { %v2789_v30 = vpop.f32.mrb[39].mxu1 }
 0x550   :  { %v2790_v49 = vadd.f32 %v2789_v30, %v2788_v21 }
 0x552   :  { %v2791_v6 = vpop.f32.mrb[40].mxu1  ;;  %v2262_v62 = vpop.f32.mrb[48].mxu0 }
 0x553   :  { %v2263_v57 = vadd.f32 %v2781_v22, %v2262_v62  ;;  %v2792_v55 = vpop.f32.mrb[41].mxu1  ;;  %v2264_v61 = vpop.f32.mrb[49].mxu0 }
 0x554   :  { %v2793_v7 = vadd.f32 %v2792_v55, %v2791_v6 }
 0x555   :  { %v4517_v43 = vsel %vm2343_vm3, %v2263_v57, -1e+30 }
 0x556   :  { %v2794_v1 = vpop.f32.mrb[42].mxu1  ;;  %v2267_v48 = vpop.f32.mrb[50].mxu0  ;;  %2360 = vmax.xlane.f32.xlu0 %v4517_v43 }
 0x557   :  { %v2268_v11 = vadd.f32 %v2784_v4, %v2267_v48  ;;  %v2795_v9 = vpop.f32.mrb[43].mxu1  ;;  %v2269_v23 = vpop.f32.mrb[51].mxu0 }
 0x558   :  { %v2796_v18 = vadd.f32 %v2795_v9, %v2794_v1 }
 0x559   :  { %v4522_v46 = vsel %vm2343_vm3, %v2268_v11, -1e+30 }
 0x55a   :  { %v2797_v32 = vpop.f32.mrb[44].mxu1  ;;  %v2272_v29 = vpop.f32.mrb[52].mxu0  ;;  %2362 = vmax.xlane.f32.xlu1 %v4522_v46 }
 0x55b   :  { %v2273_v40 = vadd.f32 %v2787_v38, %v2272_v29  ;;  %v2798_v26 = vpop.f32.mrb[45].mxu1  ;;  %v2274_v45 = vpop.f32.mrb[53].mxu0 }
 0x55c   :  { %v2799_v39 = vadd.f32 %v2798_v26, %v2797_v32 }
 0x55d   :  { %v4527_v33 = vsel %vm2343_vm3, %v2273_v40, -1e+30 }
 0x55e   :  { %v2800_v53 = vpop.f32.mrb[46].mxu1  ;;  %v2277_v54 = vpop.f32.mrb[54].mxu0  ;;  %2364 = vmax.xlane.f32.xlu0 %v4527_v33 }
 0x55f   :  { %v2278_v8 = vadd.f32 %v2790_v49, %v2277_v54  ;;  %v2801_v14 = vpop.f32.mrb[47].mxu1  ;;  %v2279_v25 = vpop.f32.mrb[55].mxu0 }
 0x560   :  { %v2802_v0 = vadd.f32 %v2801_v14, %v2800_v53 }
 0x561   :  { %v4532_v15 = vsel %vm2343_vm3, %v2278_v8, -1e+30 }
 0x562   :  { %v2803_v27 = vpop.f32.mrb[48].mxu1  ;;  %v2282_v10 = vpop.f32.mrb[56].mxu0  ;;  %2366 = vmax.xlane.f32.xlu0 %v4532_v15 }
 0x563   :  { %v2283_v41 = vadd.f32 %v2793_v7, %v2282_v10  ;;  %v2804_v56 = vpop.f32.mrb[49].mxu1  ;;  %v2284_v35 = vpop.f32.mrb[57].mxu0 }
 0x564   :  { %v2805_v12 = vadd.f32 %v2804_v56, %v2803_v27 }
 0x565   :  { %v4537_v52 = vsel %vm2343_vm3, %v2283_v41, -1e+30 }
 0x566   :  { %v2806_v19 = vpop.f32.mrb[50].mxu1  ;;  %v2287_v50 = vpop.f32.mrb[58].mxu0  ;;  %2368 = vmax.xlane.f32.xlu1 %v4537_v52 }
 0x567   :  { %v2288_v3 = vadd.f32 %v2796_v18, %v2287_v50  ;;  %v2807_v34 = vpop.f32.mrb[51].mxu1  ;;  %v2289_v16 = vpop.f32.mrb[59].mxu0 }
 0x568   :  { %v2808_v47 = vadd.f32 %v2807_v34, %v2806_v19 }
 0x569   :  { %v4542_v13 = vsel %vm2343_vm3, %v2288_v3, -1e+30 }
 0x56a   :  { %v2809_v31 = vpop.f32.mrb[52].mxu1  ;;  %v2292_v44 = vpop.f32.mrb[60].mxu0  ;;  %2370 = vmax.xlane.f32.xlu0 %v4542_v13 }
 0x56b   :  { %v2293_v37 = vadd.f32 %v2799_v39, %v2292_v44  ;;  %v2810_v42 = vpop.f32.mrb[53].mxu1  ;;  %v2294_v20 = vpop.f32.mrb[61].mxu0 }
 0x56c   :  { %v2811_v24 = vadd.f32 %v2810_v42, %v2809_v31 }
 0x56d   :  { %v4547_v36 = vsel %vm2343_vm3, %v2293_v37, -1e+30 }
 0x56e   :  { %v2812_v60 = vpop.f32.mrb[54].mxu1  ;;  %v2297_v58 = vpop.f32.mrb[62].mxu0  ;;  %2372 = vmax.xlane.f32.xlu1 %v4547_v36 }
 0x56f   :  { %v2298_v2 = vadd.f32 %v2802_v0, %v2297_v58  ;;  %v2813_v22 = vpop.f32.mrb[55].mxu1  ;;  %v2299_v59 = vpop.f32.mrb[63].mxu0 }
 0x570   :  { %v2814_v51 = vadd.f32 %v2813_v22, %v2812_v60 }
 0x571   :  { %v4552_v4 = vsel %vm2343_vm3, %v2298_v2, -1e+30 }
 0x572   :  { %v2815_v63 = vpop.f32.mrb[56].mxu1  ;;  %v2302_v5 = vpop.f32.mrb[64].mxu0  ;;  %2374 = vmax.xlane.f32.xlu0 %v4552_v4 }
 0x573   :  { %v2303_v28 = vadd.f32 %v2805_v12, %v2302_v5  ;;  %v2816_v38 = vpop.f32.mrb[57].mxu1  ;;  %v2304_v21 = vpop.f32.mrb[65].mxu0 }
 0x574   :  { %v2817_v30 = vadd.f32 %v2816_v38, %v2815_v63 }
 0x575   :  { %v4557_v49 = vsel %vm2343_vm3, %v2303_v28, -1e+30 }
 0x576   :  { %v2818_v6 = vpop.f32.mrb[58].mxu1  ;;  %v2307_v62 = vpop.f32.mrb[66].mxu0  ;;  %2376 = vmax.xlane.f32.xlu1 %v4557_v49 }
 0x577   :  { %v2308_v57 = vadd.f32 %v2808_v47, %v2307_v62  ;;  %v2819_v55 = vpop.f32.mrb[59].mxu1  ;;  %v2309_v61 = vpop.f32.mrb[67].mxu0 }
 0x578   :  { %v2820_v7 = vadd.f32 %v2819_v55, %v2818_v6 }
 0x579   :  { %v4562_v1 = vsel %vm2343_vm3, %v2308_v57, -1e+30 }
 0x57a   :  { %v2312_v48 = vpop.f32.mrb[68].mxu0  ;;  %2378 = vmax.xlane.f32.xlu0 %v4562_v1  ;;  %v2821_v11 = vpop.f32.mrb[60].mxu1 }
 0x57b   :  { %v2313_v9 = vadd.f32 %v2811_v24, %v2312_v48  ;;  %v2822_v23 = vpop.f32.mrb[61].mxu1  ;;  %v2314_v18 = vpop.f32.mrb[69].mxu0 }
 0x57c   :  { %v2823_v32 = vadd.f32 %v2822_v23, %v2821_v11 }
 0x57d   :  { %v4567_v29 = vsel %vm2343_vm3, %v2313_v9, -1e+30 }
 0x57e   :  { %v2317_v40 = vpop.f32.mrb[70].mxu0  ;;  %2380 = vmax.xlane.f32.xlu1 %v4567_v29  ;;  %v2824_v26 = vpop.f32.mrb[62].mxu1 }
 0x57f   :  { %v2318_v45 = vadd.f32 %v2814_v51, %v2317_v40  ;;  %v2825_v39 = vpop.f32.mrb[63].mxu1  ;;  %v2319_v53 = vpop.f32.mrb[71].mxu0 }
 0x580   :  { %v2826_v54 = vadd.f32 %v2825_v39, %v2824_v26 }
 0x581   :  { %v4572_v8 = vsel %vm2343_vm3, %v2318_v45, -1e+30 }
 0x582   :  { %2382 = vmax.xlane.f32.xlu0 %v4572_v8  ;;  %v2322_v14 = vpop.f32.mrb[72].mxu0  ;;  %v2332_v25 = vpop.f32.mrb[64].mxu1 }
 0x583   :  { %v2323_v0 = vadd.f32 %v2817_v30, %v2322_v14  ;;  %v2333_v27 = vadd.f32 %v2823_v32, %v2332_v25  ;;  %v2324_v10 = vpop.f32.mrb[73].mxu0  ;;  %v2334_v41 = vpop.f32.mrb[65].mxu1 }
 0x585   :  { %v4577_v56 = vsel %vm2343_vm3, %v2323_v0, -1e+30  ;;  %v4582_v16 = vsel %vm2343_vm3, %v2333_v27, -1e+30 }
 0x586   :  { %v2337_v35 = vpop.f32.mrb[66].mxu1  ;;  %2384 = vmax.xlane.f32.xlu1 %v4577_v56  ;;  %v2327_v12 = vpop.f32.mrb[74].mxu0 }
 0x587   :  { %v2338_v19 = vadd.f32 %v2826_v54, %v2337_v35  ;;  %v2328_v50 = vadd.f32 %v2820_v7, %v2327_v12  ;;  %v2329_v3 = vpop.f32.mrb[75].mxu0  ;;  %v2339_v34 = vpop.f32.mrb[67].mxu1 }
 0x589   :  { %v4586_v47 = vsel %vm2343_vm3, %v2328_v50, -1e+30  ;;  %v4592_v31 = vsel %vm2343_vm3, %v2338_v19, -1e+30 }
 0x58a   :  { %2388 = vmax.xlane.f32.xlu1 %v4582_v16  ;;  %2386 = vmax.xlane.f32.xlu0 %v4586_v47 }
 0x58e   :  { %2390 = vmax.xlane.f32.xlu0 %v4592_v31 }
 0x5e3   :  { %v4595_v44 = vpop.xlane.xlu0 %2360 }
 0x5e4   :  { %v2392_v37 = vsub.f32 %v4517_v43, %v4595_v44 }
 0x5e6   :  { %v2408_v42 = vmul.f32 1.442695, %v2392_v37 }
 0x5e7   :  { %v4599_v20 = vpop.xlane.xlu1 %2362 }
 0x5e8   :  { %3472 = vpow2.f32 %v2408_v42  ;;  %v2393_v24 = vsub.f32 %v4522_v46, %v4599_v20 }
 0x5ea   :  { %v2410_v60 = vmul.f32 1.442695, %v2393_v24 }
 0x5eb   :  { %v4603_v58 = vpop.xlane.xlu0 %2364 }
 0x5ec   :  { %3474 = vpow2.f32 %v2410_v60  ;;  %v2394_v17 = vsub.f32 %v4527_v33, %v4603_v58 }
 0x5ee   :  { %v2412_v2 = vmul.f32 1.442695, %v2394_v17 }
 0x5ef   :  { %v4607_v22 = vpop.xlane.xlu0 %2366 }
 0x5f0   :  { %3476 = vpow2.f32 %v2412_v2  ;;  %v2395_v59 = vsub.f32 %v4532_v15, %v4607_v22 }
 0x5f2   :  { %v3473_v51 = vpop.eup %3472  ;;  %v2414_v63 = vmul.f32 1.442695, %v2395_v59 }
 0x5f3   :  { %v4611_v5 = vpop.xlane.xlu1 %2368  ;;  %2440 = vadd.xlane.f32.xlu1 %v3473_v51 }
 0x5f4   :  { %3478 = vpow2.f32 %v2414_v63  ;;  %v2396_v28 = vsub.f32 %v4537_v52, %v4611_v5 }
 0x5f6   :  { %v3475_v38 = vpop.eup %3474  ;;  %v2416_v21 = vmul.f32 1.442695, %v2396_v28 }
 0x5f7   :  { %2442 = vadd.xlane.f32.xlu0 %v3475_v38  ;;  %v4615_v30 = vpop.xlane.xlu0 %2370 }
 0x5f8   :  { %3480 = vpow2.f32 %v2416_v21  ;;  %v2397_v6 = vsub.f32 %v4542_v13, %v4615_v30 }
 0x5fa   :  { %v3477_v62 = vpop.eup %3476  ;;  %v2418_v57 = vmul.f32 1.442695, %v2397_v6 }
 0x5fb   :  { %v4619_v55 = vpop.xlane.xlu1 %2372  ;;  %2444 = vadd.xlane.f32.xlu1 %v3477_v62 }
 0x5fc   :  { %3482 = vpow2.f32 %v2418_v57  ;;  %v2398_v61 = vsub.f32 %v4547_v36, %v4619_v55 }
 0x5fe   :  { %v3479_v7 = vpop.eup %3478  ;;  %v2420_v48 = vmul.f32 1.442695, %v2398_v61 }
 0x5ff   :  { %2446 = vadd.xlane.f32.xlu0 %v3479_v7  ;;  %v4623_v11 = vpop.xlane.xlu0 %2374 }
 0x600   :  { %3484 = vpow2.f32 %v2420_v48  ;;  %v2399_v9 = vsub.f32 %v4552_v4, %v4623_v11 }
 0x602   :  { %v3481_v23 = vpop.eup %3480  ;;  %v2422_v18 = vmul.f32 1.442695, %v2399_v9 }
 0x603   :  { %v4627_v32 = vpop.xlane.xlu1 %2376  ;;  %2448 = vadd.xlane.f32.xlu1 %v3481_v23 }
 0x604   :  { %3486 = vpow2.f32 %v2422_v18  ;;  %v2400_v40 = vsub.f32 %v4557_v49, %v4627_v32 }
 0x606   :  { %v3483_v26 = vpop.eup %3482  ;;  %v2424_v45 = vmul.f32 1.442695, %v2400_v40 }
 0x607   :  { %2450 = vadd.xlane.f32.xlu0 %v3483_v26  ;;  %v4631_v39 = vpop.xlane.xlu0 %2378 }
 0x608   :  { %3488 = vpow2.f32 %v2424_v45  ;;  %v2401_v53 = vsub.f32 %v4562_v1, %v4631_v39 }
 0x60a   :  { %v3485_v54 = vpop.eup %3484  ;;  %v2426_v14 = vmul.f32 1.442695, %v2401_v53 }
 0x60b   :  { %v4635_v25 = vpop.xlane.xlu1 %2380  ;;  %2452 = vadd.xlane.f32.xlu1 %v3485_v54 }
 0x60c   :  { %3490 = vpow2.f32 %v2426_v14  ;;  %v2402_v0 = vsub.f32 %v4567_v29, %v4635_v25 }
 0x60e   :  { %v3487_v27 = vpop.eup %3486  ;;  %v2428_v10 = vmul.f32 1.442695, %v2402_v0 }
 0x60f   :  { %2454 = vadd.xlane.f32.xlu0 %v3487_v27  ;;  %v4639_v41 = vpop.xlane.xlu0 %2382 }
 0x610   :  { %3492 = vpow2.f32 %v2428_v10  ;;  %v2403_v35 = vsub.f32 %v4572_v8, %v4639_v41 }
 0x612   :  { %v3489_v12 = vpop.eup %3488  ;;  %v2430_v19 = vmul.f32 1.442695, %v2403_v35 }
 0x613   :  { %v4643_v50 = vpop.xlane.xlu1 %2384  ;;  %2456 = vadd.xlane.f32.xlu1 %v3489_v12 }
 0x614   :  { %3494 = vpow2.f32 %v2430_v19  ;;  %v2404_v3 = vsub.f32 %v4577_v56, %v4643_v50 }
 0x616   :  { %v3491_v34 = vpop.eup %3490  ;;  %v2432_v37 = vmul.f32 1.442695, %v2404_v3 }
 0x617   :  { %v4647_v42 = vpop.xlane.xlu1 %2388  ;;  %2458 = vadd.xlane.f32.xlu0 %v3491_v34  ;;  %v4649_v24 = vpop.xlane.xlu0 %2386 }
 0x618   :  { %3496 = vpow2.f32 %v2432_v37  ;;  %v2406_v60 = vsub.f32 %v4582_v16, %v4647_v42  ;;  %v2405_v17 = vsub.f32 %v4586_v47, %v4649_v24 }
 0x61a   :  { %v3493_v2 = vpop.eup %3492  ;;  %v2436_v59 = vmul.f32 1.442695, %v2406_v60  ;;  %v2434_v51 = vmul.f32 1.442695, %v2405_v17 }
 0x61b   :  { %2460 = vadd.xlane.f32.xlu1 %v3493_v2  ;;  %v4655_v63 = vpop.xlane.xlu0 %2390 }
 0x61c   :  { %3498 = vpow2.f32 %v2436_v59  ;;  %v2407_v28 = vsub.f32 %v4592_v31, %v4655_v63 }
 0x61d   :  { %3500 = vpow2.f32 %v2434_v51 }
 0x61e   :  { %v3495_v38 = vpop.eup %3494  ;;  %v2438_v21 = vmul.f32 1.442695, %v2407_v28 }
 0x61f   :  { %2462 = vadd.xlane.f32.xlu0 %v3495_v38 }
 0x620   :  { %3502 = vpow2.f32 %v2438_v21 }
 0x622   :  { %v3497_v6 = vpop.eup %3496 }
 0x623   :  { %2464 = vadd.xlane.f32.xlu1 %v3497_v6 }
 0x626   :  { %v3499_v62 = vpop.eup %3498 }
 0x627   :  { %v3501_v57 = vpop.eup %3500  ;;  %2468 = vadd.xlane.f32.xlu1 %v3499_v62 }
 0x628   :  { %2466 = vadd.xlane.f32.xlu0 %v3501_v57 }
 0x62a   :  { %v3503_v61 = vpop.eup %3502 }
 0x62c   :  { %2470 = vadd.xlane.f32.xlu0 %v3503_v61 }
 0x680   :  { %v2441_v7 = vpop.xlane.xlu1 %2440 }
 0x681   :  { %3504 = vlog2.f32 %v2441_v7 }
 0x684   :  { %v2443_v48 = vpop.xlane.xlu0 %2442 }
 0x685   :  { %3506 = vlog2.f32 %v2443_v48 }
 0x688   :  { %v2445_v9 = vpop.xlane.xlu1 %2444 }
 0x689   :  { %3508 = vlog2.f32 %v2445_v9 }
 0x68b   :  { %v3505_v23 = vpop.eup %3504 }
 0x68c   :  { %v2473_v18 = vmul.f32 0.6931472, %v3505_v23  ;;  %v2447_v40 = vpop.xlane.xlu0 %2446 }
 0x68d   :  { %3510 = vlog2.f32 %v2447_v40 }
 0x68e   :  { %v2504_v26 = vadd.f32 %v2473_v18, %v4595_v44 }
 0x68f   :  { %v3507_v45 = vpop.eup %3506 }
 0x690   :  { %v2520_v53 = vsub.f32 %v4517_v43, %v2504_v26  ;;  %v2475_v54 = vmul.f32 0.6931472, %v3507_v45  ;;  %v2449_v14 = vpop.xlane.xlu1 %2448 }
 0x691   :  { %3512 = vlog2.f32 %v2449_v14 }
 0x692   :  { %2536 = vst [vmem:[#allocation6] sm:$0xff] %v2520_v53  ;;  %v2505_v0 = vadd.f32 %v2475_v54, %v4599_v20 }
 0x693   :  { %v3509_v27 = vpop.eup %3508 }
 0x694   :  { %v2521_v10 = vsub.f32 %v4522_v46, %v2505_v0  ;;  %v2477_v35 = vmul.f32 0.6931472, %v3509_v27  ;;  %v2451_v12 = vpop.xlane.xlu0 %2450 }
 0x695   :  { %3514 = vlog2.f32 %v2451_v12 }
 0x696   :  { %2537 = vst [vmem:[#allocation6 + $0x8] sm:$0xff] %v2521_v10  ;;  %v2506_v19 = vadd.f32 %v2477_v35, %v4603_v58 }
 0x697   :  { %v3511_v3 = vpop.eup %3510 }
 0x698   :  { %v2522_v44 = vsub.f32 %v4527_v33, %v2506_v19  ;;  %v2479_v34 = vmul.f32 0.6931472, %v3511_v3  ;;  %v2453_v43 = vpop.xlane.xlu1 %2452 }
 0x699   :  { %3516 = vlog2.f32 %v2453_v43 }
 0x69a   :  { %2538 = vst [vmem:[#allocation6 + $0x10] sm:$0xff] %v2522_v44  ;;  %v2507_v37 = vadd.f32 %v2479_v34, %v4607_v22 }
 0x69b   :  { %v3513_v60 = vpop.eup %3512 }
 0x69c   :  { %v2523_v20 = vsub.f32 %v4532_v15, %v2507_v37  ;;  %v2481_v17 = vmul.f32 0.6931472, %v3513_v60  ;;  %v2455_v46 = vpop.xlane.xlu0 %2454 }
 0x69d   :  { %3518 = vlog2.f32 %v2455_v46 }
 0x69e   :  { %2539 = vst [vmem:[#allocation6 + $0x18] sm:$0xff] %v2523_v20  ;;  %v2508_v2 = vadd.f32 %v2481_v17, %v4611_v5 }
 0x69f   :  { %v3515_v59 = vpop.eup %3514 }
 0x6a0   :  { %v2524_v58 = vsub.f32 %v4537_v52, %v2508_v2  ;;  %v2483_v51 = vmul.f32 0.6931472, %v3515_v59  ;;  %v2457_v33 = vpop.xlane.xlu1 %2456 }
 0x6a1   :  { %3520 = vlog2.f32 %v2457_v33 }
 0x6a2   :  { %2540 = vst [vmem:[#allocation6 + $0x20] sm:$0xff] %v2524_v58  ;;  %v2509_v28 = vadd.f32 %v2483_v51, %v4615_v30 }
 0x6a3   :  { %v3517_v38 = vpop.eup %3516 }
 0x6a4   :  { %v2525_v22 = vsub.f32 %v4542_v13, %v2509_v28  ;;  %v2485_v21 = vmul.f32 0.6931472, %v3517_v38  ;;  %v2459_v15 = vpop.xlane.xlu0 %2458 }
 0x6a5   :  { %3522 = vlog2.f32 %v2459_v15 }
 0x6a6   :  { %2541 = vst [vmem:[#allocation6 + $0x28] sm:$0xff] %v2525_v22  ;;  %v2510_v6 = vadd.f32 %v2485_v21, %v4619_v55 }
 0x6a7   :  { %v3519_v62 = vpop.eup %3518 }
 0x6a8   :  { %v2526_v5 = vsub.f32 %v4547_v36, %v2510_v6  ;;  %v2487_v57 = vmul.f32 0.6931472, %v3519_v62  ;;  %v2461_v52 = vpop.xlane.xlu1 %2460 }
 0x6a9   :  { %3524 = vlog2.f32 %v2461_v52 }
 0x6aa   :  { %2542 = vst [vmem:[#allocation6 + $0x30] sm:$0xff] %v2526_v5  ;;  %v2511_v61 = vadd.f32 %v2487_v57, %v4623_v11 }
 0x6ab   :  { %v3521_v7 = vpop.eup %3520 }
 0x6ac   :  { %v2527_v30 = vsub.f32 %v4552_v4, %v2511_v61  ;;  %v2489_v48 = vmul.f32 0.6931472, %v3521_v7  ;;  %v2463_v13 = vpop.xlane.xlu0 %2462 }
 0x6ad   :  { %3526 = vlog2.f32 %v2463_v13 }
 0x6ae   :  { %2543 = vst [vmem:[#allocation6 + $0x38] sm:$0xff] %v2527_v30  ;;  %v2512_v9 = vadd.f32 %v2489_v48, %v4627_v32 }
 0x6af   :  { %v3523_v23 = vpop.eup %3522 }
 0x6b0   :  { %v2528_v55 = vsub.f32 %v4557_v49, %v2512_v9  ;;  %v2491_v18 = vmul.f32 0.6931472, %v3523_v23  ;;  %v2465_v36 = vpop.xlane.xlu1 %2464 }
 0x6b1   :  { %3528 = vlog2.f32 %v2465_v36 }
 0x6b2   :  { %2544 = vst [vmem:[#allocation6 + $0x40] sm:$0xff] %v2528_v55  ;;  %v2513_v40 = vadd.f32 %v2491_v18, %v4631_v39 }
 0x6b3   :  { %v3525_v26 = vpop.eup %3524 }
 0x6b4   :  { %v2529_v11 = vsub.f32 %v4562_v1, %v2513_v40  ;;  %v2493_v45 = vmul.f32 0.6931472, %v3525_v26  ;;  %v2469_v4 = vpop.xlane.xlu1 %2468 }
 0x6b5   :  { %3530 = vlog2.f32 %v2469_v4  ;;  %v2467_v53 = vpop.xlane.xlu0 %2466 }
 0x6b6   :  { %2545 = vst [vmem:[#allocation6 + $0x48] sm:$0xff] %v2529_v11  ;;  %v2514_v54 = vadd.f32 %v2493_v45, %v4635_v25  ;;  %3532 = vlog2.f32 %v2467_v53 }
 0x6b7   :  { %v3527_v32 = vpop.eup %3526 }
 0x6b8   :  { %v2530_v49 = vsub.f32 %v4567_v29, %v2514_v54  ;;  %v2495_v14 = vmul.f32 0.6931472, %v3527_v32 }
 0x6b9   :  { %v2471_v0 = vpop.xlane.xlu0 %2470 }
 0x6ba   :  { %2546 = vst [vmem:[#allocation6 + $0x50] sm:$0xff] %v2530_v49  ;;  %v2515_v27 = vadd.f32 %v2495_v14, %v4639_v41  ;;  %3534 = vlog2.f32 %v2471_v0 }
 0x6bb   :  { %v3529_v39 = vpop.eup %3528 }
 0x6bc   :  { %v2531_v1 = vsub.f32 %v4572_v8, %v2515_v27  ;;  %v2497_v10 = vmul.f32 0.6931472, %v3529_v39 }
 0x6be   :  { %2547 = vst [vmem:[#allocation6 + $0x58] sm:$0xff] %v2531_v1  ;;  %v2516_v35 = vadd.f32 %v2497_v10, %v4643_v50 }
 0x6bf   :  { %v3531_v12 = vpop.eup %3530 }
 0x6c0   :  { %v3533_v19 = vpop.eup %3532  ;;  %v2532_v25 = vsub.f32 %v4577_v56, %v2516_v35  ;;  %v2501_v3 = vmul.f32 0.6931472, %v3531_v12 }
 0x6c1   :  { %v2499_v44 = vmul.f32 0.6931472, %v3533_v19 }
 0x6c2   :  { %2548 = vst [vmem:[#allocation6 + $0x60] sm:$0xff] %v2532_v25  ;;  %v2518_v29 = vadd.f32 %v2501_v3, %v4647_v42 }
 0x6c3   :  { %v2517_v34 = vadd.f32 %v2499_v44, %v4649_v24 }
 0x6c4   :  { %v3535_v41 = vpop.eup %3534  ;;  %v2534_v43 = vsub.f32 %v4582_v16, %v2518_v29 }
 0x6c5   :  { %v2533_v8 = vsub.f32 %v4586_v47, %v2517_v34  ;;  %v2503_v37 = vmul.f32 0.6931472, %v3535_v41 }
 0x6c6   :  { %2550 = vst [vmem:[#allocation6 + $0x70] sm:$0xff] %v2534_v43 }
 0x6c7   :  { %2549 = vst [vmem:[#allocation6 + $0x68] sm:$0xff] %v2533_v8  ;;  %v2519_v50 = vadd.f32 %v2503_v37, %v4655_v63 }
 0x6c9   :  { %v2535_v56 = vsub.f32 %v4592_v31, %v2519_v50 }
 0x6cb   :  { %2551 = vst [vmem:[#allocation6 + $0x78] sm:$0xff] %v2535_v56 }
 0x6cc   :  { %3569 = shalt.err (!%p3566_p12)
}
 0x6cd   :  { %s3570_s15 = scalar_lea.hbm %s4713_s7, 2048 }
 0x6ce   :  { %p3571_p13 = scmp.ne.s32.totalorder %s4713_s7, %s3570_s15  ;;  %p3574_p0 = scmp.lt.u32.totalorder %s3570_s15, %s4713_s7 }
 0x6d0   :  { %p3576_p1 = pnand %p3574_p0, %p3571_p13 }
 0x6d2   :  { %3579 = shalt.err (!%p3576_p1)
}
 0x6d3   :  { %2563 = dma.vmem_to_hbm [thread:$0]  %s2558_s9, 2048, %s4713_s7, [#allocation5], %s3585_s11, %s3585_s11, %s3586_s12  }
 0x6d4   :  { %3582 = dma.done.wait [#allocation5], 2048  }
 0x6d5   :  { %3583 = vsyncadd [#allocation5], 4294965248 }
 0x6d6   :  { %2567 = vsyncpa [#allocation4], 1 }
 0x6d7   :  { %2568 = vsyncpa [#allocation5], 1 }

</bundles_post_ra>
